<compile_context>
chip_gen: v6e
topology: v6e:2x2x1
jax: 0.10.0
libtpu: 0.0.40
codegen_flags: <defaults>
</compile_context>

<pallas_src>
import functools
import math

import jax
import jax.numpy as jnp
from jax.experimental import pallas as pl
from jax.experimental.pallas import tpu as pltpu


TB = 128  # batch elements per lane tile (keeps every vreg lane-dense)


# ---------------------------------------------------------------------------
# Fused kernel: one grid step = (one TB-wide batch chunk) x (one head)
# ---------------------------------------------------------------------------
def _fused_axial_kernel(w_ref, outb_ref, x_ref, qe_ref, ket_ref, ve_ref, o_ref,
                        *, C, L, TI, dhqk, dhv):
    # w_ref   : SMEM (heads*RH, C+1)   folded rows [ q | a0*k | k | sv*v ], bias in col C
    # outb_ref: SMEM (heads, dhv)      bn_output bias (sv+sve channels summed)
    # x_ref   : (C, L, TB)             activations, batch on lanes
    # qe_ref  : (heads*dhqk, L, L, TB) 0.3*a1[g]*q_emb, indexed [row, j, i, t]
    # ket_ref : (heads*dhqk, L, L, TB) 0.3*a2[g]*k_emb, indexed [row, j, i, t]
    # ve_ref  : (heads*dhv,  L, L, TB) sve-scaled v_emb, indexed [row, j, i, t]
    # o_ref   : (dhv, L, TB)           this head's output slab
    g = pl.program_id(1)
    RH = 3 * dhqk + dhv
    base = g * RH

    # ---- fused 1x1 conv / BN / gate projection (tiny VPU scalar MACs) -------
    xs = [x_ref[c] for c in range(C)]                        # C slabs of (L, TB)

    def project(row):
        acc = xs[0] * w_ref[base + row, 0]
        for c in range(1, C):
            acc = acc + xs[c] * w_ref[base + row, c]
        return acc + w_ref[base + row, C]                    # folded bias

    q_rows = [project(c) for c in range(dhqk)]               # raw q
    kq_rows = [project(dhqk + c) for c in range(dhqk)]       # a0[g] * k
    k_rows = [project(2 * dhqk + c) for c in range(dhqk)]    # raw k
    v_rows = [project(3 * dhqk + c) for c in range(dhv)]     # sv-scaled v (+qkv bias)

    # ---- attention, TI query rows at a time to bound vreg pressure ----------
    for ih in range(L // TI):
        i0 = ih * TI
        s = None
        for c in range(dhqk):
            r = g * dhqk + c
            q_b = q_rows[c][i0:i0 + TI, :][None, :, :]        # (1, TI, TB)
            kq_b = kq_rows[c][:, None, :]                     # (L, 1, TB)
            k_b = k_rows[c][:, None, :]                       # (L, 1, TB)
            qe_b = qe_ref[r, :, i0:i0 + TI, :]                # (L, TI, TB)
            ket_b = ket_ref[r, :, i0:i0 + TI, :]              # (L, TI, TB)
            term = q_b * (kq_b + qe_b) + k_b * ket_b          # fused qk+qr multiply
            s = term if s is None else s + term               # (L_j, TI, TB)

        # softmax over the key axis j (leading axis -> pure VALU reductions).
        # The per-head bn_similarity bias is constant along j, so it is dropped.
        s = s - jnp.max(s, axis=0, keepdims=True)
        e = jnp.exp(s)
        den = jnp.sum(e, axis=0, keepdims=True)
        r0 = pl.reciprocal(den, approx=True)                  # EUP vrcp (free slot)
        inv = r0 * (2.0 - den * r0)                           # one Newton step
        sim = e * inv                                         # (L_j, TI, TB)

        for oc in range(dhv):
            v_b = v_rows[oc][:, None, :]                      # (L, 1, TB)
            ve_b = ve_ref[g * dhv + oc, :, i0:i0 + TI, :]     # (L, TI, TB)
            out = jnp.sum(sim * (v_b + ve_b), axis=0)         # (TI, TB)
            o_ref[oc, i0:i0 + TI, :] = out + outb_ref[g, oc]  # unmasked lane-dense store


# ---------------------------------------------------------------------------
# Plain-JAX glue: BN folding, relative embeddings, layout plumbing, wrapper
# ---------------------------------------------------------------------------
def _bn_affine(gamma, beta, mean, var, eps=1e-5):
    s = gamma / jnp.sqrt(var + eps)
    return s, beta - mean * s


def _relative_embeddings(relative, dim, dhqk, dhv):
    qi = jnp.arange(dim)[None, :]
    ki = jnp.arange(dim)[:, None]
    flat_idx = (ki - qi + dim - 1).reshape(-1)
    all_emb = jnp.take(relative, flat_idx, axis=1).reshape(2 * dhv, dim, dim)
    return all_emb[:dhqk], all_emb[dhqk:2 * dhqk], all_emb[2 * dhqk:]


def gated_axial_attention(x, params, *, heads, out_channels, dim, flag):
    N, Cin, Hh, Ww = x.shape
    dhv = out_channels // heads
    dhqk = dhv // 2
    hq = heads * dhqk
    RH = 3 * dhqk + dhv
    L = dim
    OC = out_channels

    if flag:
        assert Ww == dim
        xp = jnp.transpose(x, (0, 2, 1, 3))                  # (N, Hh, Cin, Ww)
    else:
        assert Hh == dim
        xp = jnp.transpose(x, (0, 3, 1, 2))                  # (N, Ww, Cin, Hh)
    B = xp.shape[0] * xp.shape[1]
    x2d = xp.reshape(B, Cin, L).astype(jnp.float32)

    # ---- fold both qkv-path BNs + gates into the projection rows ------------
    s1, b1 = _bn_affine(*params["bn_conv"])
    s2, b2 = _bn_affine(*params["bn_qkv"])
    S = s1 * s2
    Bc = b1 * s2 + b2
    W = params["w_qkv"].astype(jnp.float32)                  # (2*OC, Cin)

    base = jnp.arange(heads) * (2 * dhv)
    q_idx = (base[:, None] + jnp.arange(dhqk)[None, :]).reshape(-1)
    k_idx = (base[:, None] + dhqk + jnp.arange(dhqk)[None, :]).reshape(-1)
    v_idx = (base[:, None] + 2 * dhqk + jnp.arange(dhv)[None, :]).reshape(-1)

    ssim, _ = _bn_affine(*params["bn_sim"])                  # bias softmax-invariant
    a0 = ssim[:heads]
    a1 = ssim[heads:2 * heads]
    a2 = ssim[2 * heads:]
    sout, bout = _bn_affine(*params["bn_out"])
    sv_s = sout[0::2] * 0.5                                  # f_sv folded
    sve_s = sout[1::2] * 0.3                                 # f_sve folded
    out_b = (bout[0::2] + bout[1::2]).reshape(heads, dhv)    # added after attention

    def rows_aug(rows, row_scale=None):
        w = W[rows] * S[rows][:, None]
        b = Bc[rows]
        if row_scale is not None:
            w = w * row_scale[:, None]
            b = b * row_scale
        return jnp.concatenate([w, b[:, None]], axis=1)      # (n, Cin+1)

    w_all = jnp.concatenate([
        rows_aug(q_idx).reshape(heads, dhqk, Cin + 1),                     # raw q
        rows_aug(k_idx, jnp.repeat(a0, dhqk)).reshape(heads, dhqk, Cin + 1),  # a0*k
        rows_aug(k_idx).reshape(heads, dhqk, Cin + 1),                     # raw k
        rows_aug(v_idx, sv_s).reshape(heads, dhv, Cin + 1),                # sv*v
    ], axis=1).reshape(heads * RH, Cin + 1)

    # ---- relative embeddings: per-head scaled, key-major, lane-broadcast ----
    q_emb, k_emb, v_emb = _relative_embeddings(params["relative"], dim, dhqk, dhv)
    qeT = (0.3 * a1)[:, None, None, None] * jnp.swapaxes(q_emb, 1, 2)[None]
    ketT = (0.3 * a2)[:, None, None, None] * k_emb[None]
    veT = sve_s.reshape(heads, dhv)[:, :, None, None] * jnp.swapaxes(v_emb, 1, 2)[None]
    qe_in = jnp.broadcast_to(qeT.reshape(hq, L, L)[..., None], (hq, L, L, TB))
    ket_in = jnp.broadcast_to(ketT.reshape(hq, L, L)[..., None], (hq, L, L, TB))
    ve_in = jnp.broadcast_to(veT.reshape(OC, L, L)[..., None], (OC, L, L, TB))

    # ---- batch on lanes: x as (Cin, L, B_pad), B padded to a multiple of TB --
    B_pad = ((B + TB - 1) // TB) * TB
    x_clb = jnp.transpose(x2d, (1, 2, 0))                    # (Cin, L, B)
    x_in = jnp.pad(x_clb, ((0, 0), (0, 0), (0, B_pad - B)))

    TI = 8 if L % 8 == 0 else L                              # query rows per slab
    nb = B_pad // TB
    kernel = functools.partial(_fused_axial_kernel, C=Cin, L=L, TI=TI,
                               dhqk=dhqk, dhv=dhv)
    cost = pl.CostEstimate(
        flops=heads * L * L * B_pad * (4 * dhqk + 3 * dhv + 8)
        + 2 * heads * RH * (Cin + 1) * L * B_pad,
        transcendentals=heads * L * L * B_pad,
        bytes_accessed=4 * (Cin * L * B_pad + (2 * hq + OC) * L * L * TB
                            + OC * L * B_pad),
    )
    # grid = (batch chunks, heads); both axes are parallel (no cross-step state),
    # heads innermost so the x block (b-dependent only) is fetched once per chunk.
    out3 = pl.pallas_call(
        kernel,
        out_shape=jax.ShapeDtypeStruct((OC, L, B_pad), jnp.float32),
        grid_spec=pltpu.PrefetchScalarGridSpec(
            num_scalar_prefetch=0,
            grid=(nb, heads),
            in_specs=[
                pl.BlockSpec(memory_space=pltpu.MemorySpace.SMEM),       # w_all
                pl.BlockSpec(memory_space=pltpu.MemorySpace.SMEM),       # out_b
                pl.BlockSpec((Cin, L, TB), lambda b, g: (0, 0, b)),      # x
                pl.BlockSpec((hq, L, L, TB), lambda b, g: (0, 0, 0, 0)),  # qe (fetched once)
                pl.BlockSpec((hq, L, L, TB), lambda b, g: (0, 0, 0, 0)),  # ket
                pl.BlockSpec((OC, L, L, TB), lambda b, g: (0, 0, 0, 0)),  # ve
            ],
            out_specs=pl.BlockSpec((dhv, L, TB), lambda b, g: (g, 0, b)),
        ),
        compiler_params=pltpu.CompilerParams(
            dimension_semantics=("parallel", "parallel")),
        cost_estimate=cost,
    )(w_all, out_b, x_in, qe_in, ket_in, ve_in)

    out3 = out3[:, :, :B]                                    # drop batch padding
    if flag:
        out = out3.reshape(OC, Ww, N, Hh)                    # (oc, w, n, h)
        return jnp.transpose(out, (2, 0, 3, 1))              # (N, OC, H, W)
    out = out3.reshape(OC, Hh, N, Ww)                        # (oc, h, n, w)
    return jnp.transpose(out, (2, 0, 1, 3))                  # (N, OC, H, W)


# ---------------------------------------------------------------------------
# Pure-JAX transcription of the PyTorch forward (eval-mode BN) for checking
# ---------------------------------------------------------------------------
def reference_forward(x, params, *, heads, out_channels, dim, flag):
    eps = 1e-5
    N = x.shape[0]
    dhv = out_channels // heads
    dhqk = dhv // 2
    if flag:
        xp = jnp.transpose(x, (0, 2, 1, 3))
    else:
        xp = jnp.transpose(x, (0, 3, 1, 2))
    _, W, C, H = xp.shape
    xf = xp.reshape(N * W, C, H)

    def bn1d(y, p):
        g, b, m, v = p
        return (y - m[None, :, None]) / jnp.sqrt(v[None, :, None] + eps) \
            * g[None, :, None] + b[None, :, None]

    qkv = jnp.einsum("oc,bch->boh", params["w_qkv"], xf)
    qkv = bn1d(qkv, params["bn_conv"])
    qkv = bn1d(qkv, params["bn_qkv"])
    qkv = qkv.reshape(N * W, heads, 2 * dhv, H)
    q = qkv[:, :, :dhqk]
    k = qkv[:, :, dhqk:2 * dhqk]
    v = qkv[:, :, 2 * dhqk:]

    q_emb, k_emb, v_emb = _relative_embeddings(params["relative"], dim, dhqk, dhv)

    qr = jnp.einsum("bgci,cij->bgij", q, q_emb) * 0.3
    kr = jnp.swapaxes(jnp.einsum("bgci,cij->bgij", k, k_emb), 2, 3) * 0.3
    qk = jnp.einsum("bgci,bgcj->bgij", q, k)
    stacked = jnp.concatenate([qk, qr, kr], axis=1)
    g, b, m, var = params["bn_sim"]
    stacked = (stacked - m[None, :, None, None]) / jnp.sqrt(var[None, :, None, None] + eps) \
        * g[None, :, None, None] + b[None, :, None, None]
    ss = stacked.reshape(N * W, 3, heads, H, H).sum(axis=1)
    sim = jax.nn.softmax(ss, axis=3)
    sv = jnp.einsum("bgij,bgcj->bgci", sim, v) * 0.5
    sve = jnp.einsum("bgij,cij->bgci", sim, v_emb) * 0.3
    stacked_out = jnp.concatenate([sv, sve], axis=-1).reshape(N * W, out_channels * 2, H)
    stacked_out = bn1d(stacked_out, params["bn_out"])
    out = stacked_out.reshape(N, W, out_channels, 2, H).sum(axis=-2)
    if flag:
        return jnp.transpose(out, (0, 2, 1, 3))
    return jnp.transpose(out, (0, 2, 3, 1))


def init_params(key, in_channels, out_channels, heads, dim):
    dhv = out_channels // heads
    qkvc = 2 * out_channels
    ks = jax.random.split(key, 6)

    def bn(k, n):
        k1, k2, k3, k4 = jax.random.split(k, 4)
        gamma = 1.0 + 0.1 * jax.random.normal(k1, (n,), jnp.float32)
        beta = 0.1 * jax.random.normal(k2, (n,), jnp.float32)
        mean = 0.1 * jax.random.normal(k3, (n,), jnp.float32)
        var = 1.0 + 0.1 * jnp.abs(jax.random.normal(k4, (n,), jnp.float32))
        return gamma, beta, mean, var

    return dict(
        w_qkv=0.2 * jax.random.normal(ks[0], (qkvc, in_channels), jnp.float32),
        bn_conv=bn(ks[1], qkvc),
        bn_qkv=bn(ks[2], qkvc),
        bn_sim=bn(ks[3], 3 * heads),
        bn_out=bn(ks[4], 2 * out_channels),
        relative=math.sqrt(1.0 / dhv)
        * jax.random.normal(ks[5], (2 * dhv, 2 * dim - 1), jnp.float32),
    )


if __name__ == "__main__":
    in_channels, out_channels, heads, dim = 4, 8, 2, 16

    key = jax.random.PRNGKey(0)
    kx, kp = jax.random.split(key)
    params = init_params(kp, in_channels, out_channels, heads, dim)

    # flag=False: attention along H (H == dim), W arbitrary.
    x_h = jax.random.normal(kx, (2, in_channels, dim, 8), jnp.float32)
    fwd_h = jax.jit(functools.partial(gated_axial_attention, heads=heads,
                                      out_channels=out_channels, dim=dim, flag=False))
    out = jax.block_until_ready(fwd_h(x_h, params))
    ref = reference_forward(x_h, params, heads=heads, out_channels=out_channels,
                            dim=dim, flag=False)
    assert out.shape == ref.shape == (2, out_channels, dim, 8), out.shape
    err = float(jnp.max(jnp.abs(out - ref)))
    assert err < 2e-3, f"flag=False kernel/reference mismatch: {err}"

    # flag=True: attention along W (W == dim), H arbitrary.
    x_w = jax.random.normal(kx, (2, in_channels, 8, dim), jnp.float32)
    fwd_w = jax.jit(functools.partial(gated_axial_attention, heads=heads,
                                      out_channels=out_channels, dim=dim, flag=True))
    out = jax.block_until_ready(fwd_w(x_w, params))
    ref = reference_forward(x_w, params, heads=heads, out_channels=out_channels,
                            dim=dim, flag=True)
    assert out.shape == ref.shape == (2, out_channels, 8, dim), out.shape
    err = float(jnp.max(jnp.abs(out - ref)))
    assert err < 2e-3, f"flag=True kernel/reference mismatch: {err}"

    print("KERNEL_OK")
</pallas_src>

<mosaic_0001>
module attributes {stable_mosaic.version = 11 : i64} {
  func.func @_fused_axial_kernel(%arg0: i32, %arg1: i32, %arg2: memref<20x5xf32, #tpu.memory_space<smem>>, %arg3: memref<2x4xf32, #tpu.memory_space<smem>>, %arg4: memref<4x16x128xf32, #tpu.memory_space<vmem>>, %arg5: memref<4x16x16x128xf32, #tpu.memory_space<vmem>>, %arg6: memref<4x16x16x128xf32, #tpu.memory_space<vmem>>, %arg7: memref<8x16x16x128xf32, #tpu.memory_space<vmem>>, %arg8: memref<4x16x128xf32, #tpu.memory_space<vmem>>) attributes {dimension_semantics = [#tpu.dimension_semantics<parallel>, #tpu.dimension_semantics<parallel>], iteration_bounds = array<i64: 1, 2>, scalar_prefetch = 0 : i64, scratch_operands = 0 : i64, tpu.core_type = #tpu.core_type<tc>, window_params = [{transform_indices = @transform_0, window_bounds = array<i64: 20, 5>}, {transform_indices = @transform_1, window_bounds = array<i64: 2, 4>}, {transform_indices = @transform_2, window_bounds = array<i64: 4, 16, 128>}, {pipeline_mode = #tpu.pipeline_mode<synchronous>, transform_indices = @transform_3, window_bounds = array<i64: 4, 16, 16, 128>}, {pipeline_mode = #tpu.pipeline_mode<synchronous>, transform_indices = @transform_4, window_bounds = array<i64: 4, 16, 16, 128>}, {pipeline_mode = #tpu.pipeline_mode<synchronous>, transform_indices = @transform_5, window_bounds = array<i64: 8, 16, 16, 128>}, {transform_indices = @transform_6, window_bounds = array<i64: 4, 16, 128>}]} {
    %c10_i32 = arith.constant 10 : i32
    %0 = arith.muli %arg1, %c10_i32 : i32
    %c0 = arith.constant 0 : index
    %c0_0 = arith.constant 0 : index
    %c0_1 = arith.constant 0 : index
    %1 = vector.load %arg4[%c0, %c0_0, %c0_1] : memref<4x16x128xf32, #tpu.memory_space<vmem>>, vector<1x16x128xf32>
    %2 = vector.shape_cast %1 : vector<1x16x128xf32> to vector<16x128xf32>
    %c1 = arith.constant 1 : index
    %c0_2 = arith.constant 0 : index
    %c0_3 = arith.constant 0 : index
    %3 = vector.load %arg4[%c1, %c0_2, %c0_3] : memref<4x16x128xf32, #tpu.memory_space<vmem>>, vector<1x16x128xf32>
    %4 = vector.shape_cast %3 : vector<1x16x128xf32> to vector<16x128xf32>
    %c2 = arith.constant 2 : index
    %c0_4 = arith.constant 0 : index
    %c0_5 = arith.constant 0 : index
    %5 = vector.load %arg4[%c2, %c0_4, %c0_5] : memref<4x16x128xf32, #tpu.memory_space<vmem>>, vector<1x16x128xf32>
    %6 = vector.shape_cast %5 : vector<1x16x128xf32> to vector<16x128xf32>
    %c3 = arith.constant 3 : index
    %c0_6 = arith.constant 0 : index
    %c0_7 = arith.constant 0 : index
    %7 = vector.load %arg4[%c3, %c0_6, %c0_7] : memref<4x16x128xf32, #tpu.memory_space<vmem>>, vector<1x16x128xf32>
    %8 = vector.shape_cast %7 : vector<1x16x128xf32> to vector<16x128xf32>
    %c0_i32 = arith.constant 0 : i32
    %9 = arith.addi %0, %c0_i32 : i32
    %10 = arith.index_cast %9 : i32 to index
    %c0_8 = arith.constant 0 : index
    %11 = memref.load %arg2[%10, %c0_8] : memref<20x5xf32, #tpu.memory_space<smem>>
    %12 = vector.broadcast %11 : f32 to vector<16x128xf32>
    %13 = arith.mulf %2, %12 : vector<16x128xf32>
    %c0_i32_9 = arith.constant 0 : i32
    %14 = arith.addi %0, %c0_i32_9 : i32
    %15 = arith.index_cast %14 : i32 to index
    %c1_10 = arith.constant 1 : index
    %16 = memref.load %arg2[%15, %c1_10] : memref<20x5xf32, #tpu.memory_space<smem>>
    %17 = vector.broadcast %16 : f32 to vector<16x128xf32>
    %18 = arith.mulf %4, %17 : vector<16x128xf32>
    %19 = arith.addf %13, %18 : vector<16x128xf32>
    %c0_i32_11 = arith.constant 0 : i32
    %20 = arith.addi %0, %c0_i32_11 : i32
    %21 = arith.index_cast %20 : i32 to index
    %c2_12 = arith.constant 2 : index
    %22 = memref.load %arg2[%21, %c2_12] : memref<20x5xf32, #tpu.memory_space<smem>>
    %23 = vector.broadcast %22 : f32 to vector<16x128xf32>
    %24 = arith.mulf %6, %23 : vector<16x128xf32>
    %25 = arith.addf %19, %24 : vector<16x128xf32>
    %c0_i32_13 = arith.constant 0 : i32
    %26 = arith.addi %0, %c0_i32_13 : i32
    %27 = arith.index_cast %26 : i32 to index
    %c3_14 = arith.constant 3 : index
    %28 = memref.load %arg2[%27, %c3_14] : memref<20x5xf32, #tpu.memory_space<smem>>
    %29 = vector.broadcast %28 : f32 to vector<16x128xf32>
    %30 = arith.mulf %8, %29 : vector<16x128xf32>
    %31 = arith.addf %25, %30 : vector<16x128xf32>
    %c0_i32_15 = arith.constant 0 : i32
    %32 = arith.addi %0, %c0_i32_15 : i32
    %33 = arith.index_cast %32 : i32 to index
    %c4 = arith.constant 4 : index
    %34 = memref.load %arg2[%33, %c4] : memref<20x5xf32, #tpu.memory_space<smem>>
    %35 = vector.broadcast %34 : f32 to vector<16x128xf32>
    %36 = arith.addf %31, %35 : vector<16x128xf32>
    %c1_i32 = arith.constant 1 : i32
    %37 = arith.addi %0, %c1_i32 : i32
    %38 = arith.index_cast %37 : i32 to index
    %c0_16 = arith.constant 0 : index
    %39 = memref.load %arg2[%38, %c0_16] : memref<20x5xf32, #tpu.memory_space<smem>>
    %40 = vector.broadcast %39 : f32 to vector<16x128xf32>
    %41 = arith.mulf %2, %40 : vector<16x128xf32>
    %c1_i32_17 = arith.constant 1 : i32
    %42 = arith.addi %0, %c1_i32_17 : i32
    %43 = arith.index_cast %42 : i32 to index
    %c1_18 = arith.constant 1 : index
    %44 = memref.load %arg2[%43, %c1_18] : memref<20x5xf32, #tpu.memory_space<smem>>
    %45 = vector.broadcast %44 : f32 to vector<16x128xf32>
    %46 = arith.mulf %4, %45 : vector<16x128xf32>
    %47 = arith.addf %41, %46 : vector<16x128xf32>
    %c1_i32_19 = arith.constant 1 : i32
    %48 = arith.addi %0, %c1_i32_19 : i32
    %49 = arith.index_cast %48 : i32 to index
    %c2_20 = arith.constant 2 : index
    %50 = memref.load %arg2[%49, %c2_20] : memref<20x5xf32, #tpu.memory_space<smem>>
    %51 = vector.broadcast %50 : f32 to vector<16x128xf32>
    %52 = arith.mulf %6, %51 : vector<16x128xf32>
    %53 = arith.addf %47, %52 : vector<16x128xf32>
    %c1_i32_21 = arith.constant 1 : i32
    %54 = arith.addi %0, %c1_i32_21 : i32
    %55 = arith.index_cast %54 : i32 to index
    %c3_22 = arith.constant 3 : index
    %56 = memref.load %arg2[%55, %c3_22] : memref<20x5xf32, #tpu.memory_space<smem>>
    %57 = vector.broadcast %56 : f32 to vector<16x128xf32>
    %58 = arith.mulf %8, %57 : vector<16x128xf32>
    %59 = arith.addf %53, %58 : vector<16x128xf32>
    %c1_i32_23 = arith.constant 1 : i32
    %60 = arith.addi %0, %c1_i32_23 : i32
    %61 = arith.index_cast %60 : i32 to index
    %c4_24 = arith.constant 4 : index
    %62 = memref.load %arg2[%61, %c4_24] : memref<20x5xf32, #tpu.memory_space<smem>>
    %63 = vector.broadcast %62 : f32 to vector<16x128xf32>
    %64 = arith.addf %59, %63 : vector<16x128xf32>
    %c2_i32 = arith.constant 2 : i32
    %65 = arith.addi %0, %c2_i32 : i32
    %66 = arith.index_cast %65 : i32 to index
    %c0_25 = arith.constant 0 : index
    %67 = memref.load %arg2[%66, %c0_25] : memref<20x5xf32, #tpu.memory_space<smem>>
    %68 = vector.broadcast %67 : f32 to vector<16x128xf32>
    %69 = arith.mulf %2, %68 : vector<16x128xf32>
    %c2_i32_26 = arith.constant 2 : i32
    %70 = arith.addi %0, %c2_i32_26 : i32
    %71 = arith.index_cast %70 : i32 to index
    %c1_27 = arith.constant 1 : index
    %72 = memref.load %arg2[%71, %c1_27] : memref<20x5xf32, #tpu.memory_space<smem>>
    %73 = vector.broadcast %72 : f32 to vector<16x128xf32>
    %74 = arith.mulf %4, %73 : vector<16x128xf32>
    %75 = arith.addf %69, %74 : vector<16x128xf32>
    %c2_i32_28 = arith.constant 2 : i32
    %76 = arith.addi %0, %c2_i32_28 : i32
    %77 = arith.index_cast %76 : i32 to index
    %c2_29 = arith.constant 2 : index
    %78 = memref.load %arg2[%77, %c2_29] : memref<20x5xf32, #tpu.memory_space<smem>>
    %79 = vector.broadcast %78 : f32 to vector<16x128xf32>
    %80 = arith.mulf %6, %79 : vector<16x128xf32>
    %81 = arith.addf %75, %80 : vector<16x128xf32>
    %c2_i32_30 = arith.constant 2 : i32
    %82 = arith.addi %0, %c2_i32_30 : i32
    %83 = arith.index_cast %82 : i32 to index
    %c3_31 = arith.constant 3 : index
    %84 = memref.load %arg2[%83, %c3_31] : memref<20x5xf32, #tpu.memory_space<smem>>
    %85 = vector.broadcast %84 : f32 to vector<16x128xf32>
    %86 = arith.mulf %8, %85 : vector<16x128xf32>
    %87 = arith.addf %81, %86 : vector<16x128xf32>
    %c2_i32_32 = arith.constant 2 : i32
    %88 = arith.addi %0, %c2_i32_32 : i32
    %89 = arith.index_cast %88 : i32 to index
    %c4_33 = arith.constant 4 : index
    %90 = memref.load %arg2[%89, %c4_33] : memref<20x5xf32, #tpu.memory_space<smem>>
    %91 = vector.broadcast %90 : f32 to vector<16x128xf32>
    %92 = arith.addf %87, %91 : vector<16x128xf32>
    %c3_i32 = arith.constant 3 : i32
    %93 = arith.addi %0, %c3_i32 : i32
    %94 = arith.index_cast %93 : i32 to index
    %c0_34 = arith.constant 0 : index
    %95 = memref.load %arg2[%94, %c0_34] : memref<20x5xf32, #tpu.memory_space<smem>>
    %96 = vector.broadcast %95 : f32 to vector<16x128xf32>
    %97 = arith.mulf %2, %96 : vector<16x128xf32>
    %c3_i32_35 = arith.constant 3 : i32
    %98 = arith.addi %0, %c3_i32_35 : i32
    %99 = arith.index_cast %98 : i32 to index
    %c1_36 = arith.constant 1 : index
    %100 = memref.load %arg2[%99, %c1_36] : memref<20x5xf32, #tpu.memory_space<smem>>
    %101 = vector.broadcast %100 : f32 to vector<16x128xf32>
    %102 = arith.mulf %4, %101 : vector<16x128xf32>
    %103 = arith.addf %97, %102 : vector<16x128xf32>
    %c3_i32_37 = arith.constant 3 : i32
    %104 = arith.addi %0, %c3_i32_37 : i32
    %105 = arith.index_cast %104 : i32 to index
    %c2_38 = arith.constant 2 : index
    %106 = memref.load %arg2[%105, %c2_38] : memref<20x5xf32, #tpu.memory_space<smem>>
    %107 = vector.broadcast %106 : f32 to vector<16x128xf32>
    %108 = arith.mulf %6, %107 : vector<16x128xf32>
    %109 = arith.addf %103, %108 : vector<16x128xf32>
    %c3_i32_39 = arith.constant 3 : i32
    %110 = arith.addi %0, %c3_i32_39 : i32
    %111 = arith.index_cast %110 : i32 to index
    %c3_40 = arith.constant 3 : index
    %112 = memref.load %arg2[%111, %c3_40] : memref<20x5xf32, #tpu.memory_space<smem>>
    %113 = vector.broadcast %112 : f32 to vector<16x128xf32>
    %114 = arith.mulf %8, %113 : vector<16x128xf32>
    %115 = arith.addf %109, %114 : vector<16x128xf32>
    %c3_i32_41 = arith.constant 3 : i32
    %116 = arith.addi %0, %c3_i32_41 : i32
    %117 = arith.index_cast %116 : i32 to index
    %c4_42 = arith.constant 4 : index
    %118 = memref.load %arg2[%117, %c4_42] : memref<20x5xf32, #tpu.memory_space<smem>>
    %119 = vector.broadcast %118 : f32 to vector<16x128xf32>
    %120 = arith.addf %115, %119 : vector<16x128xf32>
    %c4_i32 = arith.constant 4 : i32
    %121 = arith.addi %0, %c4_i32 : i32
    %122 = arith.index_cast %121 : i32 to index
    %c0_43 = arith.constant 0 : index
    %123 = memref.load %arg2[%122, %c0_43] : memref<20x5xf32, #tpu.memory_space<smem>>
    %124 = vector.broadcast %123 : f32 to vector<16x128xf32>
    %125 = arith.mulf %2, %124 : vector<16x128xf32>
    %c4_i32_44 = arith.constant 4 : i32
    %126 = arith.addi %0, %c4_i32_44 : i32
    %127 = arith.index_cast %126 : i32 to index
    %c1_45 = arith.constant 1 : index
    %128 = memref.load %arg2[%127, %c1_45] : memref<20x5xf32, #tpu.memory_space<smem>>
    %129 = vector.broadcast %128 : f32 to vector<16x128xf32>
    %130 = arith.mulf %4, %129 : vector<16x128xf32>
    %131 = arith.addf %125, %130 : vector<16x128xf32>
    %c4_i32_46 = arith.constant 4 : i32
    %132 = arith.addi %0, %c4_i32_46 : i32
    %133 = arith.index_cast %132 : i32 to index
    %c2_47 = arith.constant 2 : index
    %134 = memref.load %arg2[%133, %c2_47] : memref<20x5xf32, #tpu.memory_space<smem>>
    %135 = vector.broadcast %134 : f32 to vector<16x128xf32>
    %136 = arith.mulf %6, %135 : vector<16x128xf32>
    %137 = arith.addf %131, %136 : vector<16x128xf32>
    %c4_i32_48 = arith.constant 4 : i32
    %138 = arith.addi %0, %c4_i32_48 : i32
    %139 = arith.index_cast %138 : i32 to index
    %c3_49 = arith.constant 3 : index
    %140 = memref.load %arg2[%139, %c3_49] : memref<20x5xf32, #tpu.memory_space<smem>>
    %141 = vector.broadcast %140 : f32 to vector<16x128xf32>
    %142 = arith.mulf %8, %141 : vector<16x128xf32>
    %143 = arith.addf %137, %142 : vector<16x128xf32>
    %c4_i32_50 = arith.constant 4 : i32
    %144 = arith.addi %0, %c4_i32_50 : i32
    %145 = arith.index_cast %144 : i32 to index
    %c4_51 = arith.constant 4 : index
    %146 = memref.load %arg2[%145, %c4_51] : memref<20x5xf32, #tpu.memory_space<smem>>
    %147 = vector.broadcast %146 : f32 to vector<16x128xf32>
    %148 = arith.addf %143, %147 : vector<16x128xf32>
    %c5_i32 = arith.constant 5 : i32
    %149 = arith.addi %0, %c5_i32 : i32
    %150 = arith.index_cast %149 : i32 to index
    %c0_52 = arith.constant 0 : index
    %151 = memref.load %arg2[%150, %c0_52] : memref<20x5xf32, #tpu.memory_space<smem>>
    %152 = vector.broadcast %151 : f32 to vector<16x128xf32>
    %153 = arith.mulf %2, %152 : vector<16x128xf32>
    %c5_i32_53 = arith.constant 5 : i32
    %154 = arith.addi %0, %c5_i32_53 : i32
    %155 = arith.index_cast %154 : i32 to index
    %c1_54 = arith.constant 1 : index
    %156 = memref.load %arg2[%155, %c1_54] : memref<20x5xf32, #tpu.memory_space<smem>>
    %157 = vector.broadcast %156 : f32 to vector<16x128xf32>
    %158 = arith.mulf %4, %157 : vector<16x128xf32>
    %159 = arith.addf %153, %158 : vector<16x128xf32>
    %c5_i32_55 = arith.constant 5 : i32
    %160 = arith.addi %0, %c5_i32_55 : i32
    %161 = arith.index_cast %160 : i32 to index
    %c2_56 = arith.constant 2 : index
    %162 = memref.load %arg2[%161, %c2_56] : memref<20x5xf32, #tpu.memory_space<smem>>
    %163 = vector.broadcast %162 : f32 to vector<16x128xf32>
    %164 = arith.mulf %6, %163 : vector<16x128xf32>
    %165 = arith.addf %159, %164 : vector<16x128xf32>
    %c5_i32_57 = arith.constant 5 : i32
    %166 = arith.addi %0, %c5_i32_57 : i32
    %167 = arith.index_cast %166 : i32 to index
    %c3_58 = arith.constant 3 : index
    %168 = memref.load %arg2[%167, %c3_58] : memref<20x5xf32, #tpu.memory_space<smem>>
    %169 = vector.broadcast %168 : f32 to vector<16x128xf32>
    %170 = arith.mulf %8, %169 : vector<16x128xf32>
    %171 = arith.addf %165, %170 : vector<16x128xf32>
    %c5_i32_59 = arith.constant 5 : i32
    %172 = arith.addi %0, %c5_i32_59 : i32
    %173 = arith.index_cast %172 : i32 to index
    %c4_60 = arith.constant 4 : index
    %174 = memref.load %arg2[%173, %c4_60] : memref<20x5xf32, #tpu.memory_space<smem>>
    %175 = vector.broadcast %174 : f32 to vector<16x128xf32>
    %176 = arith.addf %171, %175 : vector<16x128xf32>
    %c6_i32 = arith.constant 6 : i32
    %177 = arith.addi %0, %c6_i32 : i32
    %178 = arith.index_cast %177 : i32 to index
    %c0_61 = arith.constant 0 : index
    %179 = memref.load %arg2[%178, %c0_61] : memref<20x5xf32, #tpu.memory_space<smem>>
    %180 = vector.broadcast %179 : f32 to vector<16x128xf32>
    %181 = arith.mulf %2, %180 : vector<16x128xf32>
    %c6_i32_62 = arith.constant 6 : i32
    %182 = arith.addi %0, %c6_i32_62 : i32
    %183 = arith.index_cast %182 : i32 to index
    %c1_63 = arith.constant 1 : index
    %184 = memref.load %arg2[%183, %c1_63] : memref<20x5xf32, #tpu.memory_space<smem>>
    %185 = vector.broadcast %184 : f32 to vector<16x128xf32>
    %186 = arith.mulf %4, %185 : vector<16x128xf32>
    %187 = arith.addf %181, %186 : vector<16x128xf32>
    %c6_i32_64 = arith.constant 6 : i32
    %188 = arith.addi %0, %c6_i32_64 : i32
    %189 = arith.index_cast %188 : i32 to index
    %c2_65 = arith.constant 2 : index
    %190 = memref.load %arg2[%189, %c2_65] : memref<20x5xf32, #tpu.memory_space<smem>>
    %191 = vector.broadcast %190 : f32 to vector<16x128xf32>
    %192 = arith.mulf %6, %191 : vector<16x128xf32>
    %193 = arith.addf %187, %192 : vector<16x128xf32>
    %c6_i32_66 = arith.constant 6 : i32
    %194 = arith.addi %0, %c6_i32_66 : i32
    %195 = arith.index_cast %194 : i32 to index
    %c3_67 = arith.constant 3 : index
    %196 = memref.load %arg2[%195, %c3_67] : memref<20x5xf32, #tpu.memory_space<smem>>
    %197 = vector.broadcast %196 : f32 to vector<16x128xf32>
    %198 = arith.mulf %8, %197 : vector<16x128xf32>
    %199 = arith.addf %193, %198 : vector<16x128xf32>
    %c6_i32_68 = arith.constant 6 : i32
    %200 = arith.addi %0, %c6_i32_68 : i32
    %201 = arith.index_cast %200 : i32 to index
    %c4_69 = arith.constant 4 : index
    %202 = memref.load %arg2[%201, %c4_69] : memref<20x5xf32, #tpu.memory_space<smem>>
    %203 = vector.broadcast %202 : f32 to vector<16x128xf32>
    %204 = arith.addf %199, %203 : vector<16x128xf32>
    %c7_i32 = arith.constant 7 : i32
    %205 = arith.addi %0, %c7_i32 : i32
    %206 = arith.index_cast %205 : i32 to index
    %c0_70 = arith.constant 0 : index
    %207 = memref.load %arg2[%206, %c0_70] : memref<20x5xf32, #tpu.memory_space<smem>>
    %208 = vector.broadcast %207 : f32 to vector<16x128xf32>
    %209 = arith.mulf %2, %208 : vector<16x128xf32>
    %c7_i32_71 = arith.constant 7 : i32
    %210 = arith.addi %0, %c7_i32_71 : i32
    %211 = arith.index_cast %210 : i32 to index
    %c1_72 = arith.constant 1 : index
    %212 = memref.load %arg2[%211, %c1_72] : memref<20x5xf32, #tpu.memory_space<smem>>
    %213 = vector.broadcast %212 : f32 to vector<16x128xf32>
    %214 = arith.mulf %4, %213 : vector<16x128xf32>
    %215 = arith.addf %209, %214 : vector<16x128xf32>
    %c7_i32_73 = arith.constant 7 : i32
    %216 = arith.addi %0, %c7_i32_73 : i32
    %217 = arith.index_cast %216 : i32 to index
    %c2_74 = arith.constant 2 : index
    %218 = memref.load %arg2[%217, %c2_74] : memref<20x5xf32, #tpu.memory_space<smem>>
    %219 = vector.broadcast %218 : f32 to vector<16x128xf32>
    %220 = arith.mulf %6, %219 : vector<16x128xf32>
    %221 = arith.addf %215, %220 : vector<16x128xf32>
    %c7_i32_75 = arith.constant 7 : i32
    %222 = arith.addi %0, %c7_i32_75 : i32
    %223 = arith.index_cast %222 : i32 to index
    %c3_76 = arith.constant 3 : index
    %224 = memref.load %arg2[%223, %c3_76] : memref<20x5xf32, #tpu.memory_space<smem>>
    %225 = vector.broadcast %224 : f32 to vector<16x128xf32>
    %226 = arith.mulf %8, %225 : vector<16x128xf32>
    %227 = arith.addf %221, %226 : vector<16x128xf32>
    %c7_i32_77 = arith.constant 7 : i32
    %228 = arith.addi %0, %c7_i32_77 : i32
    %229 = arith.index_cast %228 : i32 to index
    %c4_78 = arith.constant 4 : index
    %230 = memref.load %arg2[%229, %c4_78] : memref<20x5xf32, #tpu.memory_space<smem>>
    %231 = vector.broadcast %230 : f32 to vector<16x128xf32>
    %232 = arith.addf %227, %231 : vector<16x128xf32>
    %c8_i32 = arith.constant 8 : i32
    %233 = arith.addi %0, %c8_i32 : i32
    %234 = arith.index_cast %233 : i32 to index
    %c0_79 = arith.constant 0 : index
    %235 = memref.load %arg2[%234, %c0_79] : memref<20x5xf32, #tpu.memory_space<smem>>
    %236 = vector.broadcast %235 : f32 to vector<16x128xf32>
    %237 = arith.mulf %2, %236 : vector<16x128xf32>
    %c8_i32_80 = arith.constant 8 : i32
    %238 = arith.addi %0, %c8_i32_80 : i32
    %239 = arith.index_cast %238 : i32 to index
    %c1_81 = arith.constant 1 : index
    %240 = memref.load %arg2[%239, %c1_81] : memref<20x5xf32, #tpu.memory_space<smem>>
    %241 = vector.broadcast %240 : f32 to vector<16x128xf32>
    %242 = arith.mulf %4, %241 : vector<16x128xf32>
    %243 = arith.addf %237, %242 : vector<16x128xf32>
    %c8_i32_82 = arith.constant 8 : i32
    %244 = arith.addi %0, %c8_i32_82 : i32
    %245 = arith.index_cast %244 : i32 to index
    %c2_83 = arith.constant 2 : index
    %246 = memref.load %arg2[%245, %c2_83] : memref<20x5xf32, #tpu.memory_space<smem>>
    %247 = vector.broadcast %246 : f32 to vector<16x128xf32>
    %248 = arith.mulf %6, %247 : vector<16x128xf32>
    %249 = arith.addf %243, %248 : vector<16x128xf32>
    %c8_i32_84 = arith.constant 8 : i32
    %250 = arith.addi %0, %c8_i32_84 : i32
    %251 = arith.index_cast %250 : i32 to index
    %c3_85 = arith.constant 3 : index
    %252 = memref.load %arg2[%251, %c3_85] : memref<20x5xf32, #tpu.memory_space<smem>>
    %253 = vector.broadcast %252 : f32 to vector<16x128xf32>
    %254 = arith.mulf %8, %253 : vector<16x128xf32>
    %255 = arith.addf %249, %254 : vector<16x128xf32>
    %c8_i32_86 = arith.constant 8 : i32
    %256 = arith.addi %0, %c8_i32_86 : i32
    %257 = arith.index_cast %256 : i32 to index
    %c4_87 = arith.constant 4 : index
    %258 = memref.load %arg2[%257, %c4_87] : memref<20x5xf32, #tpu.memory_space<smem>>
    %259 = vector.broadcast %258 : f32 to vector<16x128xf32>
    %260 = arith.addf %255, %259 : vector<16x128xf32>
    %c9_i32 = arith.constant 9 : i32
    %261 = arith.addi %0, %c9_i32 : i32
    %262 = arith.index_cast %261 : i32 to index
    %c0_88 = arith.constant 0 : index
    %263 = memref.load %arg2[%262, %c0_88] : memref<20x5xf32, #tpu.memory_space<smem>>
    %264 = vector.broadcast %263 : f32 to vector<16x128xf32>
    %265 = arith.mulf %2, %264 : vector<16x128xf32>
    %c9_i32_89 = arith.constant 9 : i32
    %266 = arith.addi %0, %c9_i32_89 : i32
    %267 = arith.index_cast %266 : i32 to index
    %c1_90 = arith.constant 1 : index
    %268 = memref.load %arg2[%267, %c1_90] : memref<20x5xf32, #tpu.memory_space<smem>>
    %269 = vector.broadcast %268 : f32 to vector<16x128xf32>
    %270 = arith.mulf %4, %269 : vector<16x128xf32>
    %271 = arith.addf %265, %270 : vector<16x128xf32>
    %c9_i32_91 = arith.constant 9 : i32
    %272 = arith.addi %0, %c9_i32_91 : i32
    %273 = arith.index_cast %272 : i32 to index
    %c2_92 = arith.constant 2 : index
    %274 = memref.load %arg2[%273, %c2_92] : memref<20x5xf32, #tpu.memory_space<smem>>
    %275 = vector.broadcast %274 : f32 to vector<16x128xf32>
    %276 = arith.mulf %6, %275 : vector<16x128xf32>
    %277 = arith.addf %271, %276 : vector<16x128xf32>
    %c9_i32_93 = arith.constant 9 : i32
    %278 = arith.addi %0, %c9_i32_93 : i32
    %279 = arith.index_cast %278 : i32 to index
    %c3_94 = arith.constant 3 : index
    %280 = memref.load %arg2[%279, %c3_94] : memref<20x5xf32, #tpu.memory_space<smem>>
    %281 = vector.broadcast %280 : f32 to vector<16x128xf32>
    %282 = arith.mulf %8, %281 : vector<16x128xf32>
    %283 = arith.addf %277, %282 : vector<16x128xf32>
    %c9_i32_95 = arith.constant 9 : i32
    %284 = arith.addi %0, %c9_i32_95 : i32
    %285 = arith.index_cast %284 : i32 to index
    %c4_96 = arith.constant 4 : index
    %286 = memref.load %arg2[%285, %c4_96] : memref<20x5xf32, #tpu.memory_space<smem>>
    %287 = vector.broadcast %286 : f32 to vector<16x128xf32>
    %288 = arith.addf %283, %287 : vector<16x128xf32>
    %c2_i32_97 = arith.constant 2 : i32
    %289 = arith.muli %arg1, %c2_i32_97 : i32
    %c0_i32_98 = arith.constant 0 : i32
    %290 = arith.addi %289, %c0_i32_98 : i32
    %291 = vector.extract_strided_slice %36 {offsets = [0, 0], sizes = [8, 128], strides = [1, 1]} : vector<16x128xf32> to vector<8x128xf32>
    %292 = vector.shape_cast %291 : vector<8x128xf32> to vector<1x8x128xf32>
    %293 = vector.shape_cast %92 : vector<16x128xf32> to vector<16x1x128xf32>
    %294 = vector.shape_cast %148 : vector<16x128xf32> to vector<16x1x128xf32>
    %295 = arith.index_cast %290 : i32 to index
    %c0_99 = arith.constant 0 : index
    %c0_100 = arith.constant 0 : index
    %c0_101 = arith.constant 0 : index
    %296 = vector.load %arg5[%295, %c0_99, %c0_100, %c0_101] : memref<4x16x16x128xf32, #tpu.memory_space<vmem>>, vector<1x16x8x128xf32>
    %297 = vector.shape_cast %296 : vector<1x16x8x128xf32> to vector<16x8x128xf32>
    %298 = arith.index_cast %290 : i32 to index
    %c0_102 = arith.constant 0 : index
    %c0_103 = arith.constant 0 : index
    %c0_104 = arith.constant 0 : index
    %299 = vector.load %arg6[%298, %c0_102, %c0_103, %c0_104] : memref<4x16x16x128xf32, #tpu.memory_space<vmem>>, vector<1x16x8x128xf32>
    %300 = vector.shape_cast %299 : vector<1x16x8x128xf32> to vector<16x8x128xf32>
    %301 = vector.broadcast %293 : vector<16x1x128xf32> to vector<16x8x128xf32>
    %302 = arith.addf %301, %297 : vector<16x8x128xf32>
    %303 = vector.broadcast %292 : vector<1x8x128xf32> to vector<16x8x128xf32>
    %304 = arith.mulf %303, %302 : vector<16x8x128xf32>
    %305 = vector.broadcast %294 : vector<16x1x128xf32> to vector<16x8x128xf32>
    %306 = arith.mulf %305, %300 : vector<16x8x128xf32>
    %307 = arith.addf %304, %306 : vector<16x8x128xf32>
    %c2_i32_105 = arith.constant 2 : i32
    %308 = arith.muli %arg1, %c2_i32_105 : i32
    %c1_i32_106 = arith.constant 1 : i32
    %309 = arith.addi %308, %c1_i32_106 : i32
    %310 = vector.extract_strided_slice %64 {offsets = [0, 0], sizes = [8, 128], strides = [1, 1]} : vector<16x128xf32> to vector<8x128xf32>
    %311 = vector.shape_cast %310 : vector<8x128xf32> to vector<1x8x128xf32>
    %312 = vector.shape_cast %120 : vector<16x128xf32> to vector<16x1x128xf32>
    %313 = vector.shape_cast %176 : vector<16x128xf32> to vector<16x1x128xf32>
    %314 = arith.index_cast %309 : i32 to index
    %c0_107 = arith.constant 0 : index
    %c0_108 = arith.constant 0 : index
    %c0_109 = arith.constant 0 : index
    %315 = vector.load %arg5[%314, %c0_107, %c0_108, %c0_109] : memref<4x16x16x128xf32, #tpu.memory_space<vmem>>, vector<1x16x8x128xf32>
    %316 = vector.shape_cast %315 : vector<1x16x8x128xf32> to vector<16x8x128xf32>
    %317 = arith.index_cast %309 : i32 to index
    %c0_110 = arith.constant 0 : index
    %c0_111 = arith.constant 0 : index
    %c0_112 = arith.constant 0 : index
    %318 = vector.load %arg6[%317, %c0_110, %c0_111, %c0_112] : memref<4x16x16x128xf32, #tpu.memory_space<vmem>>, vector<1x16x8x128xf32>
    %319 = vector.shape_cast %318 : vector<1x16x8x128xf32> to vector<16x8x128xf32>
    %320 = vector.broadcast %312 : vector<16x1x128xf32> to vector<16x8x128xf32>
    %321 = arith.addf %320, %316 : vector<16x8x128xf32>
    %322 = vector.broadcast %311 : vector<1x8x128xf32> to vector<16x8x128xf32>
    %323 = arith.mulf %322, %321 : vector<16x8x128xf32>
    %324 = vector.broadcast %313 : vector<16x1x128xf32> to vector<16x8x128xf32>
    %325 = arith.mulf %324, %319 : vector<16x8x128xf32>
    %326 = arith.addf %323, %325 : vector<16x8x128xf32>
    %327 = arith.addf %307, %326 : vector<16x8x128xf32>
    %cst = arith.constant dense<0xFF800000> : vector<8x128xf32>
    %328 = vector.multi_reduction <maximumf>, %327, %cst [0] : vector<16x8x128xf32> to vector<8x128xf32>
    %329 = vector.shape_cast %328 : vector<8x128xf32> to vector<1x8x128xf32>
    %330 = vector.broadcast %329 : vector<1x8x128xf32> to vector<16x8x128xf32>
    %331 = arith.subf %327, %330 : vector<16x8x128xf32>
    %332 = math.exp %331 : vector<16x8x128xf32>
    %cst_113 = arith.constant dense<0.000000e+00> : vector<8x128xf32>
    %333 = vector.multi_reduction <add>, %332, %cst_113 [0] : vector<16x8x128xf32> to vector<8x128xf32>
    %334 = vector.shape_cast %333 : vector<8x128xf32> to vector<1x8x128xf32>
    %335 = tpu.reciprocal %334 {approx = true} : vector<1x8x128xf32> -> vector<1x8x128xf32>
    %336 = arith.mulf %334, %335 : vector<1x8x128xf32>
    %cst_114 = arith.constant 2.000000e+00 : f32
    %337 = vector.broadcast %cst_114 : f32 to vector<1x8x128xf32>
    %338 = arith.subf %337, %336 : vector<1x8x128xf32>
    %339 = arith.mulf %335, %338 : vector<1x8x128xf32>
    %340 = vector.broadcast %339 : vector<1x8x128xf32> to vector<16x8x128xf32>
    %341 = arith.mulf %332, %340 : vector<16x8x128xf32>
    %342 = vector.shape_cast %204 : vector<16x128xf32> to vector<16x1x128xf32>
    %c4_i32_115 = arith.constant 4 : i32
    %343 = arith.muli %arg1, %c4_i32_115 : i32
    %c0_i32_116 = arith.constant 0 : i32
    %344 = arith.addi %343, %c0_i32_116 : i32
    %345 = arith.index_cast %344 : i32 to index
    %c0_117 = arith.constant 0 : index
    %c0_118 = arith.constant 0 : index
    %c0_119 = arith.constant 0 : index
    %346 = vector.load %arg7[%345, %c0_117, %c0_118, %c0_119] : memref<8x16x16x128xf32, #tpu.memory_space<vmem>>, vector<1x16x8x128xf32>
    %347 = vector.shape_cast %346 : vector<1x16x8x128xf32> to vector<16x8x128xf32>
    %348 = vector.broadcast %342 : vector<16x1x128xf32> to vector<16x8x128xf32>
    %349 = arith.addf %348, %347 : vector<16x8x128xf32>
    %350 = arith.mulf %341, %349 : vector<16x8x128xf32>
    %cst_120 = arith.constant dense<0.000000e+00> : vector<8x128xf32>
    %351 = vector.multi_reduction <add>, %350, %cst_120 [0] : vector<16x8x128xf32> to vector<8x128xf32>
    %352 = arith.index_cast %arg1 : i32 to index
    %c0_121 = arith.constant 0 : index
    %353 = memref.load %arg3[%352, %c0_121] : memref<2x4xf32, #tpu.memory_space<smem>>
    %354 = vector.broadcast %353 : f32 to vector<8x128xf32>
    %355 = arith.addf %351, %354 : vector<8x128xf32>
    %c0_122 = arith.constant 0 : index
    %c0_123 = arith.constant 0 : index
    %c0_124 = arith.constant 0 : index
    %356 = vector.load %arg8[%c0_122, %c0_123, %c0_124] : memref<4x16x128xf32, #tpu.memory_space<vmem>>, vector<1x8x128xf32>
    %357 = vector.shape_cast %356 : vector<1x8x128xf32> to vector<8x128xf32>
    %358 = vector.shape_cast %355 : vector<8x128xf32> to vector<1x8x128xf32>
    tpu.vector_store %arg8[%c0_122, %c0_123, %c0_124], %358 {strides = array<i32>} : memref<4x16x128xf32, #tpu.memory_space<vmem>>, vector<1x8x128xf32>,
    %359 = vector.shape_cast %232 : vector<16x128xf32> to vector<16x1x128xf32>
    %c4_i32_125 = arith.constant 4 : i32
    %360 = arith.muli %arg1, %c4_i32_125 : i32
    %c1_i32_126 = arith.constant 1 : i32
    %361 = arith.addi %360, %c1_i32_126 : i32
    %362 = arith.index_cast %361 : i32 to index
    %c0_127 = arith.constant 0 : index
    %c0_128 = arith.constant 0 : index
    %c0_129 = arith.constant 0 : index
    %363 = vector.load %arg7[%362, %c0_127, %c0_128, %c0_129] : memref<8x16x16x128xf32, #tpu.memory_space<vmem>>, vector<1x16x8x128xf32>
    %364 = vector.shape_cast %363 : vector<1x16x8x128xf32> to vector<16x8x128xf32>
    %365 = vector.broadcast %359 : vector<16x1x128xf32> to vector<16x8x128xf32>
    %366 = arith.addf %365, %364 : vector<16x8x128xf32>
    %367 = arith.mulf %341, %366 : vector<16x8x128xf32>
    %cst_130 = arith.constant dense<0.000000e+00> : vector<8x128xf32>
    %368 = vector.multi_reduction <add>, %367, %cst_130 [0] : vector<16x8x128xf32> to vector<8x128xf32>
    %369 = arith.index_cast %arg1 : i32 to index
    %c1_131 = arith.constant 1 : index
    %370 = memref.load %arg3[%369, %c1_131] : memref<2x4xf32, #tpu.memory_space<smem>>
    %371 = vector.broadcast %370 : f32 to vector<8x128xf32>
    %372 = arith.addf %368, %371 : vector<8x128xf32>
    %c1_132 = arith.constant 1 : index
    %c0_133 = arith.constant 0 : index
    %c0_134 = arith.constant 0 : index
    %373 = vector.load %arg8[%c1_132, %c0_133, %c0_134] : memref<4x16x128xf32, #tpu.memory_space<vmem>>, vector<1x8x128xf32>
    %374 = vector.shape_cast %373 : vector<1x8x128xf32> to vector<8x128xf32>
    %375 = vector.shape_cast %372 : vector<8x128xf32> to vector<1x8x128xf32>
    tpu.vector_store %arg8[%c1_132, %c0_133, %c0_134], %375 {strides = array<i32>} : memref<4x16x128xf32, #tpu.memory_space<vmem>>, vector<1x8x128xf32>,
    %376 = vector.shape_cast %260 : vector<16x128xf32> to vector<16x1x128xf32>
    %c4_i32_135 = arith.constant 4 : i32
    %377 = arith.muli %arg1, %c4_i32_135 : i32
    %c2_i32_136 = arith.constant 2 : i32
    %378 = arith.addi %377, %c2_i32_136 : i32
    %379 = arith.index_cast %378 : i32 to index
    %c0_137 = arith.constant 0 : index
    %c0_138 = arith.constant 0 : index
    %c0_139 = arith.constant 0 : index
    %380 = vector.load %arg7[%379, %c0_137, %c0_138, %c0_139] : memref<8x16x16x128xf32, #tpu.memory_space<vmem>>, vector<1x16x8x128xf32>
    %381 = vector.shape_cast %380 : vector<1x16x8x128xf32> to vector<16x8x128xf32>
    %382 = vector.broadcast %376 : vector<16x1x128xf32> to vector<16x8x128xf32>
    %383 = arith.addf %382, %381 : vector<16x8x128xf32>
    %384 = arith.mulf %341, %383 : vector<16x8x128xf32>
    %cst_140 = arith.constant dense<0.000000e+00> : vector<8x128xf32>
    %385 = vector.multi_reduction <add>, %384, %cst_140 [0] : vector<16x8x128xf32> to vector<8x128xf32>
    %386 = arith.index_cast %arg1 : i32 to index
    %c2_141 = arith.constant 2 : index
    %387 = memref.load %arg3[%386, %c2_141] : memref<2x4xf32, #tpu.memory_space<smem>>
    %388 = vector.broadcast %387 : f32 to vector<8x128xf32>
    %389 = arith.addf %385, %388 : vector<8x128xf32>
    %c2_142 = arith.constant 2 : index
    %c0_143 = arith.constant 0 : index
    %c0_144 = arith.constant 0 : index
    %390 = vector.load %arg8[%c2_142, %c0_143, %c0_144] : memref<4x16x128xf32, #tpu.memory_space<vmem>>, vector<1x8x128xf32>
    %391 = vector.shape_cast %390 : vector<1x8x128xf32> to vector<8x128xf32>
    %392 = vector.shape_cast %389 : vector<8x128xf32> to vector<1x8x128xf32>
    tpu.vector_store %arg8[%c2_142, %c0_143, %c0_144], %392 {strides = array<i32>} : memref<4x16x128xf32, #tpu.memory_space<vmem>>, vector<1x8x128xf32>,
    %393 = vector.shape_cast %288 : vector<16x128xf32> to vector<16x1x128xf32>
    %c4_i32_145 = arith.constant 4 : i32
    %394 = arith.muli %arg1, %c4_i32_145 : i32
    %c3_i32_146 = arith.constant 3 : i32
    %395 = arith.addi %394, %c3_i32_146 : i32
    %396 = arith.index_cast %395 : i32 to index
    %c0_147 = arith.constant 0 : index
    %c0_148 = arith.constant 0 : index
    %c0_149 = arith.constant 0 : index
    %397 = vector.load %arg7[%396, %c0_147, %c0_148, %c0_149] : memref<8x16x16x128xf32, #tpu.memory_space<vmem>>, vector<1x16x8x128xf32>
    %398 = vector.shape_cast %397 : vector<1x16x8x128xf32> to vector<16x8x128xf32>
    %399 = vector.broadcast %393 : vector<16x1x128xf32> to vector<16x8x128xf32>
    %400 = arith.addf %399, %398 : vector<16x8x128xf32>
    %401 = arith.mulf %341, %400 : vector<16x8x128xf32>
    %cst_150 = arith.constant dense<0.000000e+00> : vector<8x128xf32>
    %402 = vector.multi_reduction <add>, %401, %cst_150 [0] : vector<16x8x128xf32> to vector<8x128xf32>
    %403 = arith.index_cast %arg1 : i32 to index
    %c3_151 = arith.constant 3 : index
    %404 = memref.load %arg3[%403, %c3_151] : memref<2x4xf32, #tpu.memory_space<smem>>
    %405 = vector.broadcast %404 : f32 to vector<8x128xf32>
    %406 = arith.addf %402, %405 : vector<8x128xf32>
    %c3_152 = arith.constant 3 : index
    %c0_153 = arith.constant 0 : index
    %c0_154 = arith.constant 0 : index
    %407 = vector.load %arg8[%c3_152, %c0_153, %c0_154] : memref<4x16x128xf32, #tpu.memory_space<vmem>>, vector<1x8x128xf32>
    %408 = vector.shape_cast %407 : vector<1x8x128xf32> to vector<8x128xf32>
    %409 = vector.shape_cast %406 : vector<8x128xf32> to vector<1x8x128xf32>
    tpu.vector_store %arg8[%c3_152, %c0_153, %c0_154], %409 {strides = array<i32>} : memref<4x16x128xf32, #tpu.memory_space<vmem>>, vector<1x8x128xf32>,
    %c2_i32_155 = arith.constant 2 : i32
    %410 = arith.muli %arg1, %c2_i32_155 : i32
    %c0_i32_156 = arith.constant 0 : i32
    %411 = arith.addi %410, %c0_i32_156 : i32
    %412 = vector.extract_strided_slice %36 {offsets = [8, 0], sizes = [8, 128], strides = [1, 1]} : vector<16x128xf32> to vector<8x128xf32>
    %413 = vector.shape_cast %412 : vector<8x128xf32> to vector<1x8x128xf32>
    %414 = vector.shape_cast %92 : vector<16x128xf32> to vector<16x1x128xf32>
    %415 = vector.shape_cast %148 : vector<16x128xf32> to vector<16x1x128xf32>
    %416 = arith.index_cast %411 : i32 to index
    %c0_157 = arith.constant 0 : index
    %c8 = arith.constant 8 : index
    %c0_158 = arith.constant 0 : index
    %417 = vector.load %arg5[%416, %c0_157, %c8, %c0_158] : memref<4x16x16x128xf32, #tpu.memory_space<vmem>>, vector<1x16x8x128xf32>
    %418 = vector.shape_cast %417 : vector<1x16x8x128xf32> to vector<16x8x128xf32>
    %419 = arith.index_cast %411 : i32 to index
    %c0_159 = arith.constant 0 : index
    %c8_160 = arith.constant 8 : index
    %c0_161 = arith.constant 0 : index
    %420 = vector.load %arg6[%419, %c0_159, %c8_160, %c0_161] : memref<4x16x16x128xf32, #tpu.memory_space<vmem>>, vector<1x16x8x128xf32>
    %421 = vector.shape_cast %420 : vector<1x16x8x128xf32> to vector<16x8x128xf32>
    %422 = vector.broadcast %414 : vector<16x1x128xf32> to vector<16x8x128xf32>
    %423 = arith.addf %422, %418 : vector<16x8x128xf32>
    %424 = vector.broadcast %413 : vector<1x8x128xf32> to vector<16x8x128xf32>
    %425 = arith.mulf %424, %423 : vector<16x8x128xf32>
    %426 = vector.broadcast %415 : vector<16x1x128xf32> to vector<16x8x128xf32>
    %427 = arith.mulf %426, %421 : vector<16x8x128xf32>
    %428 = arith.addf %425, %427 : vector<16x8x128xf32>
    %c2_i32_162 = arith.constant 2 : i32
    %429 = arith.muli %arg1, %c2_i32_162 : i32
    %c1_i32_163 = arith.constant 1 : i32
    %430 = arith.addi %429, %c1_i32_163 : i32
    %431 = vector.extract_strided_slice %64 {offsets = [8, 0], sizes = [8, 128], strides = [1, 1]} : vector<16x128xf32> to vector<8x128xf32>
    %432 = vector.shape_cast %431 : vector<8x128xf32> to vector<1x8x128xf32>
    %433 = vector.shape_cast %120 : vector<16x128xf32> to vector<16x1x128xf32>
    %434 = vector.shape_cast %176 : vector<16x128xf32> to vector<16x1x128xf32>
    %435 = arith.index_cast %430 : i32 to index
    %c0_164 = arith.constant 0 : index
    %c8_165 = arith.constant 8 : index
    %c0_166 = arith.constant 0 : index
    %436 = vector.load %arg5[%435, %c0_164, %c8_165, %c0_166] : memref<4x16x16x128xf32, #tpu.memory_space<vmem>>, vector<1x16x8x128xf32>
    %437 = vector.shape_cast %436 : vector<1x16x8x128xf32> to vector<16x8x128xf32>
    %438 = arith.index_cast %430 : i32 to index
    %c0_167 = arith.constant 0 : index
    %c8_168 = arith.constant 8 : index
    %c0_169 = arith.constant 0 : index
    %439 = vector.load %arg6[%438, %c0_167, %c8_168, %c0_169] : memref<4x16x16x128xf32, #tpu.memory_space<vmem>>, vector<1x16x8x128xf32>
    %440 = vector.shape_cast %439 : vector<1x16x8x128xf32> to vector<16x8x128xf32>
    %441 = vector.broadcast %433 : vector<16x1x128xf32> to vector<16x8x128xf32>
    %442 = arith.addf %441, %437 : vector<16x8x128xf32>
    %443 = vector.broadcast %432 : vector<1x8x128xf32> to vector<16x8x128xf32>
    %444 = arith.mulf %443, %442 : vector<16x8x128xf32>
    %445 = vector.broadcast %434 : vector<16x1x128xf32> to vector<16x8x128xf32>
    %446 = arith.mulf %445, %440 : vector<16x8x128xf32>
    %447 = arith.addf %444, %446 : vector<16x8x128xf32>
    %448 = arith.addf %428, %447 : vector<16x8x128xf32>
    %cst_170 = arith.constant dense<0xFF800000> : vector<8x128xf32>
    %449 = vector.multi_reduction <maximumf>, %448, %cst_170 [0] : vector<16x8x128xf32> to vector<8x128xf32>
    %450 = vector.shape_cast %449 : vector<8x128xf32> to vector<1x8x128xf32>
    %451 = vector.broadcast %450 : vector<1x8x128xf32> to vector<16x8x128xf32>
    %452 = arith.subf %448, %451 : vector<16x8x128xf32>
    %453 = math.exp %452 : vector<16x8x128xf32>
    %cst_171 = arith.constant dense<0.000000e+00> : vector<8x128xf32>
    %454 = vector.multi_reduction <add>, %453, %cst_171 [0] : vector<16x8x128xf32> to vector<8x128xf32>
    %455 = vector.shape_cast %454 : vector<8x128xf32> to vector<1x8x128xf32>
    %456 = tpu.reciprocal %455 {approx = true} : vector<1x8x128xf32> -> vector<1x8x128xf32>
    %457 = arith.mulf %455, %456 : vector<1x8x128xf32>
    %cst_172 = arith.constant 2.000000e+00 : f32
    %458 = vector.broadcast %cst_172 : f32 to vector<1x8x128xf32>
    %459 = arith.subf %458, %457 : vector<1x8x128xf32>
    %460 = arith.mulf %456, %459 : vector<1x8x128xf32>
    %461 = vector.broadcast %460 : vector<1x8x128xf32> to vector<16x8x128xf32>
    %462 = arith.mulf %453, %461 : vector<16x8x128xf32>
    %463 = vector.shape_cast %204 : vector<16x128xf32> to vector<16x1x128xf32>
    %c4_i32_173 = arith.constant 4 : i32
    %464 = arith.muli %arg1, %c4_i32_173 : i32
    %c0_i32_174 = arith.constant 0 : i32
    %465 = arith.addi %464, %c0_i32_174 : i32
    %466 = arith.index_cast %465 : i32 to index
    %c0_175 = arith.constant 0 : index
    %c8_176 = arith.constant 8 : index
    %c0_177 = arith.constant 0 : index
    %467 = vector.load %arg7[%466, %c0_175, %c8_176, %c0_177] : memref<8x16x16x128xf32, #tpu.memory_space<vmem>>, vector<1x16x8x128xf32>
    %468 = vector.shape_cast %467 : vector<1x16x8x128xf32> to vector<16x8x128xf32>
    %469 = vector.broadcast %463 : vector<16x1x128xf32> to vector<16x8x128xf32>
    %470 = arith.addf %469, %468 : vector<16x8x128xf32>
    %471 = arith.mulf %462, %470 : vector<16x8x128xf32>
    %cst_178 = arith.constant dense<0.000000e+00> : vector<8x128xf32>
    %472 = vector.multi_reduction <add>, %471, %cst_178 [0] : vector<16x8x128xf32> to vector<8x128xf32>
    %473 = arith.index_cast %arg1 : i32 to index
    %c0_179 = arith.constant 0 : index
    %474 = memref.load %arg3[%473, %c0_179] : memref<2x4xf32, #tpu.memory_space<smem>>
    %475 = vector.broadcast %474 : f32 to vector<8x128xf32>
    %476 = arith.addf %472, %475 : vector<8x128xf32>
    %c0_180 = arith.constant 0 : index
    %c8_181 = arith.constant 8 : index
    %c0_182 = arith.constant 0 : index
    %477 = vector.load %arg8[%c0_180, %c8_181, %c0_182] : memref<4x16x128xf32, #tpu.memory_space<vmem>>, vector<1x8x128xf32>
    %478 = vector.shape_cast %477 : vector<1x8x128xf32> to vector<8x128xf32>
    %479 = vector.shape_cast %476 : vector<8x128xf32> to vector<1x8x128xf32>
    tpu.vector_store %arg8[%c0_180, %c8_181, %c0_182], %479 {strides = array<i32>} : memref<4x16x128xf32, #tpu.memory_space<vmem>>, vector<1x8x128xf32>,
    %480 = vector.shape_cast %232 : vector<16x128xf32> to vector<16x1x128xf32>
    %c4_i32_183 = arith.constant 4 : i32
    %481 = arith.muli %arg1, %c4_i32_183 : i32
    %c1_i32_184 = arith.constant 1 : i32
    %482 = arith.addi %481, %c1_i32_184 : i32
    %483 = arith.index_cast %482 : i32 to index
    %c0_185 = arith.constant 0 : index
    %c8_186 = arith.constant 8 : index
    %c0_187 = arith.constant 0 : index
    %484 = vector.load %arg7[%483, %c0_185, %c8_186, %c0_187] : memref<8x16x16x128xf32, #tpu.memory_space<vmem>>, vector<1x16x8x128xf32>
    %485 = vector.shape_cast %484 : vector<1x16x8x128xf32> to vector<16x8x128xf32>
    %486 = vector.broadcast %480 : vector<16x1x128xf32> to vector<16x8x128xf32>
    %487 = arith.addf %486, %485 : vector<16x8x128xf32>
    %488 = arith.mulf %462, %487 : vector<16x8x128xf32>
    %cst_188 = arith.constant dense<0.000000e+00> : vector<8x128xf32>
    %489 = vector.multi_reduction <add>, %488, %cst_188 [0] : vector<16x8x128xf32> to vector<8x128xf32>
    %490 = arith.index_cast %arg1 : i32 to index
    %c1_189 = arith.constant 1 : index
    %491 = memref.load %arg3[%490, %c1_189] : memref<2x4xf32, #tpu.memory_space<smem>>
    %492 = vector.broadcast %491 : f32 to vector<8x128xf32>
    %493 = arith.addf %489, %492 : vector<8x128xf32>
    %c1_190 = arith.constant 1 : index
    %c8_191 = arith.constant 8 : index
    %c0_192 = arith.constant 0 : index
    %494 = vector.load %arg8[%c1_190, %c8_191, %c0_192] : memref<4x16x128xf32, #tpu.memory_space<vmem>>, vector<1x8x128xf32>
    %495 = vector.shape_cast %494 : vector<1x8x128xf32> to vector<8x128xf32>
    %496 = vector.shape_cast %493 : vector<8x128xf32> to vector<1x8x128xf32>
    tpu.vector_store %arg8[%c1_190, %c8_191, %c0_192], %496 {strides = array<i32>} : memref<4x16x128xf32, #tpu.memory_space<vmem>>, vector<1x8x128xf32>,
    %497 = vector.shape_cast %260 : vector<16x128xf32> to vector<16x1x128xf32>
    %c4_i32_193 = arith.constant 4 : i32
    %498 = arith.muli %arg1, %c4_i32_193 : i32
    %c2_i32_194 = arith.constant 2 : i32
    %499 = arith.addi %498, %c2_i32_194 : i32
    %500 = arith.index_cast %499 : i32 to index
    %c0_195 = arith.constant 0 : index
    %c8_196 = arith.constant 8 : index
    %c0_197 = arith.constant 0 : index
    %501 = vector.load %arg7[%500, %c0_195, %c8_196, %c0_197] : memref<8x16x16x128xf32, #tpu.memory_space<vmem>>, vector<1x16x8x128xf32>
    %502 = vector.shape_cast %501 : vector<1x16x8x128xf32> to vector<16x8x128xf32>
    %503 = vector.broadcast %497 : vector<16x1x128xf32> to vector<16x8x128xf32>
    %504 = arith.addf %503, %502 : vector<16x8x128xf32>
    %505 = arith.mulf %462, %504 : vector<16x8x128xf32>
    %cst_198 = arith.constant dense<0.000000e+00> : vector<8x128xf32>
    %506 = vector.multi_reduction <add>, %505, %cst_198 [0] : vector<16x8x128xf32> to vector<8x128xf32>
    %507 = arith.index_cast %arg1 : i32 to index
    %c2_199 = arith.constant 2 : index
    %508 = memref.load %arg3[%507, %c2_199] : memref<2x4xf32, #tpu.memory_space<smem>>
    %509 = vector.broadcast %508 : f32 to vector<8x128xf32>
    %510 = arith.addf %506, %509 : vector<8x128xf32>
    %c2_200 = arith.constant 2 : index
    %c8_201 = arith.constant 8 : index
    %c0_202 = arith.constant 0 : index
    %511 = vector.load %arg8[%c2_200, %c8_201, %c0_202] : memref<4x16x128xf32, #tpu.memory_space<vmem>>, vector<1x8x128xf32>
    %512 = vector.shape_cast %511 : vector<1x8x128xf32> to vector<8x128xf32>
    %513 = vector.shape_cast %510 : vector<8x128xf32> to vector<1x8x128xf32>
    tpu.vector_store %arg8[%c2_200, %c8_201, %c0_202], %513 {strides = array<i32>} : memref<4x16x128xf32, #tpu.memory_space<vmem>>, vector<1x8x128xf32>,
    %514 = vector.shape_cast %288 : vector<16x128xf32> to vector<16x1x128xf32>
    %c4_i32_203 = arith.constant 4 : i32
    %515 = arith.muli %arg1, %c4_i32_203 : i32
    %c3_i32_204 = arith.constant 3 : i32
    %516 = arith.addi %515, %c3_i32_204 : i32
    %517 = arith.index_cast %516 : i32 to index
    %c0_205 = arith.constant 0 : index
    %c8_206 = arith.constant 8 : index
    %c0_207 = arith.constant 0 : index
    %518 = vector.load %arg7[%517, %c0_205, %c8_206, %c0_207] : memref<8x16x16x128xf32, #tpu.memory_space<vmem>>, vector<1x16x8x128xf32>
    %519 = vector.shape_cast %518 : vector<1x16x8x128xf32> to vector<16x8x128xf32>
    %520 = vector.broadcast %514 : vector<16x1x128xf32> to vector<16x8x128xf32>
    %521 = arith.addf %520, %519 : vector<16x8x128xf32>
    %522 = arith.mulf %462, %521 : vector<16x8x128xf32>
    %cst_208 = arith.constant dense<0.000000e+00> : vector<8x128xf32>
    %523 = vector.multi_reduction <add>, %522, %cst_208 [0] : vector<16x8x128xf32> to vector<8x128xf32>
    %524 = arith.index_cast %arg1 : i32 to index
    %c3_209 = arith.constant 3 : index
    %525 = memref.load %arg3[%524, %c3_209] : memref<2x4xf32, #tpu.memory_space<smem>>
    %526 = vector.broadcast %525 : f32 to vector<8x128xf32>
    %527 = arith.addf %523, %526 : vector<8x128xf32>
    %c3_210 = arith.constant 3 : index
    %c8_211 = arith.constant 8 : index
    %c0_212 = arith.constant 0 : index
    %528 = vector.load %arg8[%c3_210, %c8_211, %c0_212] : memref<4x16x128xf32, #tpu.memory_space<vmem>>, vector<1x8x128xf32>
    %529 = vector.shape_cast %528 : vector<1x8x128xf32> to vector<8x128xf32>
    %530 = vector.shape_cast %527 : vector<8x128xf32> to vector<1x8x128xf32>
    tpu.vector_store %arg8[%c3_210, %c8_211, %c0_212], %530 {strides = array<i32>} : memref<4x16x128xf32, #tpu.memory_space<vmem>>, vector<1x8x128xf32>,
    return
  }
  func.func @transform_0(%arg0: i32, %arg1: i32) -> (i32, i32) {
    %c0_i32 = arith.constant 0 : i32
    %c0_i32_0 = arith.constant 0 : i32
    %c0_i32_1 = arith.constant 0 : i32
    return %c0_i32, %c0_i32_0 : i32, i32
  }
  func.func @transform_1(%arg0: i32, %arg1: i32) -> (i32, i32) {
    %c0_i32 = arith.constant 0 : i32
    %c0_i32_0 = arith.constant 0 : i32
    %c0_i32_1 = arith.constant 0 : i32
    return %c0_i32, %c0_i32_0 : i32, i32
  }
  func.func @transform_2(%arg0: i32, %arg1: i32) -> (i32, i32, i32) {
    %c0_i32 = arith.constant 0 : i32
    %c0_i32_0 = arith.constant 0 : i32
    %c0_i32_1 = arith.constant 0 : i32
    return %c0_i32, %c0_i32_0, %arg0 : i32, i32, i32
  }
  func.func @transform_3(%arg0: i32, %arg1: i32) -> (i32, i32, i32, i32) {
    %c0_i32 = arith.constant 0 : i32
    %c0_i32_0 = arith.constant 0 : i32
    %c0_i32_1 = arith.constant 0 : i32
    %c0_i32_2 = arith.constant 0 : i32
    %c0_i32_3 = arith.constant 0 : i32
    return %c0_i32, %c0_i32_0, %c0_i32_1, %c0_i32_2 : i32, i32, i32, i32
  }
  func.func @transform_4(%arg0: i32, %arg1: i32) -> (i32, i32, i32, i32) {
    %c0_i32 = arith.constant 0 : i32
    %c0_i32_0 = arith.constant 0 : i32
    %c0_i32_1 = arith.constant 0 : i32
    %c0_i32_2 = arith.constant 0 : i32
    %c0_i32_3 = arith.constant 0 : i32
    return %c0_i32, %c0_i32_0, %c0_i32_1, %c0_i32_2 : i32, i32, i32, i32
  }
  func.func @transform_5(%arg0: i32, %arg1: i32) -> (i32, i32, i32, i32) {
    %c0_i32 = arith.constant 0 : i32
    %c0_i32_0 = arith.constant 0 : i32
    %c0_i32_1 = arith.constant 0 : i32
    %c0_i32_2 = arith.constant 0 : i32
    %c0_i32_3 = arith.constant 0 : i32
    return %c0_i32, %c0_i32_0, %c0_i32_1, %c0_i32_2 : i32, i32, i32, i32
  }
  func.func @transform_6(%arg0: i32, %arg1: i32) -> (i32, i32, i32) {
    %c0_i32 = arith.constant 0 : i32
    %c0_i32_0 = arith.constant 0 : i32
    return %arg1, %c0_i32, %arg0 : i32, i32, i32
  }
}

</mosaic_0001>

<bundles_post_ra>
// kernel: gated_axial_attention.1
= control target key start
LH: loop header
LB: loop body
LE: loop exit
PB: predicated region body
PF: predicated region fallthrough
CT: control target
= control target key end

     0   :  { %11 = vsyncpa [#allocation3], 0  ;;  %s6664_s0 = inlined_call_operand.vmem [shape: f32[20,5], index: 0, kind: input, shape index: {}]   ;;  %s6665_s1 = inlined_call_operand.vmem [shape: f32[2,4], index: 1, kind: input, shape index: {}]   ;;  %s6666_s2 = inlined_call_operand.vmem [shape: f32[4,16,128], index: 2, kind: input, shape index: {}]   ;;  %s6667_s3 = inlined_call_operand.vmem [shape: f32[4,16,16,128], index: 3, kind: input, shape index: {}]   ;;  %s6668_s4 = inlined_call_operand.vmem [shape: f32[4,16,16,128], index: 4, kind: input, shape index: {}]   ;;  %s6669_s5 = inlined_call_operand.vmem [shape: f32[8,16,16,128], index: 5, kind: input, shape index: {}]   ;;  %s6670_s6 = inlined_call_operand.vmem [shape: f32[8,16,128], index: 6, kind: output, shape index: {}]  }
   0x1   :  { %12 = vsyncpa [#allocation5], 0  ;;  %s3843_s21 = smov 0   ;;  %s3845_s22 = smov 0  }
   0x2   :  { %s3847_s23 = smov 0  }
   0x3 LB: > { %s3379_s24 = sadd.s32 4294967295, %s3801_s23   ;;  %s27_s25 = sadd.s32 1, %s3797_s22  ;;  %s3801_s23 = sphi %s3847_s23, %s18_s23   ;;  %s3797_s22 = sphi %s3845_s22, %s7254_s22   ;;  %s3793_s21 = sphi %s3843_s21, %s7253_s21  }
   0x4   : > { %p28_p0 = scmp.ge.s32.totalorder %s27_s25, 2  ;;  %p3381_p1 = scmp.ge.s32.totalorder %s3801_s23, 1 }
   0x5   : > { %p194_p2 = scmp.lt.s32.totalorder %s3801_s23, 3  ;;  %p3868_p4 = scmp.eq.s32.totalorder %s3379_s24, 0 }
   0x6   : > { %s7256_s25 = smov (%p28_p0, %s27_s25), 0  ;;  %s206_s30 = sshll.u32 %s6664_s0, 4  ;;  %s207_s30 = int_to_ptr.vmem [resolvable:$true] %s206_s30 }
   0x7   : > { %p3864_p3 = pnand %p3381_p1, %p194_p2  ;;  %s220_s10 = sshll.u32 %s6665_s1, 4  ;;  %s221_s10 = int_to_ptr.vmem [resolvable:$true] %s220_s10 }
   0x8   : > { %s6816_s27 = scalar_select %p3868_p4, 1, 0 }
   0x9   : > { %s6815_s26 = scalar_select %p3864_p3, 1, 0 }
   0xa   : > { %p3633_p5 = pneg %p3864_p3  ;;  %s3741_s11 = scalar_lea.vmem %s207_s30, 384 }
   0xb   : > { %p3742_p7 = scmp.ne.s32.totalorder %s207_s30, %s3741_s11  ;;  %p3749_p11 = scmp.lt.s32.totalorder %s207_s30, %s207_s30 }
   0xc   : > { %p3879_p6 = pnand %p3868_p4, %p3633_p5  ;;  %p3750_p12 = scmp.lt.s32.totalorder %s3741_s11, %s3741_s11 }
   0xe   : > { %p3743_p8 = pneg %p3879_p6  ;;  %p3751_p13 = por %p3750_p12, %p3749_p11 }
  0x10   : > { %p3744_p9 = pnand %p3743_p8, %p3742_p7 }
  0x12   : > { %p3745_p10 = pneg %p3744_p9 }
  0x14   : > { %p3752_p0 = pnand %p3751_p13, %p3745_p10 }
  0x16   : > { %3755 = shalt.err (!%p3752_p0)
}
  0x17   : > { %s3803_s12 = smov [#allocation2]   ;;  %s3804_s13 = smov 128  }
  0x18   : > { %s3805_s14 = smov 8   ;;  %s3756_s15 = scalar_lea.vmem %s221_s10, 32 }
  0x19   : > { %3636 = dma.vmem_to_smem (!%p3879_p6), %s207_s30, 384, %s3803_s12, [#allocation3], %s3804_s13, %s3804_s13, %s3805_s14  }
  0x1a   : > { %p3757_p1 = scmp.ne.s32.totalorder %s221_s10, %s3756_s15  ;;  %p3764_p7 = scmp.lt.s32.totalorder %s221_s10, %s221_s10 }
  0x1b   : > { %p3765_p9 = scmp.lt.s32.totalorder %s3756_s15, %s3756_s15 }
  0x1c   : > { %p3759_p2 = pnand %p3757_p1, %p3743_p8 }
  0x1d   : > { %p3766_p4 = por %p3765_p9, %p3764_p7 }
  0x1e   : > { %p3760_p5 = pneg %p3759_p2 }
  0x20   : > { %p3767_p3 = pnand %p3766_p4, %p3760_p5 }
  0x22   : > { %3770 = shalt.err (!%p3767_p3)
}
  0x23   : > { %s3806_s16 = smov [#allocation4]   ;;  %p6818_p10 = scmp.ne.s32.totalorder %s6815_s26, 0 }
  0x24   : > { %3639 = dma.vmem_to_smem (!%p3879_p6), %s221_s10, 32, %s3806_s16, [#allocation5]  }
  0x25   : > { %249 = sbr.rel (%p6818_p10) target bundleno = 461 (0x1cd), region = 44 }
  0x2a   : > { %p6819_p11 = scmp.ne.s32.totalorder %s6816_s27, 0 }
  0x2c   : > { %3784 = dma.done.wait (%p6819_p11), [#allocation3], 384  }
  0x2d   : > { %3786 = vsyncadd (%p6819_p11), [#allocation3], 4294966912 }
  0x2e   : > { %3788 = dma.done.wait (%p6819_p11), [#allocation5], 32  }
  0x2f   : > { %3790 = vsyncadd (%p6819_p11), [#allocation5], 4294967264 }
  0x30   : > { %259 = sfence }
  0x31   : > { %s3909_s17 = smul.u32 1280, %s3793_s21  ;;  %v3923_v0 = vld [vmem:[%s6666_s2] sm:$0xff]  ;;  %v3928_v1 = vld [vmem:[%s6666_s2 + $0x8] sm:$0xff]  ;;  %v3940_v5 = vld [vmem:[%s6666_s2 + $0x10] sm:$0xff]  ;;  %v639_v8 = vlaneseq  ;;  %v3807_v13 = vmov 1966171168  }
  0x32   : > { %v3945_v6 = vld [vmem:[%s6666_s2 + $0x18] sm:$0xff]  ;;  %v3952_v9 = vld [vmem:[%s6666_s2 + $0x28] sm:$0xff]  ;;  %v637_v14 = vunpack.c.l.s4 %v3807_v13  ;;  %v3962_v15 = vld [vmem:[%s6666_s2 + $0x20] sm:$0xff] }
  0x33   : > { %s314_s18 = sld [smem:[#allocation2 + %s3909_s17]]  ;;  %s318_s19 = sadd.s32 1, %s3909_s17  ;;  %v3970_v17 = vld [vmem:[%s6666_s2 + $0x38] sm:$0xff]  ;;  %v3980_v22 = vld [vmem:[%s6666_s2 + $0x30] sm:$0xff]  ;;  %v640_v24 = vshrl.u32 %v639_v8, 7 }
  0x34   : > { %s319_s20 = sld [smem:[#allocation2 + %s318_s19]]  ;;  %s325_s24 = sadd.s32 2, %s3909_s17  ;;  %v638_v28 = vunpack.c.0.s8 %v637_v14 }
  0x35   : > { %s3914_s26 = sld [smem:[#allocation2 + %s325_s24]]  ;;  %s332_s28 = sadd.s32 3, %s3909_s17  ;;  %v4006_v39 = vsub.s32 0, %v640_v24 }
  0x36   : > { %s3917_s29 = sld [smem:[#allocation2 + %s332_s28]]  ;;  %s339_s27 = sadd.s32 4, %s3909_s17  ;;  %v4014_v43 = vsub.s32 %v638_v28, %v640_v24 }
  0x37   : > { %s3930_s10 = sld [smem:[#allocation2 + %s339_s27]]  ;;  %s3592_s11 = sadd.s32 128, %s3909_s17  ;;  %6820 = vst [vmem:[#allocation8_spill] sm:$0xff] %v4006_v39 }
  0x38   : > { %s3935_s12 = sld [smem:[#allocation2 + %s3592_s11]]  ;;  %s350_s13 = sadd.s32 1, %s3592_s11  ;;  %6822 = vst [vmem:[#allocation10_spill] sm:$0xff] %v4014_v43 }
  0x39   : > { %v315_v2 = vstv %s314_s18  ;;  %s3947_s18 = sld [smem:[#allocation2 + %s350_s13]]  ;;  %s357_s24 = sadd.s32 2, %s3592_s11 }
  0x3a   : > { %v316_v3 = vmul.f32 %v315_v2, %v3923_v0  ;;  %v317_v4 = vmul.f32 %v315_v2, %v3928_v1  ;;  %v320_v7 = vstv %s319_s20  ;;  %s3957_s30 = sld [smem:[#allocation2 + %s357_s24]]  ;;  %s364_s7 = sadd.s32 3, %s3592_s11 }
  0x3b   : > { %v321_v10 = vmul.f32 %v3940_v5, %v320_v7  ;;  %v322_v11 = vmul.f32 %v3945_v6, %v320_v7  ;;  %v327_v12 = vstv %s3914_s26  ;;  %s3965_s9 = sld [smem:[#allocation2 + %s364_s7]]  ;;  %s371_s13 = sadd.s32 4, %s3592_s11 }
  0x3c   : > { %v329_v16 = vmul.f32 %v3952_v9, %v327_v12  ;;  %v328_v20 = vmul.f32 %v3962_v15, %v327_v12  ;;  %v334_v21 = vstv %s3917_s29  ;;  %s3974_s26 = sld [smem:[#allocation2 + %s371_s13]]  ;;  %s3594_s16 = sadd.s32 256, %s3909_s17 }
  0x3d   : > { %v323_v18 = vadd.f32 %v321_v10, %v316_v3  ;;  %v324_v19 = vadd.f32 %v322_v11, %v317_v4  ;;  %v336_v23 = vmul.f32 %v3970_v17, %v334_v21  ;;  %s3983_s11 = sld [smem:[#allocation2 + %s3594_s16]]  ;;  %s382_s28 = sadd.s32 1, %s3594_s16  ;;  %v335_v26 = vmul.f32 %v3980_v22, %v334_v21 }
  0x3e   : > { %v347_v27 = vstv %s3935_s12  ;;  %s3987_s29 = sld [smem:[#allocation2 + %s382_s28]]  ;;  %s389_s27 = sadd.s32 2, %s3594_s16  ;;  %v341_v29 = vstv %s3930_s10 }
  0x3f   : > { %v331_v25 = vadd.f32 %v329_v16, %v324_v19  ;;  %v348_v30 = vmul.f32 %v347_v27, %v3923_v0  ;;  %v349_v31 = vmul.f32 %v347_v27, %v3928_v1  ;;  %v352_v32 = vstv %s3947_s18  ;;  %s3993_s7 = sld [smem:[#allocation2 + %s389_s27]]  ;;  %s396_s20 = sadd.s32 3, %s3594_s16 }
  0x40   : > { %v330_v33 = vadd.f32 %v328_v20, %v323_v18  ;;  %v353_v35 = vmul.f32 %v3940_v5, %v352_v32  ;;  %v354_v36 = vmul.f32 %v3945_v6, %v352_v32  ;;  %s3997_s12 = sld [smem:[#allocation2 + %s396_s20]]  ;;  %s403_s8 = sadd.s32 4, %s3594_s16  ;;  %v359_v37 = vstv %s3957_s30 }
  0x41   : > { %v338_v34 = vadd.f32 %v336_v23, %v331_v25  ;;  %v366_v38 = vstv %s3965_s9  ;;  %s4001_s10 = sld [smem:[#allocation2 + %s403_s8]]  ;;  %s4004_s13 = sadd.s32 384, %s3909_s17  ;;  %v360_v44 = vmul.f32 %v3962_v15, %v359_v37  ;;  %v361_v45 = vmul.f32 %v3952_v9, %v359_v37 }
  0x42   : > { %v355_v41 = vadd.f32 %v353_v35, %v348_v30  ;;  %v356_v42 = vadd.f32 %v354_v36, %v349_v31  ;;  %s4011_s18 = sld [smem:[#allocation2 + %s4004_s13]]  ;;  %s414_s30 = sadd.s32 1, %s4004_s13  ;;  %v367_v46 = vmul.f32 %v3980_v22, %v366_v38  ;;  %v368_v47 = vmul.f32 %v3970_v17, %v366_v38 }
  0x43   : > { %v4008_v40 = vadd.f32 %v341_v29, %v338_v34  ;;  %s4020_s9 = sld [smem:[#allocation2 + %s414_s30]]  ;;  %s421_s14 = sadd.s32 2, %s4004_s13  ;;  %v337_v48 = vadd.f32 %v335_v26, %v330_v33  ;;  %v373_v49 = vstv %s3974_s26  ;;  %v379_v50 = vstv %s3983_s11 }
  0x44   : > { %v384_v51 = vstv %s3987_s29  ;;  %s4026_s15 = sld [smem:[#allocation2 + %s421_s14]]  ;;  %s428_s16 = sadd.s32 3, %s4004_s13  ;;  %v362_v52 = vadd.f32 %v360_v44, %v355_v41  ;;  %v363_v53 = vadd.f32 %v361_v45, %v356_v42  ;;  %v380_v54 = vmul.f32 %v379_v50, %v3923_v0 }
  0x45   : > { %6821 = vst [vmem:[#allocation9_spill] sm:$0xff] %v4008_v40  ;;  %v381_v55 = vmul.f32 %v379_v50, %v3928_v1  ;;  %s4031_s19 = sld [smem:[#allocation2 + %s428_s16]]  ;;  %s435_s24 = sadd.s32 4, %s4004_s13  ;;  %v385_v56 = vmul.f32 %v3940_v5, %v384_v51  ;;  %v386_v57 = vmul.f32 %v3945_v6, %v384_v51  ;;  %v391_v58 = vstv %s3993_s7 }
  0x46   : > { %v398_v59 = vstv %s3997_s12  ;;  %s4038_s26 = sld [smem:[#allocation2 + %s435_s24]]  ;;  %s4041_s11 = sadd.s32 512, %s3909_s17  ;;  %v369_v60 = vadd.f32 %v367_v46, %v362_v52  ;;  %v370_v61 = vadd.f32 %v368_v47, %v363_v53  ;;  %v392_v62 = vmul.f32 %v3962_v15, %v391_v58 }
  0x47   : > { %v393_v63 = vmul.f32 %v3952_v9, %v391_v58  ;;  %s4046_s28 = sld [smem:[#allocation2 + %s4041_s11]]  ;;  %s446_s29 = sadd.s32 1, %s4041_s11  ;;  %v387_v2 = vadd.f32 %v385_v56, %v380_v54  ;;  %v388_v3 = vadd.f32 %v386_v57, %v381_v55  ;;  %v399_v4 = vmul.f32 %v3980_v22, %v398_v59 }
  0x48   : > { %v400_v7 = vmul.f32 %v3970_v17, %v398_v59  ;;  %s4051_s27 = sld [smem:[#allocation2 + %s446_s29]]  ;;  %s453_s7 = sadd.s32 2, %s4041_s11  ;;  %v4054_v8 = vadd.f32 %v341_v29, %v337_v48  ;;  %v4056_v10 = vadd.f32 %v373_v49, %v369_v60  ;;  %v4058_v11 = vadd.f32 %v373_v49, %v370_v61 }
  0x49   : > { %v411_v12 = vstv %s4011_s18  ;;  %s4061_s20 = sld [smem:[#allocation2 + %s453_s7]]  ;;  %s460_s12 = sadd.s32 3, %s4041_s11  ;;  %v394_v13 = vadd.f32 %v392_v62, %v387_v2  ;;  %v395_v14 = vadd.f32 %v393_v63, %v388_v3  ;;  %v405_v19 = vstv %s4001_s10 }
  0x4a   : > { %6823 = vst [vmem:[#allocation11_spill] sm:$0xff] %v4056_v10  ;;  %6824 = vst [vmem:[#allocation12_spill] sm:$0xff] %v4058_v11  ;;  %v412_v16 = vmul.f32 %v411_v12, %v3923_v0  ;;  %v413_v18 = vmul.f32 %v411_v12, %v3928_v1  ;;  %s4066_s8 = sld [smem:[#allocation2 + %s460_s12]]  ;;  %s467_s13 = sadd.s32 4, %s4041_s11  ;;  %v416_v20 = vstv %s4020_s9  ;;  %v423_v21 = vstv %s4026_s15 }
  0x4b   : > { %v430_v23 = vstv %s4031_s19  ;;  %s4073_s30 = sld [smem:[#allocation2 + %s467_s13]]  ;;  %s4076_s14 = sadd.s32 640, %s3909_s17  ;;  %v401_v24 = vadd.f32 %v399_v4, %v394_v13  ;;  %v402_v25 = vadd.f32 %v400_v7, %v395_v14  ;;  %v417_v26 = vmul.f32 %v3940_v5, %v416_v20 }
  0x4c   : > { %v418_v27 = vmul.f32 %v3945_v6, %v416_v20  ;;  %s4081_s10 = sld [smem:[#allocation2 + %s4076_s14]]  ;;  %s478_s18 = sadd.s32 1, %s4076_s14  ;;  %v424_v28 = vmul.f32 %v3962_v15, %v423_v21  ;;  %v425_v29 = vmul.f32 %v3952_v9, %v423_v21  ;;  %v431_v30 = vmul.f32 %v3980_v22, %v430_v23 }
  0x4d   : > { %v432_v31 = vmul.f32 %v3970_v17, %v430_v23  ;;  %s4088_s9 = sld [smem:[#allocation2 + %s478_s18]]  ;;  %s485_s15 = sadd.s32 2, %s4076_s14  ;;  %v4091_v32 = vadd.f32 %v405_v19, %v401_v24  ;;  %v4093_v33 = vadd.f32 %v405_v19, %v402_v25  ;;  %v419_v34 = vadd.f32 %v417_v26, %v412_v16 }
  0x4e   : > { %v420_v35 = vadd.f32 %v418_v27, %v413_v18  ;;  %s4095_s16 = sld [smem:[#allocation2 + %s485_s15]]  ;;  %s492_s19 = sadd.s32 3, %s4076_s14  ;;  %v437_v36 = vstv %s4038_s26  ;;  %v443_v37 = vstv %s4046_s28  ;;  %v448_v38 = vstv %s4051_s27 }
  0x4f   : > { %v455_v41 = vstv %s4061_s20  ;;  %s4102_s24 = sld [smem:[#allocation2 + %s492_s19]]  ;;  %s499_s11 = sadd.s32 4, %s4076_s14  ;;  %v426_v42 = vadd.f32 %v424_v28, %v419_v34  ;;  %v444_v45 = vmul.f32 %v443_v37, %v3923_v0  ;;  %v445_v46 = vmul.f32 %v443_v37, %v3928_v1 }
  0x50   : > { %v427_v44 = vadd.f32 %v425_v29, %v420_v35  ;;  %s4107_s29 = sld [smem:[#allocation2 + %s499_s11]]  ;;  %s4110_s7 = sadd.s32 768, %s3909_s17  ;;  %v449_v47 = vmul.f32 %v3940_v5, %v448_v38  ;;  %v450_v48 = vmul.f32 %v3945_v6, %v448_v38  ;;  %v456_v49 = vmul.f32 %v3962_v15, %v455_v41 }
  0x51   : > { %v457_v50 = vmul.f32 %v3952_v9, %v455_v41  ;;  %s4117_s26 = sld [smem:[#allocation2 + %s4110_s7]]  ;;  %s510_s28 = sadd.s32 1, %s4110_s7  ;;  %v433_v51 = vadd.f32 %v431_v30, %v426_v42  ;;  %v462_v53 = vstv %s4066_s8  ;;  %v469_v54 = vstv %s4073_s30 }
  0x52   : > { %v434_v52 = vadd.f32 %v432_v31, %v427_v44  ;;  %s4122_s27 = sld [smem:[#allocation2 + %s510_s28]]  ;;  %s517_s20 = sadd.s32 2, %s4110_s7  ;;  %v451_v55 = vadd.f32 %v449_v47, %v444_v45  ;;  %v452_v56 = vadd.f32 %v450_v48, %v445_v46  ;;  %v463_v57 = vmul.f32 %v3980_v22, %v462_v53 }
  0x53   : > { %v464_v58 = vmul.f32 %v3970_v17, %v462_v53  ;;  %s4127_s12 = sld [smem:[#allocation2 + %s517_s20]]  ;;  %s524_s13 = sadd.s32 3, %s4110_s7  ;;  %v4130_v59 = vadd.f32 %v437_v36, %v433_v51  ;;  %v475_v61 = vstv %s4081_s10  ;;  %v480_v62 = vstv %s4088_s9 }
  0x54   : > { %v4132_v60 = vadd.f32 %v437_v36, %v434_v52  ;;  %s4136_s8 = sld [smem:[#allocation2 + %s524_s13]]  ;;  %s531_s30 = sadd.s32 4, %s4110_s7  ;;  %v458_v63 = vadd.f32 %v456_v49, %v451_v55  ;;  %v459_v2 = vadd.f32 %v457_v50, %v452_v56  ;;  %v476_v3 = vmul.f32 %v475_v61, %v3923_v0 }
  0x55   : > { %v477_v4 = vmul.f32 %v475_v61, %v3928_v1  ;;  %s4141_s14 = sld [smem:[#allocation2 + %s531_s30]]  ;;  %s4144_s18 = sadd.s32 896, %s3909_s17  ;;  %v481_v7 = vmul.f32 %v3940_v5, %v480_v62  ;;  %v482_v12 = vmul.f32 %v3945_v6, %v480_v62  ;;  %v487_v13 = vstv %s4095_s16 }
  0x56   : > { %v494_v14 = vstv %s4102_s24  ;;  %s4151_s10 = sld [smem:[#allocation2 + %s4144_s18]]  ;;  %s542_s9 = sadd.s32 1, %s4144_s18  ;;  %v465_v16 = vadd.f32 %v463_v57, %v458_v63  ;;  %v466_v18 = vadd.f32 %v464_v58, %v459_v2  ;;  %v488_v19 = vmul.f32 %v3962_v15, %v487_v13 }
  0x57   : > { %v489_v20 = vmul.f32 %v3952_v9, %v487_v13  ;;  %s4156_s15 = sld [smem:[#allocation2 + %s542_s9]]  ;;  %s549_s19 = sadd.s32 2, %s4144_s18  ;;  %v483_v21 = vadd.f32 %v481_v7, %v476_v3  ;;  %v484_v23 = vadd.f32 %v482_v12, %v477_v4  ;;  %v495_v24 = vmul.f32 %v3980_v22, %v494_v14 }
  0x58   : > { %v496_v25 = vmul.f32 %v3970_v17, %v494_v14  ;;  %s4161_s16 = sld [smem:[#allocation2 + %s549_s19]]  ;;  %s556_s24 = sadd.s32 3, %s4144_s18  ;;  %v4164_v26 = vadd.f32 %v469_v54, %v465_v16  ;;  %v4166_v27 = vadd.f32 %v469_v54, %v466_v18  ;;  %v501_v28 = vstv %s4107_s29 }
  0x59   : > { %v507_v29 = vstv %s4117_s26  ;;  %s4170_s11 = sld [smem:[#allocation2 + %s556_s24]]  ;;  %s563_s7 = sadd.s32 4, %s4144_s18  ;;  %v490_v30 = vadd.f32 %v488_v19, %v483_v21  ;;  %v491_v31 = vadd.f32 %v489_v20, %v484_v23  ;;  %v512_v36 = vstv %s4122_s27 }
  0x5a   : > { %v508_v34 = vmul.f32 %v507_v29, %v3923_v0  ;;  %v509_v35 = vmul.f32 %v507_v29, %v3928_v1  ;;  %s4175_s28 = sld [smem:[#allocation2 + %s563_s7]]  ;;  %s4178_s20 = sadd.s32 1024, %s3909_s17  ;;  %v519_v37 = vstv %s4127_s12  ;;  %v526_v38 = vstv %s4136_s8 }
  0x5b   : > { %v533_v41 = vstv %s4141_s14  ;;  %s4185_s29 = sld [smem:[#allocation2 + %s4178_s20]]  ;;  %s574_s26 = sadd.s32 1, %s4178_s20  ;;  %v497_v42 = vadd.f32 %v495_v24, %v490_v30  ;;  %v498_v44 = vadd.f32 %v496_v25, %v491_v31  ;;  %v513_v45 = vmul.f32 %v3940_v5, %v512_v36 }
  0x5c   : > { %v514_v46 = vmul.f32 %v3945_v6, %v512_v36  ;;  %s4190_s13 = sld [smem:[#allocation2 + %s574_s26]]  ;;  %s581_s27 = sadd.s32 2, %s4178_s20  ;;  %v520_v47 = vmul.f32 %v3962_v15, %v519_v37  ;;  %v521_v48 = vmul.f32 %v3952_v9, %v519_v37  ;;  %v527_v49 = vmul.f32 %v3980_v22, %v526_v38 }
  0x5d   : > { %v528_v50 = vmul.f32 %v3970_v17, %v526_v38  ;;  %s4197_s12 = sld [smem:[#allocation2 + %s581_s27]]  ;;  %s588_s8 = sadd.s32 3, %s4178_s20  ;;  %v4200_v51 = vadd.f32 %v501_v28, %v497_v42  ;;  %v4202_v52 = vadd.f32 %v501_v28, %v498_v44  ;;  %v515_v53 = vadd.f32 %v513_v45, %v508_v34 }
  0x5e   : > { %v516_v54 = vadd.f32 %v514_v46, %v509_v35  ;;  %s4204_s30 = sld [smem:[#allocation2 + %s588_s8]]  ;;  %s595_s14 = sadd.s32 4, %s4178_s20  ;;  %v539_v55 = vstv %s4151_s10  ;;  %v544_v56 = vstv %s4156_s15  ;;  %v551_v57 = vstv %s4161_s16 }
  0x5f   : > { %v558_v58 = vstv %s4170_s11  ;;  %s4211_s18 = sld [smem:[#allocation2 + %s595_s14]]  ;;  %s4214_s9 = sadd.s32 1152, %s3909_s17  ;;  %v522_v61 = vadd.f32 %v520_v47, %v515_v53  ;;  %v540_v63 = vmul.f32 %v539_v55, %v3923_v0  ;;  %v541_v2 = vmul.f32 %v539_v55, %v3928_v1 }
  0x60   : > { %v523_v62 = vadd.f32 %v521_v48, %v516_v54  ;;  %s4219_s19 = sld [smem:[#allocation2 + %s4214_s9]]  ;;  %s606_s10 = sadd.s32 1, %s4214_s9  ;;  %v545_v3 = vmul.f32 %v3940_v5, %v544_v56  ;;  %v546_v4 = vmul.f32 %v3945_v6, %v544_v56  ;;  %v552_v7 = vmul.f32 %v3962_v15, %v551_v57 }
  0x61   : > { %v553_v12 = vmul.f32 %v3952_v9, %v551_v57  ;;  %s4226_s17 = sld [smem:[#allocation2 + %s606_s10]]  ;;  %s613_s15 = sadd.s32 2, %s4214_s9  ;;  %v529_v13 = vadd.f32 %v527_v49, %v522_v61  ;;  %v559_v16 = vmul.f32 %v3980_v22, %v558_v58  ;;  %v560_v18 = vmul.f32 %v3970_v17, %v558_v58 }
  0x62   : > { %v530_v14 = vadd.f32 %v528_v50, %v523_v62  ;;  %s4231_s16 = sld [smem:[#allocation2 + %s613_s15]]  ;;  %s620_s24 = sadd.s32 3, %s4214_s9  ;;  %v547_v19 = vadd.f32 %v545_v3, %v540_v63  ;;  %v548_v20 = vadd.f32 %v546_v4, %v541_v2  ;;  %v565_v21 = vstv %s4175_s28 }
  0x63   : > { %v571_v23 = vstv %s4185_s29  ;;  %s4236_s11 = sld [smem:[#allocation2 + %s620_s24]]  ;;  %s627_s7 = sadd.s32 4, %s4214_s9  ;;  %v4239_v24 = vadd.f32 %v533_v41, %v529_v13  ;;  %v576_v34 = vstv %s4190_s13  ;;  %v583_v35 = vstv %s4197_s12 }
  0x64   : > { %v4241_v25 = vadd.f32 %v533_v41, %v530_v14  ;;  %v572_v28 = vmul.f32 %v571_v23, %v3923_v0  ;;  %v573_v29 = vmul.f32 %v571_v23, %v3928_v1  ;;  %v554_v30 = vadd.f32 %v552_v7, %v547_v19  ;;  %s4251_s28 = sld [smem:[#allocation2 + %s627_s7]]  ;;  %s3609_s20 = sshll.u32 %s3793_s21, 9 }
  0x65   : > { %6825 = vst [vmem:[#allocation13_spill] sm:$0xff] %v4239_v24  ;;  %v555_v31 = vadd.f32 %v553_v12, %v548_v20  ;;  %v577_v36 = vmul.f32 %v3940_v5, %v576_v34  ;;  %v578_v37 = vmul.f32 %v3945_v6, %v576_v34  ;;  %v584_v38 = vmul.f32 %v3962_v15, %v583_v35  ;;  %s4337_s13 = scalar_lea.vmem %s6667_s3, %s3609_s20  ;;  %s4452_s8 = scalar_lea.vmem %s6668_s4, %s3609_s20 }
  0x66   : > { %6826 = vst [vmem:[#allocation14_spill] sm:$0xff] %v4241_v25  ;;  %v585_v42 = vmul.f32 %v3952_v9, %v583_v35  ;;  %v561_v41 = vadd.f32 %v559_v16, %v554_v30  ;;  %v590_v45 = vstv %s4204_s30  ;;  %v597_v46 = vstv %s4211_s18  ;;  %v858_v40 = vld [vmem:[%s4452_s8 + $0x60] sm:$0xff]  ;;  %s3612_s30 = sshll.u32 %s3793_s21, 10  ;;  %s3388_s24 = sshll.u32 %s3793_s21, 2 }
  0x67   : > { %v562_v44 = vadd.f32 %v560_v18, %v555_v31  ;;  %v579_v47 = vadd.f32 %v577_v36, %v572_v28  ;;  %v580_v48 = vadd.f32 %v578_v37, %v573_v29  ;;  %v591_v49 = vmul.f32 %v3980_v22, %v590_v45  ;;  %s5111_s9 = scalar_lea.vmem %s6669_s5, %s3612_s30  ;;  %p5779_p3 = scmp.lt.s32.totalorder %s3388_s24, 7 }
  0x68   : > { %v592_v50 = vmul.f32 %v3970_v17, %v590_v45  ;;  %v4257_v53 = vadd.f32 %v565_v21, %v561_v41  ;;  %v603_v55 = vstv %s4219_s19  ;;  %v608_v56 = vstv %s4226_s17  ;;  %s5413_s19 = sshll.u32 %s3793_s21, 7 }
  0x69   : > { %v4259_v54 = vadd.f32 %v565_v21, %v562_v44  ;;  %v586_v57 = vadd.f32 %v584_v38, %v579_v47  ;;  %v587_v58 = vadd.f32 %v585_v42, %v580_v48  ;;  %v604_v61 = vmul.f32 %v603_v55, %v3923_v0  ;;  %s5447_s10 = sld [smem:[#allocation4 + %s5413_s19]]  ;;  %s2163_s17 = sadd.s32 1, %s5413_s19 }
  0x6a   : > { %6827 = vst [vmem:[#allocation15_spill] sm:$0xff] %v4257_v53  ;;  %v605_v62 = vmul.f32 %v603_v55, %v3928_v1  ;;  %v609_v63 = vmul.f32 %v3940_v5, %v608_v56  ;;  %v610_v2 = vmul.f32 %v3945_v6, %v608_v56  ;;  %v615_v3 = vstv %s4231_s16  ;;  %s5540_s15 = sld [smem:[#allocation4 + %s5413_s19]]  ;;  %s7258_s24 = smov (!%p5779_p3, %s3388_s24), 7 }
  0x6b   : > { %6828 = vst [vmem:[#allocation16_spill] sm:$0xff] %v4259_v54  ;;  %v622_v4 = vstv %s4236_s11  ;;  %v593_v7 = vadd.f32 %v591_v49, %v586_v57  ;;  %v594_v12 = vadd.f32 %v592_v50, %v587_v58  ;;  %v616_v13 = vmul.f32 %v3962_v15, %v615_v3  ;;  %s5560_s16 = sld [smem:[#allocation4 + %s2163_s17]]  ;;  %s3590_s21 = sshll.u32 %s7258_s24, 4 }
  0x6c   : > { %v617_v14 = vmul.f32 %v3952_v9, %v615_v3  ;;  %v611_v16 = vadd.f32 %v609_v63, %v604_v61  ;;  %v612_v18 = vadd.f32 %v610_v2, %v605_v62  ;;  %v623_v19 = vmul.f32 %v3980_v22, %v622_v4  ;;  %s5877_s20 = scalar_lea.vmem %s6670_s6, %s3590_s21  ;;  %s2415_s29 = sadd.s32 2, %s5413_s19 }
  0x6d   : > { %v624_v0 = vmul.f32 %v3970_v17, %v622_v4  ;;  %v4273_v20 = vadd.f32 %v597_v46, %v593_v7  ;;  %v4275_v1 = vadd.f32 %v597_v46, %v594_v12  ;;  %v629_v5 = vstv %s4251_s28  ;;  %s6375_s26 = sld [smem:[#allocation4 + %s2163_s17]]  ;;  %s2667_s12 = sadd.s32 3, %s5413_s19 }
  0x6e   : > { %v635_v6 = vcombine.high %v4091_v32, %v4091_v32  ;;  %v618_v21 = vadd.f32 %v616_v13, %v611_v16  ;;  %v619_v23 = vadd.f32 %v617_v14, %v612_v18  ;;  %v642_v15 = vrot.slane %v4091_v32, %v4014_v43  ;;  %s6443_s27 = sld [smem:[#allocation4 + %s2415_s29]] }
  0x6f   : > { %6829 = vst [vmem:[#allocation17_spill] sm:$0xff] %v4273_v20  ;;  %6830 = vst [vmem:[#allocation18_spill] sm:$0xff] %v4275_v1  ;;  %v684_v9 = vcombine.high %v4093_v33, %v4093_v33  ;;  %v691_v17 = vrot.slane %v4093_v33, %v4014_v43  ;;  %v735_v28 = vcombine.high %v4164_v26, %v4164_v26  ;;  %s3243_s30 = sld [smem:[#allocation4 + %s2667_s12]] }
  0x70   : > { %v649_v22 = vrot.slane %v635_v6, %v4014_v43  ;;  %v742_v29 = vrot.slane %v4164_v26, %v4014_v43  ;;  %v625_v30 = vadd.f32 %v623_v19, %v618_v21  ;;  %v626_v31 = vadd.f32 %v624_v0, %v619_v23  ;;  %v848_v21 = vld [vmem:[%s4337_s13 + $0xd0] sm:$0xff]  ;;  %v849_v0 = vld [vmem:[%s4337_s13 + $0xe0] sm:$0xff] }
  0x71   : > { %v650_v34 = vcombine.high %v642_v15, %v642_v15  ;;  %v658_v35 = vrot.slane %v642_v15, %v4014_v43  ;;  %v698_v37 = vrot.slane %v684_v9, %v4014_v43  ;;  %v699_v38 = vcombine.high %v691_v17, %v691_v17 }
  0x72   : > { %v651_v32 = vcombine.high %v649_v22, %v649_v22  ;;  %v665_v36 = vrot.slane %v649_v22, %v4014_v43  ;;  %v4294_v42 = vadd.f32 %v629_v5, %v625_v30  ;;  %v4296_v33 = vadd.f32 %v629_v5, %v626_v31 }
  0x73   : > { %v672_v41 = vrot.slane %v650_v34, %v4014_v43  ;;  %v680_v44 = vcombine.high %v658_v35, %v658_v35  ;;  %v700_v46 = vcombine.high %v698_v37, %v698_v37  ;;  %v707_v47 = vrot.slane %v691_v17, %v4014_v43  ;;  %v835_v34 = vld [vmem:[%s4337_s13] sm:$0xff] }
  0x74   : > { %6831 = vst [vmem:[#allocation19_spill] sm:$0xff] %v4294_v42  ;;  %6832 = vst [vmem:[#allocation20_spill] sm:$0xff] %v4296_v33  ;;  %v679_v26 = vrot.slane %v651_v32, %v4014_v43  ;;  %v681_v45 = vcombine.high %v665_v36, %v665_v36  ;;  %v714_v49 = vrot.slane %v698_v37, %v4014_v43  ;;  %v837_v32 = vld [vmem:[%s4337_s13 + $0x20] sm:$0xff] }
  0x75   : > { %v682_v48 = vcombine.high %v672_v41, %v672_v41  ;;  %v721_v50 = vrot.slane %v699_v38, %v4014_v43  ;;  %v749_v55 = vrot.slane %v735_v28, %v4014_v43  ;;  %v728_v57 = vrot.slane %v700_v46, %v4014_v43  ;;  %v839_v46 = vld [vmem:[%s4337_s13 + $0x40] sm:$0xff] }
  0x76   : > { %v683_v56 = vcombine.high %v679_v26, %v679_v26  ;;  %v729_v58 = vcombine.high %v707_v47, %v707_v47  ;;  %v750_v61 = vcombine.high %v742_v29, %v742_v29  ;;  %v730_v62 = vcombine.high %v714_v49, %v714_v49 }
  0x77   : > { %v731_v63 = vcombine.high %v721_v50, %v721_v50  ;;  %v751_v2 = vcombine.high %v749_v55, %v749_v55  ;;  %v4306_v3 = vrot.slane %v742_v29, %v4014_v43  ;;  %v732_v4 = vcombine.high %v728_v57, %v728_v57 }
  0x78   : > { %v4310_v7 = vrot.slane %v749_v55, %v4014_v43  ;;  %v4313_v12 = vrot.slane %v750_v61, %v4014_v43  ;;  %v784_v13 = vcombine.high %v4166_v27, %v4166_v27  ;;  %v791_v18 = vrot.slane %v4166_v27, %v4014_v43  ;;  %v841_v61 = vld [vmem:[%s4337_s13 + $0x60] sm:$0xff] }
  0x79   : > { %v4318_v14 = vrot.slane %v751_v2, %v4014_v43  ;;  %v4325_v19 = vrot.slane %v658_v35, %v4006_v39  ;;  %v4340_v27 = vrot.slane %v672_v41, %v4006_v39  ;;  %v4348_v9 = vrot.slane %v680_v44, %v4006_v39  ;;  %v836_v35 = vld [vmem:[%s4337_s13 + $0x10] sm:$0xff] }
  0x7a   : > { %v798_v6 = vrot.slane %v784_v13, %v4014_v43  ;;  %v799_v23 = vcombine.high %v791_v18, %v791_v18  ;;  %v4345_v15 = vrot.slane %v791_v18, %v4014_v43  ;;  %v4354_v28 = vrot.slane %v682_v48, %v4006_v39  ;;  %v838_v44 = vld [vmem:[%s4337_s13 + $0x30] sm:$0xff]  ;;  %v843_v13 = vld [vmem:[%s4337_s13 + $0x80] sm:$0xff] }
  0x7b   : > { %6833 = vst [vmem:[#allocation21_spill] sm:$0xff] %v4325_v19  ;;  %6834 = vst [vmem:[#allocation22_spill] sm:$0xff] %v4340_v27  ;;  %v4357_v29 = vrot.slane %v665_v36, %v4006_v39  ;;  %v4368_v37 = vrot.slane %v679_v26, %v4006_v39  ;;  %v4371_v38 = vrot.slane %v681_v45, %v4006_v39  ;;  %v840_v48 = vld [vmem:[%s4337_s13 + $0x50] sm:$0xff] }
  0x7c   : > { %6835 = vst [vmem:[#allocation23_spill] sm:$0xff] %v4348_v9  ;;  %v800_v22 = vcombine.high %v798_v6, %v798_v6  ;;  %v4351_v17 = vrot.slane %v798_v6, %v4014_v43  ;;  %6836 = vst [vmem:[#allocation24_spill] sm:$0xff] %v4354_v28  ;;  %v4360_v30 = vrot.slane %v799_v23, %v4014_v43  ;;  %v842_v2 = vld [vmem:[%s4337_s13 + $0x70] sm:$0xff] }
  0x7d   : > { %6837 = vst [vmem:[#allocation25_spill] sm:$0xff] %v4357_v29  ;;  %6838 = vst [vmem:[#allocation26_spill] sm:$0xff] %v4368_v37  ;;  %v4382_v55 = vrot.slane %v683_v56, %v4006_v39  ;;  %v4385_v26 = vrot.slane %v707_v47, %v4006_v39  ;;  %v4393_v18 = vrot.slane %v721_v50, %v4006_v39  ;;  %v844_v23 = vld [vmem:[%s4337_s13 + $0x90] sm:$0xff] }
  0x7e   : > { %6839 = vst [vmem:[#allocation27_spill] sm:$0xff] %v4371_v38  ;;  %v4374_v36 = vrot.slane %v800_v22, %v4014_v43  ;;  %v4396_v6 = vrot.slane %v729_v58, %v4006_v39  ;;  %v4399_v56 = vrot.slane %v731_v63, %v4006_v39  ;;  %v845_v22 = vld [vmem:[%s4337_s13 + $0xa0] sm:$0xff]  ;;  %v846_v41 = vld [vmem:[%s4337_s13 + $0xb0] sm:$0xff]  ;;  %v4407_v45 = vrot.slane %v714_v49, %v4006_v39 }
  0x7f   : > { %6840 = vst [vmem:[#allocation28_spill] sm:$0xff] %v4382_v55  ;;  %6841 = vst [vmem:[#allocation29_spill] sm:$0xff] %v4385_v26  ;;  %v4410_v31 = vrot.slane %v728_v57, %v4006_v39  ;;  %v4413_v50 = vrot.slane %v730_v62, %v4006_v39  ;;  %v847_v58 = vld [vmem:[%s4337_s13 + $0xc0] sm:$0xff]  ;;  %v4419_v63 = vrot.slane %v732_v4, %v4006_v39  ;;  %v850_v49 = vld [vmem:[%s4337_s13 + $0xf0] sm:$0xff] }
  0x80   : > { %6842 = vst [vmem:[#allocation30_spill] sm:$0xff] %v4393_v18  ;;  %6843 = vst [vmem:[#allocation31_spill] sm:$0xff] %v4396_v6  ;;  %v948_v47 = vadd.f32 %v4325_v19, %v835_v34  ;;  %v949_v5 = vadd.f32 %v4340_v27, %v836_v35  ;;  %v950_v16 = vadd.f32 %v4348_v9, %v837_v32  ;;  %v867_v19 = vld [vmem:[%s4452_s8 + $0xf0] sm:$0xff] }
  0x81   : > { %6844 = vst [vmem:[#allocation32_spill] sm:$0xff] %v4399_v56  ;;  %6845 = vst [vmem:[#allocation33_spill] sm:$0xff] %v4407_v45  ;;  %v951_v33 = vadd.f32 %v4354_v28, %v838_v44  ;;  %v952_v57 = vadd.f32 %v4357_v29, %v839_v46  ;;  %v953_v62 = vadd.f32 %v4368_v37, %v840_v48  ;;  %v865_v37 = vld [vmem:[%s4452_s8 + $0xd0] sm:$0xff]  ;;  %v866_v29 = vld [vmem:[%s4452_s8 + $0xe0] sm:$0xff] }
  0x82   : > { %6846 = vst [vmem:[#allocation34_spill] sm:$0xff] %v4410_v31  ;;  %6847 = vst [vmem:[#allocation35_spill] sm:$0xff] %v4413_v50  ;;  %v954_v42 = vadd.f32 %v4371_v38, %v841_v61  ;;  %v955_v1 = vadd.f32 %v4382_v55, %v842_v2  ;;  %v956_v4 = vadd.f32 %v4385_v26, %v843_v13  ;;  %v864_v38 = vld [vmem:[%s4452_s8 + $0xc0] sm:$0xff] }
  0x83   : > { %6848 = vst [vmem:[#allocation36_spill] sm:$0xff] %v4419_v63  ;;  %v957_v34 = vadd.f32 %v4393_v18, %v844_v23  ;;  %v958_v35 = vadd.f32 %v4396_v6, %v845_v22  ;;  %v959_v32 = vadd.f32 %v4399_v56, %v846_v41  ;;  %v960_v20 = vadd.f32 %v4407_v45, %v847_v58  ;;  %v861_v56 = vld [vmem:[%s4452_s8 + $0x90] sm:$0xff]  ;;  %v862_v6 = vld [vmem:[%s4452_s8 + $0xa0] sm:$0xff] }
  0x84   : > { %v961_v44 = vadd.f32 %v4410_v31, %v848_v21  ;;  %v962_v46 = vadd.f32 %v4413_v50, %v849_v0  ;;  %v963_v48 = vadd.f32 %v4419_v63, %v850_v49  ;;  %v4439_v61 = vmul.f32 %v948_v47, %v4054_v8  ;;  %v852_v49 = vld [vmem:[%s4452_s8] sm:$0xff] }
  0x85   : > { %v4442_v2 = vmul.f32 %v949_v5, %v4054_v8  ;;  %v4445_v13 = vmul.f32 %v950_v16, %v4054_v8  ;;  %v4455_v0 = vmul.f32 %v951_v33, %v4054_v8  ;;  %v4458_v21 = vmul.f32 %v952_v57, %v4054_v8  ;;  %v853_v57 = vld [vmem:[%s4452_s8 + $0x10] sm:$0xff] }
  0x86   : > { %v4461_v5 = vmul.f32 %v953_v62, %v4054_v8  ;;  %v4464_v16 = vmul.f32 %v954_v42, %v4054_v8  ;;  %v4467_v41 = vmul.f32 %v955_v1, %v4054_v8  ;;  %v4470_v47 = vmul.f32 %v956_v4, %v4054_v8  ;;  %v854_v62 = vld [vmem:[%s4452_s8 + $0x20] sm:$0xff] }
  0x87   : > { %v4473_v33 = vmul.f32 %v957_v34, %v4054_v8  ;;  %v4476_v23 = vmul.f32 %v958_v35, %v4054_v8  ;;  %v4479_v22 = vmul.f32 %v959_v32, %v4054_v8  ;;  %v4482_v42 = vmul.f32 %v960_v20, %v4054_v8 }
  0x88   : > { %v4485_v1 = vmul.f32 %v961_v44, %v4054_v8  ;;  %v4488_v58 = vmul.f32 %v962_v46, %v4054_v8  ;;  %v979_v4 = vmul.f32 %v963_v48, %v4054_v8  ;;  %v4496_v34 = vrot.slane %v4306_v3, %v4006_v39  ;;  %v855_v44 = vld [vmem:[%s4452_s8 + $0x30] sm:$0xff]  ;;  %v856_v46 = vld [vmem:[%s4452_s8 + $0x40] sm:$0xff] }
  0x89   : > { %v4500_v20 = vrot.slane %v4313_v12, %v4006_v39  ;;  %v6851_v35 = vcombine.high %v4306_v3, %v4306_v3  ;;  %v857_v8 = vld [vmem:[%s4452_s8 + $0x50] sm:$0xff]  ;;  %v6853_v48 = vcombine.high %v4313_v12, %v4313_v12  ;;  %v4519_v53 = vrot.slane %v4310_v7, %v4006_v39 }
  0x8a   : > { %6849 = vst [vmem:[#allocation37_spill] sm:$0xff] %v4496_v34  ;;  %v4523_v3 = vrot.slane %v4318_v14, %v4006_v39  ;;  %v859_v12 = vld [vmem:[%s4452_s8 + $0x70] sm:$0xff]  ;;  %v6859_v63 = vcombine.high %v4318_v14, %v4318_v14  ;;  %v4542_v31 = vrot.slane %v4345_v15, %v4006_v39  ;;  %v4565_v26 = vrot.slane %v4351_v17, %v4006_v39 }
  0x8b   : > { %6850 = vst [vmem:[#allocation38_spill] sm:$0xff] %v4500_v20  ;;  %v4506_v32 = vrot.slane %v6851_v35, %v4006_v39  ;;  %v4515_v54 = vrot.slane %v6853_v48, %v4006_v39  ;;  %6855 = vst [vmem:[#allocation41_spill] sm:$0xff] %v4519_v53  ;;  %v6857_v35 = vcombine.high %v4310_v7, %v4310_v7  ;;  %v860_v48 = vld [vmem:[%s4452_s8 + $0x80] sm:$0xff]  ;;  %v863_v14 = vld [vmem:[%s4452_s8 + $0xb0] sm:$0xff] }
  0x8c   : > { %6856 = vst [vmem:[#allocation42_spill] sm:$0xff] %v4523_v3  ;;  %v4538_v50 = vrot.slane %v6859_v63, %v4006_v39  ;;  %6861 = vst [vmem:[#allocation45_spill] sm:$0xff] %v4542_v31  ;;  %v4546_v7 = vrot.slane %v4360_v30, %v4006_v39  ;;  %v6865_v63 = vcombine.high %v4360_v30, %v4360_v30 }
  0x8d   : > { %6852 = vst [vmem:[#allocation39_spill] sm:$0xff] %v4506_v32  ;;  %6854 = vst [vmem:[#allocation40_spill] sm:$0xff] %v4515_v54  ;;  %v4529_v11 = vrot.slane %v6857_v35, %v4006_v39  ;;  %v6863_v35 = vcombine.high %v4345_v15, %v4345_v15  ;;  %v4569_v55 = vrot.slane %v4374_v36, %v4006_v39 }
  0x8e   : > { %6860 = vst [vmem:[#allocation44_spill] sm:$0xff] %v4538_v50  ;;  %6862 = vst [vmem:[#allocation46_spill] sm:$0xff] %v4546_v7  ;;  %v4561_v18 = vrot.slane %v6865_v63, %v4006_v39  ;;  %v6869_v15 = vcombine.high %v4351_v17, %v4351_v17  ;;  %v6871_v30 = vcombine.high %v4374_v36, %v4374_v36 }
  0x8f   : > { %6858 = vst [vmem:[#allocation43_spill] sm:$0xff] %v4529_v11  ;;  %v4552_v45 = vrot.slane %v6863_v35, %v4006_v39  ;;  %6867 = vst [vmem:[#allocation49_spill] sm:$0xff] %v4565_v26  ;;  %v1060_v28 = vmul.f32 %v4496_v34, %v852_v49  ;;  %v1061_v9 = vmul.f32 %v4500_v20, %v853_v57 }
  0x90   : > { %6866 = vst [vmem:[#allocation48_spill] sm:$0xff] %v4561_v18  ;;  %6868 = vst [vmem:[#allocation50_spill] sm:$0xff] %v4569_v55  ;;  %v4575_v35 = vrot.slane %v6869_v15, %v4006_v39  ;;  %v4584_v63 = vrot.slane %v6871_v30, %v4006_v39  ;;  %v1062_v27 = vmul.f32 %v4506_v32, %v854_v62  ;;  %v3425_v32 = vld [vmem:[%s4337_s13 + $0x1e0] sm:$0xff] }
  0x91   : > { %6864 = vst [vmem:[#allocation47_spill] sm:$0xff] %v4552_v45  ;;  %v1063_v17 = vmul.f32 %v4515_v54, %v855_v44  ;;  %v1064_v15 = vmul.f32 %v4519_v53, %v856_v46  ;;  %v1065_v25 = vmul.f32 %v4523_v3, %v857_v8  ;;  %v1066_v24 = vmul.f32 %v4529_v11, %v858_v40  ;;  %v3422_v11 = vld [vmem:[%s4337_s13 + $0x1b0] sm:$0xff] }
  0x92   : > { %6870 = vst [vmem:[#allocation51_spill] sm:$0xff] %v4575_v35  ;;  %6872 = vst [vmem:[#allocation52_spill] sm:$0xff] %v4584_v63  ;;  %v1067_v10 = vmul.f32 %v4538_v50, %v859_v12  ;;  %v1068_v36 = vmul.f32 %v4542_v31, %v860_v48  ;;  %v1069_v30 = vmul.f32 %v4546_v7, %v861_v56  ;;  %v3418_v7 = vld [vmem:[%s4337_s13 + $0x170] sm:$0xff]  ;;  %v3419_v31 = vld [vmem:[%s4337_s13 + $0x180] sm:$0xff] }
  0x93   : > { %v1070_v49 = vmul.f32 %v4552_v45, %v862_v6  ;;  %v1071_v57 = vmul.f32 %v4561_v18, %v863_v14  ;;  %v1072_v62 = vmul.f32 %v4565_v26, %v864_v38  ;;  %v1073_v44 = vmul.f32 %v4569_v55, %v865_v37  ;;  %v3416_v55 = vld [vmem:[%s4337_s13 + $0x150] sm:$0xff]  ;;  %v3421_v50 = vld [vmem:[%s4337_s13 + $0x1a0] sm:$0xff] }
  0x94   : > { %v1074_v46 = vmul.f32 %v4575_v35, %v866_v29  ;;  %v1075_v8 = vmul.f32 %v4584_v63, %v867_v19  ;;  %v4604_v40 = vadd.f32 %v1060_v28, %v4439_v61  ;;  %v4607_v12 = vadd.f32 %v1061_v9, %v4442_v2  ;;  %v3414_v35 = vld [vmem:[%s4337_s13 + $0x130] sm:$0xff] }
  0x95   : > { %v4610_v56 = vadd.f32 %v1062_v27, %v4445_v13  ;;  %v4613_v6 = vadd.f32 %v1063_v17, %v4455_v0  ;;  %v4616_v38 = vadd.f32 %v1064_v15, %v4458_v21  ;;  %v4619_v37 = vadd.f32 %v1065_v25, %v4461_v5  ;;  %v3424_v54 = vld [vmem:[%s4337_s13 + $0x1d0] sm:$0xff] }
  0x96   : > { %v4622_v19 = vadd.f32 %v1066_v24, %v4464_v16  ;;  %v4625_v28 = vadd.f32 %v1067_v10, %v4467_v41  ;;  %v4628_v9 = vadd.f32 %v1068_v36, %v4470_v47  ;;  %v4631_v27 = vadd.f32 %v1069_v30, %v4473_v33 }
  0x97   : > { %6873 = vst [vmem:[#allocation53_spill] sm:$0xff] %v4619_v37  ;;  %v4634_v29 = vadd.f32 %v1070_v49, %v4476_v23  ;;  %v4637_v61 = vadd.f32 %v1071_v57, %v4479_v22  ;;  %v4640_v25 = vadd.f32 %v1072_v62, %v4482_v42  ;;  %v4643_v24 = vadd.f32 %v1073_v44, %v4485_v1 }
  0x98   : > { %6874 = vst [vmem:[#allocation54_spill] sm:$0xff] %v4622_v19  ;;  %6875 = vst [vmem:[#allocation55_spill] sm:$0xff] %v4625_v28  ;;  %v4646_v10 = vadd.f32 %v1074_v46, %v4488_v58  ;;  %v4648_v2 = vadd.f32 %v1075_v8, %v979_v4  ;;  %v1095_v13 = vcombine.high %v4130_v59, %v4130_v59 }
  0x99   : > { %6876 = vst [vmem:[#allocation56_spill] sm:$0xff] %v4628_v9  ;;  %6877 = vst [vmem:[#allocation57_spill] sm:$0xff] %v4631_v27  ;;  %v1102_v0 = vrot.slane %v4130_v59, %v4014_v43  ;;  %v1144_v21 = vcombine.high %v4132_v60, %v4132_v60  ;;  %v1151_v5 = vrot.slane %v4132_v60, %v4014_v43  ;;  %v3444_v9 = vld [vmem:[%s4452_s8 + $0x1f0] sm:$0xff] }
  0x9a   : > { %6878 = vst [vmem:[#allocation58_spill] sm:$0xff] %v4634_v29  ;;  %6879 = vst [vmem:[#allocation59_spill] sm:$0xff] %v4637_v61  ;;  %v1195_v16 = vcombine.high %v4200_v51, %v4200_v51  ;;  %v1202_v41 = vrot.slane %v4200_v51, %v4014_v43  ;;  %v1244_v47 = vcombine.high %v4202_v52, %v4202_v52 }
  0x9b   : > { %6880 = vst [vmem:[#allocation60_spill] sm:$0xff] %v4640_v25  ;;  %6881 = vst [vmem:[#allocation61_spill] sm:$0xff] %v4643_v24  ;;  %v1109_v33 = vrot.slane %v1095_v13, %v4014_v43  ;;  %v1110_v23 = vcombine.high %v1102_v0, %v1102_v0  ;;  %v1118_v59 = vrot.slane %v1102_v0, %v4014_v43  ;;  %v3443_v25 = vld [vmem:[%s4452_s8 + $0x1e0] sm:$0xff] }
  0x9c   : > { %6882 = vst [vmem:[#allocation62_spill] sm:$0xff] %v4646_v10  ;;  %6883 = vst [vmem:[#allocation63_spill] sm:$0xff] %v4648_v2  ;;  %v1158_v22 = vrot.slane %v1144_v21, %v4014_v43  ;;  %v1159_v42 = vcombine.high %v1151_v5, %v1151_v5  ;;  %v1167_v1 = vrot.slane %v1151_v5, %v4014_v43 }
  0x9d   : > { %v1209_v60 = vrot.slane %v1195_v16, %v4014_v43  ;;  %v1210_v58 = vcombine.high %v1202_v41, %v1202_v41  ;;  %v1111_v4 = vcombine.high %v1109_v33, %v1109_v33  ;;  %v1125_v48 = vrot.slane %v1109_v33, %v4014_v43 }
  0x9e   : > { %v1132_v51 = vrot.slane %v1110_v23, %v4014_v43  ;;  %v1140_v14 = vcombine.high %v1118_v59, %v1118_v59  ;;  %v1160_v17 = vcombine.high %v1158_v22, %v1158_v22  ;;  %v1174_v15 = vrot.slane %v1158_v22, %v4014_v43 }
  0x9f   : > { %v1181_v36 = vrot.slane %v1159_v42, %v4014_v43  ;;  %v1189_v30 = vcombine.high %v1167_v1, %v1167_v1  ;;  %v1139_v49 = vrot.slane %v1111_v4, %v4014_v43  ;;  %v1141_v57 = vcombine.high %v1125_v48, %v1125_v48 }
  0xa0   : > { %v1142_v62 = vcombine.high %v1132_v51, %v1132_v51  ;;  %v1211_v44 = vcombine.high %v1209_v60, %v1209_v60  ;;  %v1188_v46 = vrot.slane %v1160_v17, %v4014_v43  ;;  %v1190_v8 = vcombine.high %v1174_v15, %v1174_v15 }
  0xa1   : > { %v1191_v13 = vcombine.high %v1181_v36, %v1181_v36  ;;  %v4676_v0 = vrot.slane %v1202_v41, %v4014_v43  ;;  %v1143_v21 = vcombine.high %v1139_v49, %v1139_v49  ;;  %v4679_v5 = vrot.slane %v1209_v60, %v4014_v43 }
  0xa2   : > { %v4682_v16 = vrot.slane %v1210_v58, %v4014_v43  ;;  %v4685_v33 = vrot.slane %v1211_v44, %v4014_v43  ;;  %v1192_v23 = vcombine.high %v1188_v46, %v1188_v46  ;;  %v1251_v42 = vrot.slane %v4202_v52, %v4014_v43 }
  0xa3   : > { %v1258_v41 = vrot.slane %v1244_v47, %v4014_v43  ;;  %v4699_v17 = vrot.slane %v1118_v59, %v4006_v39  ;;  %v4708_v60 = vrot.slane %v1132_v51, %v4006_v39  ;;  %v4711_v58 = vrot.slane %v1140_v14, %v4006_v39 }
  0xa4   : > { %v1259_v44 = vcombine.high %v1251_v42, %v1251_v42  ;;  %v4702_v47 = vrot.slane %v1251_v42, %v4014_v43  ;;  %v4714_v59 = vrot.slane %v1142_v62, %v4006_v39  ;;  %v4717_v22 = vrot.slane %v1125_v48, %v4006_v39  ;;  %v3411_v62 = vld [vmem:[%s4337_s13 + $0x100] sm:$0xff] }
  0xa5   : > { %6884 = vst [vmem:[#allocation64_spill] sm:$0xff] %v4699_v17  ;;  %v1260_v52 = vcombine.high %v1258_v41, %v1258_v41  ;;  %v4705_v4 = vrot.slane %v1258_v41, %v4014_v43  ;;  %6885 = vst [vmem:[#allocation65_spill] sm:$0xff] %v4708_v60  ;;  %v3412_v41 = vld [vmem:[%s4337_s13 + $0x110] sm:$0xff]  ;;  %v3413_v48 = vld [vmem:[%s4337_s13 + $0x120] sm:$0xff]  ;;  %v4739_v26 = vrot.slane %v1141_v57, %v4006_v39 }
  0xa6   : > { %6886 = vst [vmem:[#allocation66_spill] sm:$0xff] %v4711_v58  ;;  %6887 = vst [vmem:[#allocation67_spill] sm:$0xff] %v4714_v59  ;;  %v4720_v63 = vrot.slane %v1259_v44, %v4014_v43  ;;  %v3415_v44 = vld [vmem:[%s4337_s13 + $0x140] sm:$0xff]  ;;  %v4742_v51 = vrot.slane %v1143_v21, %v4006_v39  ;;  %v4745_v14 = vrot.slane %v1167_v1, %v4006_v39  ;;  %v3420_v1 = vld [vmem:[%s4337_s13 + $0x190] sm:$0xff] }
  0xa7   : > { %6888 = vst [vmem:[#allocation68_spill] sm:$0xff] %v4717_v22  ;;  %v4723_v42 = vrot.slane %v1260_v52, %v4014_v43  ;;  %v4736_v52 = vrot.slane %v1139_v49, %v4006_v39  ;;  %6890 = vst [vmem:[#allocation70_spill] sm:$0xff] %v4739_v26  ;;  %v3417_v49 = vld [vmem:[%s4337_s13 + $0x160] sm:$0xff]  ;;  %v4755_v57 = vrot.slane %v1181_v36, %v4006_v39 }
  0xa8   : > { %6891 = vst [vmem:[#allocation71_spill] sm:$0xff] %v4742_v51  ;;  %6892 = vst [vmem:[#allocation72_spill] sm:$0xff] %v4745_v14  ;;  %v4758_v21 = vrot.slane %v1189_v30, %v4006_v39  ;;  %v4764_v3 = vrot.slane %v1191_v13, %v4006_v39  ;;  %v4767_v18 = vrot.slane %v1174_v15, %v4006_v39  ;;  %v3423_v36 = vld [vmem:[%s4337_s13 + $0x1c0] sm:$0xff]  ;;  %v3426_v15 = vld [vmem:[%s4337_s13 + $0x1f0] sm:$0xff] }
  0xa9   : > { %6889 = vst [vmem:[#allocation69_spill] sm:$0xff] %v4736_v52  ;;  %6893 = vst [vmem:[#allocation73_spill] sm:$0xff] %v4755_v57  ;;  %v4770_v45 = vrot.slane %v1188_v46, %v4006_v39  ;;  %v4773_v53 = vrot.slane %v1190_v8, %v4006_v39  ;;  %v4779_v30 = vrot.slane %v1192_v23, %v4006_v39 }
  0xaa   : > { %6894 = vst [vmem:[#allocation74_spill] sm:$0xff] %v4758_v21  ;;  %6895 = vst [vmem:[#allocation75_spill] sm:$0xff] %v4764_v3  ;;  %v1408_v20 = vadd.f32 %v3411_v62, %v4699_v17  ;;  %v1409_v13 = vadd.f32 %v3412_v41, %v4708_v60  ;;  %v1410_v34 = vadd.f32 %v3413_v48, %v4711_v58  ;;  %v3441_v60 = vld [vmem:[%s4452_s8 + $0x1c0] sm:$0xff]  ;;  %v3442_v17 = vld [vmem:[%s4452_s8 + $0x1d0] sm:$0xff] }
  0xab   : > { %6896 = vst [vmem:[#allocation76_spill] sm:$0xff] %v4767_v18  ;;  %6897 = vst [vmem:[#allocation77_spill] sm:$0xff] %v4770_v45  ;;  %v1411_v43 = vadd.f32 %v3414_v35, %v4714_v59  ;;  %v1412_v46 = vadd.f32 %v3415_v44, %v4717_v22  ;;  %v1413_v8 = vadd.f32 %v3416_v55, %v4736_v52  ;;  %v6900_v52 = vld [vmem:[#allocation11_spill] sm:$0xff] }
  0xac   : > { %6898 = vst [vmem:[#allocation78_spill] sm:$0xff] %v4773_v53  ;;  %6899 = vst [vmem:[#allocation79_spill] sm:$0xff] %v4779_v30  ;;  %v1414_v2 = vadd.f32 %v3417_v49, %v4739_v26  ;;  %v1415_v10 = vadd.f32 %v3418_v7, %v4742_v51  ;;  %v1416_v23 = vadd.f32 %v3419_v31, %v4745_v14  ;;  %v3438_v51 = vld [vmem:[%s4452_s8 + $0x190] sm:$0xff]  ;;  %v3439_v26 = vld [vmem:[%s4452_s8 + $0x1a0] sm:$0xff] }
  0xad   : > { %v1417_v24 = vadd.f32 %v3420_v1, %v4755_v57  ;;  %v1418_v62 = vadd.f32 %v3421_v50, %v4758_v21  ;;  %v1419_v41 = vadd.f32 %v3422_v11, %v4764_v3  ;;  %v1420_v48 = vadd.f32 %v3423_v36, %v4767_v18  ;;  %v3435_v18 = vld [vmem:[%s4452_s8 + $0x160] sm:$0xff] }
  0xae   : > { %v1421_v35 = vadd.f32 %v3424_v54, %v4770_v45  ;;  %v1422_v44 = vadd.f32 %v3425_v32, %v4773_v53  ;;  %v1423_v55 = vadd.f32 %v3426_v15, %v4779_v30  ;;  %v4799_v49 = vmul.f32 %v1408_v20, %v6900_v52  ;;  %v3429_v15 = vld [vmem:[%s4452_s8 + $0x100] sm:$0xff] }
  0xaf   : > { %v4802_v31 = vmul.f32 %v1409_v13, %v6900_v52  ;;  %v4805_v50 = vmul.f32 %v1410_v34, %v6900_v52  ;;  %v4808_v11 = vmul.f32 %v1411_v43, %v6900_v52  ;;  %v4811_v54 = vmul.f32 %v1412_v46, %v6900_v52  ;;  %v3431_v46 = vld [vmem:[%s4452_s8 + $0x120] sm:$0xff] }
  0xb0   : > { %v4814_v32 = vmul.f32 %v1413_v8, %v6900_v52  ;;  %v4817_v20 = vmul.f32 %v1414_v2, %v6900_v52  ;;  %v4820_v7 = vmul.f32 %v1415_v10, %v6900_v52  ;;  %v4823_v34 = vmul.f32 %v1416_v23, %v6900_v52 }
  0xb1   : > { %v4826_v43 = vmul.f32 %v1417_v24, %v6900_v52  ;;  %v4829_v1 = vmul.f32 %v1418_v62, %v6900_v52  ;;  %v4832_v36 = vmul.f32 %v1419_v41, %v6900_v52  ;;  %v4835_v2 = vmul.f32 %v1420_v48, %v6900_v52  ;;  %v3430_v24 = vld [vmem:[%s4452_s8 + $0x110] sm:$0xff] }
  0xb2   : > { %v4838_v10 = vmul.f32 %v1421_v35, %v6900_v52  ;;  %v4841_v13 = vmul.f32 %v1422_v44, %v6900_v52  ;;  %v1439_v8 = vmul.f32 %v1423_v55, %v6900_v52  ;;  %v4849_v23 = vrot.slane %v4676_v0, %v4006_v39  ;;  %v3432_v35 = vld [vmem:[%s4452_s8 + $0x130] sm:$0xff]  ;;  %v3433_v44 = vld [vmem:[%s4452_s8 + $0x140] sm:$0xff] }
  0xb3   : > { %v4853_v62 = vrot.slane %v4682_v16, %v4006_v39  ;;  %v6901_v41 = vcombine.high %v4676_v0, %v4676_v0  ;;  %v3434_v52 = vld [vmem:[%s4452_s8 + $0x150] sm:$0xff]  ;;  %v6902_v55 = vcombine.high %v4682_v16, %v4682_v16  ;;  %v4872_v53 = vrot.slane %v4679_v5, %v4006_v39 }
  0xb4   : > { %v4876_v0 = vrot.slane %v4685_v33, %v4006_v39  ;;  %v3436_v16 = vld [vmem:[%s4452_s8 + $0x170] sm:$0xff]  ;;  %v6904_v3 = vcombine.high %v4685_v33, %v4685_v33  ;;  %v4895_v57 = vrot.slane %v4702_v47, %v4006_v39  ;;  %v4918_v59 = vrot.slane %v4705_v4, %v4006_v39 }
  0xb5   : > { %v4859_v48 = vrot.slane %v6901_v41, %v4006_v39  ;;  %v4868_v30 = vrot.slane %v6902_v55, %v4006_v39  ;;  %v6903_v41 = vcombine.high %v4679_v5, %v4679_v5  ;;  %v3437_v55 = vld [vmem:[%s4452_s8 + $0x180] sm:$0xff]  ;;  %v4899_v5 = vrot.slane %v4720_v63, %v4006_v39  ;;  %v3440_v33 = vld [vmem:[%s4452_s8 + $0x1b0] sm:$0xff] }
  0xb6   : > { %v4891_v21 = vrot.slane %v6904_v3, %v4006_v39  ;;  %6906 = vst [vmem:[#allocation80_spill] sm:$0xff] %v4895_v57  ;;  %v6910_v3 = vcombine.high %v4720_v63, %v4720_v63  ;;  %6912 = vst [vmem:[#allocation84_spill] sm:$0xff] %v4918_v59  ;;  %v4922_v58 = vrot.slane %v4723_v42, %v4006_v39 }
  0xb7   : > { %v4882_v45 = vrot.slane %v6903_v41, %v4006_v39  ;;  %6907 = vst [vmem:[#allocation81_spill] sm:$0xff] %v4899_v5  ;;  %v6908_v41 = vcombine.high %v4702_v47, %v4702_v47  ;;  %v6914_v47 = vcombine.high %v4705_v4, %v4705_v4  ;;  %v6916_v63 = vcombine.high %v4723_v42, %v4723_v42 }
  0xb8   : > { %6905 = vst [vmem:[#allocation11_spill] sm:$0xff] %v4891_v21  ;;  %v4914_v22 = vrot.slane %v6910_v3, %v4006_v39  ;;  %6913 = vst [vmem:[#allocation85_spill] sm:$0xff] %v4922_v58  ;;  %v1520_v61 = vmul.f32 %v3429_v15, %v4849_v23  ;;  %v1521_v29 = vmul.f32 %v3430_v24, %v4853_v62 }
  0xb9   : > { %v4905_v14 = vrot.slane %v6908_v41, %v4006_v39  ;;  %v4928_v41 = vrot.slane %v6914_v47, %v4006_v39  ;;  %v4937_v3 = vrot.slane %v6916_v63, %v4006_v39  ;;  %v1522_v27 = vmul.f32 %v3431_v46, %v4859_v48 }
  0xba   : > { %6911 = vst [vmem:[#allocation83_spill] sm:$0xff] %v4914_v22  ;;  %v1523_v4 = vmul.f32 %v3432_v35, %v4868_v30  ;;  %v1524_v47 = vmul.f32 %v3433_v44, %v4872_v53  ;;  %v1525_v28 = vmul.f32 %v3434_v52, %v4876_v0  ;;  %v1526_v19 = vmul.f32 %v3435_v18, %v4882_v45 }
  0xbb   : > { %6909 = vst [vmem:[#allocation82_spill] sm:$0xff] %v4905_v14  ;;  %6915 = vst [vmem:[#allocation86_spill] sm:$0xff] %v4928_v41  ;;  %v1527_v37 = vmul.f32 %v3436_v16, %v4891_v21  ;;  %v1528_v42 = vmul.f32 %v3437_v55, %v4895_v57  ;;  %v1529_v63 = vmul.f32 %v3438_v51, %v4899_v5 }
  0xbc   : > { %6917 = vst [vmem:[#allocation87_spill] sm:$0xff] %v4937_v3  ;;  %v1530_v15 = vmul.f32 %v3439_v26, %v4905_v14  ;;  %v1531_v24 = vmul.f32 %v3440_v33, %v4914_v22  ;;  %v1532_v46 = vmul.f32 %v3441_v60, %v4918_v59  ;;  %v1533_v35 = vmul.f32 %v3442_v17, %v4922_v58  ;;  %v6984_v59 = vld [vmem:[#allocation41_spill] sm:$0xff]  ;;  %v6987_v14 = vld [vmem:[#allocation44_spill] sm:$0xff] }
  0xbd   : > { %v1534_v44 = vmul.f32 %v3443_v25, %v4928_v41  ;;  %v1535_v52 = vmul.f32 %v3444_v9, %v4937_v3  ;;  %v1536_v18 = vadd.f32 %v1520_v61, %v4799_v49  ;;  %v1537_v16 = vadd.f32 %v1521_v29, %v4802_v31  ;;  %v6982_v41 = vld [vmem:[#allocation40_spill] sm:$0xff] }
  0xbe   : > { %v1538_v55 = vadd.f32 %v1522_v27, %v4805_v50  ;;  %v1539_v51 = vadd.f32 %v1523_v4, %v4808_v11  ;;  %v1540_v26 = vadd.f32 %v1524_v47, %v4811_v54  ;;  %v1541_v33 = vadd.f32 %v1525_v28, %v4814_v32  ;;  %v6918_v32 = vld [vmem:[#allocation53_spill] sm:$0xff] }
  0xbf   : > { %v1542_v60 = vadd.f32 %v1526_v19, %v4817_v20  ;;  %v1543_v17 = vadd.f32 %v1527_v37, %v4820_v7  ;;  %v1544_v25 = vadd.f32 %v1528_v42, %v4823_v34  ;;  %v1545_v9 = vadd.f32 %v1529_v63, %v4826_v43  ;;  %v6919_v7 = vld [vmem:[#allocation54_spill] sm:$0xff]  ;;  %v6920_v43 = vld [vmem:[#allocation55_spill] sm:$0xff]  ;;  %v6926_v4 = vld [vmem:[#allocation61_spill] sm:$0xff] }
  0xc0   : > { %v1546_v61 = vadd.f32 %v1530_v15, %v4829_v1  ;;  %v1547_v29 = vadd.f32 %v1531_v24, %v4832_v36  ;;  %v1548_v27 = vadd.f32 %v1532_v46, %v4835_v2  ;;  %v1549_v49 = vadd.f32 %v1533_v35, %v4838_v10  ;;  %v6927_v42 = vld [vmem:[#allocation62_spill] sm:$0xff]  ;;  %v6928_v35 = vld [vmem:[#allocation63_spill] sm:$0xff] }
  0xc1   : > { %v1550_v31 = vadd.f32 %v1534_v44, %v4841_v13  ;;  %v1551_v50 = vadd.f32 %v1535_v52, %v1439_v8  ;;  %v1552_v28 = vadd.f32 %v1536_v18, %v4604_v40  ;;  %v1553_v19 = vadd.f32 %v1537_v16, %v4607_v12  ;;  %v6921_v40 = vld [vmem:[#allocation56_spill] sm:$0xff]  ;;  %v6922_v12 = vld [vmem:[#allocation57_spill] sm:$0xff] }
  0xc2   : > { %v1554_v37 = vadd.f32 %v1538_v55, %v4610_v56  ;;  %v4975_v11 = vadd.f32 %v1539_v51, %v4613_v6  ;;  %v4978_v54 = vadd.f32 %v1540_v26, %v4616_v38  ;;  %v4981_v20 = vadd.f32 %v1541_v33, %v6918_v32  ;;  %v6923_v6 = vld [vmem:[#allocation58_spill] sm:$0xff]  ;;  %v6924_v38 = vld [vmem:[#allocation59_spill] sm:$0xff]  ;;  %v6925_v13 = vld [vmem:[#allocation60_spill] sm:$0xff] }
  0xc3   : > { %v4984_v34 = vadd.f32 %v1542_v60, %v6919_v7  ;;  %v4987_v1 = vadd.f32 %v1543_v17, %v6920_v43  ;;  %v4990_v36 = vadd.f32 %v1544_v25, %v6921_v40  ;;  %v4993_v56 = vadd.f32 %v1545_v9, %v6922_v12  ;;  %v6929_v18 = vld [vmem:[#allocation13_spill] sm:$0xff]  ;;  %v6930_v55 = vld [vmem:[#allocation14_spill] sm:$0xff] }
  0xc4   : > { %v4996_v2 = vadd.f32 %v1546_v61, %v6923_v6  ;;  %v4999_v10 = vadd.f32 %v1547_v29, %v6924_v38  ;;  %v5002_v8 = vadd.f32 %v1548_v27, %v6925_v13  ;;  %v5005_v47 = vadd.f32 %v1549_v49, %v6926_v4  ;;  %v6931_v17 = vld [vmem:[#allocation10_spill] sm:$0xff] }
  0xc5   : > { %v5008_v63 = vadd.f32 %v1550_v31, %v6927_v42  ;;  %v1568_v15 = vmax.f32 %v1552_v28, %v4978_v54  ;;  %v1569_v24 = vmax.f32 %v1553_v19, %v4981_v20  ;;  %v1570_v46 = vmax.f32 %v1554_v37, %v4984_v34 }
  0xc6   : > { %v5014_v44 = vadd.f32 %v1551_v50, %v6928_v35  ;;  %v1571_v52 = vmax.f32 %v4975_v11, %v4987_v1  ;;  %v1668_v16 = vcombine.high %v6929_v18, %v6929_v18  ;;  %v1717_v51 = vcombine.high %v6930_v55, %v6930_v55 }
  0xc7   : > { %v1572_v26 = vmax.f32 %v1568_v15, %v4990_v36  ;;  %v1573_v33 = vmax.f32 %v1569_v24, %v4993_v56  ;;  %v1574_v60 = vmax.f32 %v1570_v46, %v4996_v2  ;;  %v1675_v25 = vrot.slane %v6929_v18, %v6931_v17 }
  0xc8   : > { %v1575_v9 = vmax.f32 %v1571_v52, %v4999_v10  ;;  %v1682_v61 = vrot.slane %v1668_v16, %v6931_v17  ;;  %v1724_v50 = vrot.slane %v6930_v55, %v6931_v17  ;;  %v1731_v32 = vrot.slane %v1717_v51, %v6931_v17 }
  0xc9   : > { %v1576_v29 = vmax.f32 %v1572_v26, %v5002_v8  ;;  %v1577_v27 = vmax.f32 %v1573_v33, %v5005_v47  ;;  %v1578_v49 = vmax.f32 %v1574_v60, %v5008_v63  ;;  %v1683_v43 = vcombine.high %v1675_v25, %v1675_v25 }
  0xca   : > { %v1579_v31 = vmax.f32 %v1575_v9, %v5014_v44  ;;  %v1691_v40 = vrot.slane %v1675_v25, %v6931_v17  ;;  %v1684_v6 = vcombine.high %v1682_v61, %v1682_v61  ;;  %v1732_v13 = vcombine.high %v1724_v50, %v1724_v50 }
  0xcb   : > { %v1580_v7 = vmax.f32 %v1576_v29, %v1577_v27  ;;  %v1733_v4 = vcombine.high %v1731_v32, %v1731_v32  ;;  %v5040_v42 = vrot.slane %v1682_v61, %v6931_v17  ;;  %v1705_v15 = vrot.slane %v1683_v43, %v6931_v17 }
  0xcc   : > { %v1581_v12 = vmax.f32 %v1578_v49, %v1579_v31  ;;  %v1713_v24 = vcombine.high %v1691_v40, %v1691_v40  ;;  %v5047_v18 = vrot.slane %v1684_v6, %v6931_v17  ;;  %v5054_v26 = vrot.slane %v1724_v50, %v6931_v17 }
  0xcd   : > { %v1714_v55 = vcombine.high %v5040_v42, %v5040_v42  ;;  %v1715_v51 = vcombine.high %v1705_v15, %v1705_v15  ;;  %v5063_v33 = vrot.slane %v1733_v4, %v6931_v17  ;;  %v5070_v25 = vrot.slane %v1691_v40, %v4006_v39 }
  0xce   : > { %v5037_v38 = vmax.f32 %v1580_v7, %v1581_v12  ;;  %v1716_v60 = vcombine.high %v5047_v18, %v5047_v18  ;;  %v5073_v9 = vrot.slane %v1705_v15, %v4006_v39 }
  0xcf   : > { %6932 = vst [vmem:[#allocation53_spill] sm:$0xff] %v5070_v25 }
  0xd0   : > { %v1583_v46 = vsub.f32 %v1552_v28, %v5037_v38  ;;  %v1584_v35 = vsub.f32 %v1553_v19, %v5037_v38  ;;  %v1585_v52 = vsub.f32 %v1554_v37, %v5037_v38  ;;  %v1586_v16 = vsub.f32 %v4975_v11, %v5037_v38  ;;  %6933 = vst [vmem:[#allocation54_spill] sm:$0xff] %v5073_v9 }
  0xd1   : > { %v1587_v28 = vsub.f32 %v4978_v54, %v5037_v38  ;;  %v5059_v19 = vrot.slane %v1731_v32, %v6931_v17  ;;  %v1754_v37 = vrot.slane %v1732_v13, %v6931_v17  ;;  %v1588_v11 = vsub.f32 %v4981_v20, %v5037_v38 }
  0xd2   : > { %v1589_v54 = vsub.f32 %v4984_v34, %v5037_v38  ;;  %v1599_v61 = vmul.f32 1.442695, %v1583_v46  ;;  %v1601_v29 = vmul.f32 1.442695, %v1584_v35  ;;  %v1603_v27 = vmul.f32 1.442695, %v1585_v52 }
  0xd3   : > { %v1590_v49 = vsub.f32 %v4987_v1, %v5037_v38  ;;  %v1605_v31 = vmul.f32 1.442695, %v1586_v16  ;;  %v1762_v20 = vcombine.high %v5054_v26, %v5054_v26  ;;  %v1763_v50 = vcombine.high %v5059_v19, %v5059_v19 }
  0xd4   : > { %v1591_v32 = vsub.f32 %v4990_v36, %v5037_v38  ;;  %v1592_v34 = vsub.f32 %v4993_v56, %v5037_v38  ;;  %3673 = vpow2.f32 %v1599_v61  ;;  %v1607_v7 = vmul.f32 1.442695, %v1587_v28  ;;  %v1771_v61 = vld [vmem:[%s5111_s9 + $0x20] sm:$0xff] }
  0xd5   : > { %v1593_v43 = vsub.f32 %v4996_v2, %v5037_v38  ;;  %v1594_v1 = vsub.f32 %v4999_v10, %v5037_v38  ;;  %3675 = vpow2.f32 %v1601_v29  ;;  %v1609_v40 = vmul.f32 1.442695, %v1588_v11  ;;  %v1769_v11 = vld [vmem:[%s5111_s9] sm:$0xff] }
  0xd6   : > { %v1595_v12 = vsub.f32 %v5002_v8, %v5037_v38  ;;  %v1596_v36 = vsub.f32 %v5005_v47, %v5037_v38  ;;  %3677 = vpow2.f32 %v1603_v27  ;;  %v1611_v6 = vmul.f32 1.442695, %v1589_v54  ;;  %v1770_v54 = vld [vmem:[%s5111_s9 + $0x10] sm:$0xff] }
  0xd7   : > { %v1597_v56 = vsub.f32 %v5008_v63, %v5037_v38  ;;  %v1598_v13 = vsub.f32 %v5014_v44, %v5037_v38  ;;  %3679 = vpow2.f32 %v1605_v31  ;;  %v1613_v2 = vmul.f32 1.442695, %v1590_v49  ;;  %v2673_v49 = vld [vmem:[%s4337_s13 + $0x8] sm:$0xff] }
  0xd8   : > { %3681 = vpow2.f32 %v1607_v7  ;;  %v1615_v10 = vmul.f32 1.442695, %v1591_v32  ;;  %v1764_v4 = vcombine.high %v1754_v37, %v1754_v37  ;;  %v1765_v8 = vcombine.high %v5063_v33, %v5063_v33  ;;  %v2675_v31 = vld [vmem:[%s4337_s13 + $0x28] sm:$0xff]  ;;  %v2678_v7 = vld [vmem:[%s4337_s13 + $0x58] sm:$0xff] }
  0xd9   : > { %3683 = vpow2.f32 %v1609_v40  ;;  %v1617_v15 = vmul.f32 1.442695, %v1592_v34  ;;  %v5103_v47 = vrot.slane %v1713_v24, %v4006_v39  ;;  %v5106_v46 = vrot.slane %v1715_v51, %v4006_v39  ;;  %v2677_v34 = vld [vmem:[%s4337_s13 + $0x48] sm:$0xff]  ;;  %v2680_v40 = vld [vmem:[%s4337_s13 + $0x78] sm:$0xff] }
  0xda   : > { %3685 = vpow2.f32 %v1611_v6  ;;  %v1619_v63 = vmul.f32 1.442695, %v1593_v43  ;;  %v1621_v44 = vmul.f32 1.442695, %v1594_v1  ;;  %v1623_v38 = vmul.f32 1.442695, %v1595_v12 }
  0xdb   : > { %6934 = vst [vmem:[#allocation55_spill] sm:$0xff] %v5103_v47  ;;  %6935 = vst [vmem:[#allocation56_spill] sm:$0xff] %v5106_v46  ;;  %3687 = vpow2.f32 %v1613_v2  ;;  %v1625_v35 = vmul.f32 1.442695, %v1596_v36  ;;  %v1627_v52 = vmul.f32 1.442695, %v1597_v56  ;;  %v5115_v16 = vrot.slane %v5040_v42, %v4006_v39 }
  0xdc   : > { %v1629_v24 = vmul.f32 1.442695, %v1598_v13  ;;  %3689 = vpow2.f32 %v1615_v10  ;;  %v5119_v51 = vrot.slane %v5047_v18, %v4006_v39  ;;  %v5122_v28 = vrot.slane %v1714_v55, %v4006_v39  ;;  %v2681_v12 = vld [vmem:[%s4337_s13 + $0x88] sm:$0xff]  ;;  %v2682_v6 = vld [vmem:[%s4337_s13 + $0x98] sm:$0xff] }
  0xdd   : > { %6936 = vst [vmem:[#allocation57_spill] sm:$0xff] %v5115_v16  ;;  %3691 = vpow2.f32 %v1617_v15  ;;  %v5128_v29 = vrot.slane %v1716_v60, %v4006_v39  ;;  %v5132_v42 = vrot.slane %v5054_v26, %v4006_v39  ;;  %v5135_v18 = vrot.slane %v1754_v37, %v4006_v39  ;;  %v2674_v26 = vld [vmem:[%s4337_s13 + $0x18] sm:$0xff]  ;;  %v2683_v56 = vld [vmem:[%s4337_s13 + $0xa8] sm:$0xff] }
  0xde   : > { %6937 = vst [vmem:[#allocation58_spill] sm:$0xff] %v5119_v51  ;;  %6938 = vst [vmem:[#allocation59_spill] sm:$0xff] %v5122_v28  ;;  %3693 = vpow2.f32 %v1619_v63  ;;  %v5138_v55 = vrot.slane %v1762_v20, %v4006_v39  ;;  %v5141_v27 = vrot.slane %v1764_v4, %v4006_v39  ;;  %v5145_v60 = vrot.slane %v5059_v19, %v4006_v39  ;;  %v2676_v19 = vld [vmem:[%s4337_s13 + $0x38] sm:$0xff]  ;;  %v6952_v2 = vld [vmem:[#allocation21_spill] sm:$0xff] }
  0xdf   : > { %6939 = vst [vmem:[#allocation60_spill] sm:$0xff] %v5128_v29  ;;  %6940 = vst [vmem:[#allocation61_spill] sm:$0xff] %v5132_v42  ;;  %3695 = vpow2.f32 %v1621_v44  ;;  %v5152_v37 = vrot.slane %v5063_v33, %v4006_v39  ;;  %v5155_v20 = vrot.slane %v1763_v50, %v4006_v39  ;;  %v5158_v32 = vrot.slane %v1765_v8, %v4006_v39  ;;  %v2679_v50 = vld [vmem:[%s4337_s13 + $0x68] sm:$0xff]  ;;  %v2684_v13 = vld [vmem:[%s4337_s13 + $0xb8] sm:$0xff] }
  0xe0   : > { %6941 = vst [vmem:[#allocation62_spill] sm:$0xff] %v5135_v18  ;;  %6942 = vst [vmem:[#allocation63_spill] sm:$0xff] %v5138_v55  ;;  %3697 = vpow2.f32 %v1623_v38  ;;  %v5164_v43 = vadd.f32 %v5070_v25, %v1769_v11  ;;  %v5167_v1 = vadd.f32 %v5073_v9, %v1770_v54  ;;  %v5170_v33 = vadd.f32 %v5103_v47, %v1771_v61  ;;  %v6953_v4 = vld [vmem:[#allocation22_spill] sm:$0xff]  ;;  %v6954_v15 = vld [vmem:[#allocation23_spill] sm:$0xff] }
  0xe1   : > { %6943 = vst [vmem:[#allocation13_spill] sm:$0xff] %v5141_v27  ;;  %6944 = vst [vmem:[#allocation14_spill] sm:$0xff] %v5145_v60  ;;  %v5175_v36 = vpop.eup %3673  ;;  %3699 = vpow2.f32 %v1625_v35  ;;  %v2705_v10 = vadd.f32 %v2673_v49, %v6952_v2  ;;  %v2706_v8 = vadd.f32 %v2674_v26, %v6953_v4  ;;  %v2707_v63 = vadd.f32 %v2675_v31, %v6954_v15  ;;  %v2685_v38 = vld [vmem:[%s4337_s13 + $0xc8] sm:$0xff]  ;;  %v2686_v11 = vld [vmem:[%s4337_s13 + $0xd8] sm:$0xff] }
  0xe2   : > { %6945 = vst [vmem:[#allocation88_spill] sm:$0xff] %v5152_v37  ;;  %6946 = vst [vmem:[#allocation89_spill] sm:$0xff] %v5155_v20  ;;  %v5183_v44 = vpop.eup %3675  ;;  %3701 = vpow2.f32 %v1627_v52  ;;  %v2687_v54 = vld [vmem:[%s4337_s13 + $0xe8] sm:$0xff]  ;;  %v6956_v61 = vld [vmem:[#allocation24_spill] sm:$0xff] }
  0xe3   : > { %6947 = vst [vmem:[#allocation90_spill] sm:$0xff] %v5158_v32  ;;  %6948 = vst [vmem:[#allocation91_spill] sm:$0xff] %v5164_v43  ;;  %v2708_v39 = vadd.f32 %v2676_v19, %v6956_v61  ;;  %v5191_v17 = vpop.eup %3677  ;;  %3703 = vpow2.f32 %v1629_v24  ;;  %v1631_v49 = vadd.f32 %v5183_v44, %v5175_v36  ;;  %v2688_v26 = vld [vmem:[%s4337_s13 + $0xf8] sm:$0xff]  ;;  %v6961_v4 = vld [vmem:[#allocation28_spill] sm:$0xff] }
  0xe4   : > { %6949 = vst [vmem:[#allocation92_spill] sm:$0xff] %v5167_v1  ;;  %6950 = vst [vmem:[#allocation93_spill] sm:$0xff] %v5170_v33  ;;  %v6957_v33 = vld [vmem:[#allocation25_spill] sm:$0xff]  ;;  %v6958_v1 = vld [vmem:[#allocation26_spill] sm:$0xff]  ;;  %v2712_v52 = vadd.f32 %v2680_v40, %v6961_v4  ;;  %v5198_v15 = vpop.eup %3679 }
  0xe5   : > { %6951 = vst [vmem:[#allocation94_spill] sm:$0xff] %v5175_v36  ;;  %6955 = vst [vmem:[#allocation21_spill] sm:$0xff] %v5183_v44  ;;  %v2709_v35 = vadd.f32 %v2677_v34, %v6957_v33  ;;  %v2710_v43 = vadd.f32 %v2678_v7, %v6958_v1  ;;  %v6960_v31 = vld [vmem:[#allocation27_spill] sm:$0xff]  ;;  %v6963_v47 = vld [vmem:[#allocation29_spill] sm:$0xff]  ;;  %v5204_v61 = vpop.eup %3681  ;;  %v1632_v44 = vadd.f32 %v5191_v17, %v1631_v49 }
  0xe6   : > { %6959 = vst [vmem:[#allocation22_spill] sm:$0xff] %v5191_v17  ;;  %v2711_v2 = vadd.f32 %v2679_v50, %v6960_v31  ;;  %6962 = vst [vmem:[#allocation23_spill] sm:$0xff] %v5198_v15  ;;  %v2713_v9 = vadd.f32 %v2681_v12, %v6963_v47  ;;  %v6964_v19 = vld [vmem:[#allocation30_spill] sm:$0xff]  ;;  %v6965_v33 = vld [vmem:[#allocation31_spill] sm:$0xff]  ;;  %v5210_v12 = vpop.eup %3683 }
  0xe7   : > { %v2714_v34 = vadd.f32 %v2682_v6, %v6964_v19  ;;  %v2715_v7 = vadd.f32 %v2683_v56, %v6965_v33  ;;  %v6966_v1 = vld [vmem:[#allocation32_spill] sm:$0xff]  ;;  %6967 = vst [vmem:[#allocation24_spill] sm:$0xff] %v5204_v61  ;;  %v6968_v50 = vld [vmem:[#allocation33_spill] sm:$0xff]  ;;  %v6969_v40 = vld [vmem:[#allocation34_spill] sm:$0xff]  ;;  %v5218_v49 = vpop.eup %3685 }
  0xe8   : > { %v2716_v24 = vadd.f32 %v2684_v13, %v6966_v1  ;;  %v2717_v31 = vadd.f32 %v2685_v38, %v6968_v50  ;;  %v2718_v4 = vadd.f32 %v2686_v11, %v6969_v40  ;;  %v6970_v36 = vld [vmem:[#allocation35_spill] sm:$0xff]  ;;  %6971 = vst [vmem:[#allocation25_spill] sm:$0xff] %v5210_v12  ;;  %v6972_v6 = vld [vmem:[#allocation36_spill] sm:$0xff]  ;;  %v6973_v19 = vld [vmem:[#allocation9_spill] sm:$0xff]  ;;  %v1633_v38 = vadd.f32 %v5198_v15, %v1632_v44 }
  0xe9   : > { %v2719_v47 = vadd.f32 %v2687_v54, %v6970_v36  ;;  %v2720_v56 = vadd.f32 %v2688_v26, %v6972_v6  ;;  %v2721_v33 = vmul.f32 %v2705_v10, %v6973_v19  ;;  %v2722_v13 = vmul.f32 %v2706_v8, %v6973_v19  ;;  %6974 = vst [vmem:[#allocation26_spill] sm:$0xff] %v5218_v49  ;;  %v2689_v11 = vld [vmem:[%s4452_s8 + $0x8] sm:$0xff]  ;;  %v2690_v36 = vld [vmem:[%s4452_s8 + $0x18] sm:$0xff]  ;;  %v5227_v8 = vpop.eup %3687  ;;  %v6980_v51 = vld [vmem:[#allocation38_spill] sm:$0xff] }
  0xea   : > { %v5216_v1 = vmul.f32 %v2707_v63, %v6973_v19  ;;  %v2691_v54 = vld [vmem:[%s4452_s8 + $0x28] sm:$0xff]  ;;  %v2724_v50 = vmul.f32 %v2708_v39, %v6973_v19  ;;  %v2725_v26 = vmul.f32 %v2709_v35, %v6973_v19  ;;  %v2726_v10 = vmul.f32 %v2710_v43, %v6973_v19  ;;  %6975 = vst [vmem:[#allocation27_spill] sm:$0xff] %v5227_v8  ;;  %v2692_v63 = vld [vmem:[%s4452_s8 + $0x38] sm:$0xff]  ;;  %v5236_v25 = vpop.eup %3689 }
  0xeb   : > { %v2693_v40 = vld [vmem:[%s4452_s8 + $0x48] sm:$0xff]  ;;  %v2694_v6 = vld [vmem:[%s4452_s8 + $0x58] sm:$0xff]  ;;  %v2727_v44 = vmul.f32 %v2711_v2, %v6973_v19  ;;  %v2728_v15 = vmul.f32 %v2712_v52, %v6973_v19  ;;  %v2729_v17 = vmul.f32 %v2713_v9, %v6973_v19  ;;  %v2730_v39 = vmul.f32 %v2714_v34, %v6973_v19  ;;  %6976 = vst [vmem:[#allocation28_spill] sm:$0xff] %v5236_v25  ;;  %v5245_v60 = vpop.eup %3691 }
  0xec   : > { %v1634_v43 = vadd.f32 %v5204_v61, %v1633_v38  ;;  %v2695_v35 = vld [vmem:[%s4452_s8 + $0x68] sm:$0xff]  ;;  %v2696_v32 = vld [vmem:[%s4452_s8 + $0x78] sm:$0xff]  ;;  %v2731_v37 = vmul.f32 %v2715_v7, %v6973_v19  ;;  %v2732_v2 = vmul.f32 %v2716_v24, %v6973_v19  ;;  %v2733_v52 = vmul.f32 %v2717_v31, %v6973_v19  ;;  %6977 = vst [vmem:[#allocation29_spill] sm:$0xff] %v5245_v60  ;;  %v5254_v29 = vpop.eup %3693 }
  0xed   : > { %v2697_v20 = vld [vmem:[%s4452_s8 + $0x88] sm:$0xff]  ;;  %v2698_v9 = vld [vmem:[%s4452_s8 + $0x98] sm:$0xff]  ;;  %v2734_v38 = vmul.f32 %v2718_v4, %v6973_v19  ;;  %v2735_v61 = vmul.f32 %v2719_v47, %v6973_v19  ;;  %v2736_v55 = vmul.f32 %v2720_v56, %v6973_v19  ;;  %6979 = vst [vmem:[#allocation30_spill] sm:$0xff] %v5254_v29  ;;  %v2738_v16 = vmul.f32 %v2690_v36, %v6980_v51  ;;  %v5263_v4 = vpop.eup %3695  ;;  %v6985_v19 = vld [vmem:[#allocation42_spill] sm:$0xff] }
  0xee   : > { %v2699_v34 = vld [vmem:[%s4452_s8 + $0xa8] sm:$0xff]  ;;  %v2700_v27 = vld [vmem:[%s4452_s8 + $0xb8] sm:$0xff]  ;;  %v1635_v7 = vadd.f32 %v5210_v12, %v1634_v43  ;;  %v2740_v58 = vmul.f32 %v2692_v63, %v6982_v41  ;;  %6983 = vst [vmem:[#allocation31_spill] sm:$0xff] %v5263_v4  ;;  %v2741_v56 = vmul.f32 %v2693_v40, %v6984_v59  ;;  %v2744_v43 = vmul.f32 %v2696_v32, %v6987_v14  ;;  %v5270_v12 = vpop.eup %3697  ;;  %v6993_v59 = vld [vmem:[#allocation48_spill] sm:$0xff] }
  0xef   : > { %v6978_v18 = vld [vmem:[#allocation37_spill] sm:$0xff]  ;;  %v2702_v31 = vld [vmem:[%s4452_s8 + $0xd8] sm:$0xff]  ;;  %6988 = vst [vmem:[#allocation32_spill] sm:$0xff] %v5270_v12  ;;  %v5276_v57 = vpop.eup %3699  ;;  %v2748_v40 = vmul.f32 %v2700_v27, %v6993_v59 }
  0xf0   : > { %v2737_v42 = vmul.f32 %v2689_v11, %v6978_v18  ;;  %v2701_v24 = vld [vmem:[%s4452_s8 + $0xc8] sm:$0xff]  ;;  %v6981_v46 = vld [vmem:[#allocation39_spill] sm:$0xff]  ;;  %v2742_v18 = vmul.f32 %v2694_v6, %v6985_v19  ;;  %v1636_v5 = vadd.f32 %v5218_v49, %v1635_v7  ;;  %6992 = vst [vmem:[#allocation33_spill] sm:$0xff] %v5276_v57  ;;  %v6995_v19 = vld [vmem:[#allocation50_spill] sm:$0xff]  ;;  %v5282_v21 = vpop.eup %3701 }
  0xf1   : > { %v2703_v28 = vld [vmem:[%s4452_s8 + $0xe8] sm:$0xff]  ;;  %v2739_v3 = vmul.f32 %v2691_v54, %v6981_v46  ;;  %v2704_v47 = vld [vmem:[%s4452_s8 + $0xf8] sm:$0xff]  ;;  %v6990_v46 = vld [vmem:[#allocation46_spill] sm:$0xff]  ;;  %v2750_v14 = vmul.f32 %v2702_v31, %v6995_v19  ;;  %6997 = vst [vmem:[#allocation34_spill] sm:$0xff] %v5282_v21  ;;  %v5290_v27 = vpop.eup %3703  ;;  %v5295_v31 = vadd.f32 %v2740_v58, %v2724_v50 }
  0xf2   : > { %v6986_v11 = vld [vmem:[#allocation43_spill] sm:$0xff]  ;;  %v6989_v51 = vld [vmem:[#allocation45_spill] sm:$0xff]  ;;  %v2746_v54 = vmul.f32 %v2698_v9, %v6990_v46  ;;  %v6998_v9 = vld [vmem:[#allocation52_spill] sm:$0xff]  ;;  %v5286_v7 = vadd.f32 %v2737_v42, %v2721_v33  ;;  %v5306_v33 = vadd.f32 %v2744_v43, %v2728_v15 }
  0xf3   : > { %v2743_v22 = vmul.f32 %v2695_v35, %v6986_v11  ;;  %v2745_v36 = vmul.f32 %v2697_v20, %v6989_v51  ;;  %v6991_v41 = vld [vmem:[#allocation47_spill] sm:$0xff]  ;;  %v6994_v6 = vld [vmem:[#allocation49_spill] sm:$0xff]  ;;  %v1637_v20 = vadd.f32 %v5227_v8, %v1636_v5  ;;  %v5288_v51 = vadd.f32 %v2738_v16, %v2722_v13 }
  0xf4   : > { %v2747_v63 = vmul.f32 %v2699_v34, %v6991_v41  ;;  %v2749_v35 = vmul.f32 %v2701_v24, %v6994_v6  ;;  %v6996_v32 = vld [vmem:[#allocation51_spill] sm:$0xff]  ;;  %v2752_v34 = vmul.f32 %v2704_v47, %v6998_v9  ;;  %v5293_v24 = vadd.f32 %v2739_v3, %v5216_v1  ;;  %v3505_v47 = vld [vmem:[%s4337_s13 + $0x108] sm:$0xff] }
  0xf5   : > { %v2751_v11 = vmul.f32 %v2703_v28, %v6996_v32  ;;  %v5297_v28 = vadd.f32 %v2741_v56, %v2725_v26  ;;  %v5299_v5 = vadd.f32 %v2742_v18, %v2726_v10  ;;  %v3506_v46 = vld [vmem:[%s4337_s13 + $0x118] sm:$0xff]  ;;  %v1638_v42 = vadd.f32 %v5236_v25, %v1637_v20  ;;  %v3507_v58 = vld [vmem:[%s4337_s13 + $0x128] sm:$0xff] }
  0xf6   : > { %v5304_v16 = vadd.f32 %v2743_v22, %v2727_v44  ;;  %v5308_v3 = vadd.f32 %v2745_v36, %v2729_v17  ;;  %v3508_v13 = vld [vmem:[%s4337_s13 + $0x138] sm:$0xff]  ;;  %v3509_v1 = vld [vmem:[%s4337_s13 + $0x148] sm:$0xff]  ;;  %v5313_v50 = vadd.f32 %v2746_v54, %v2730_v39  ;;  %v5315_v26 = vadd.f32 %v2747_v63, %v2731_v37  ;;  %v7004_v63 = vld [vmem:[#allocation64_spill] sm:$0xff] }
  0xf7   : > { %v5317_v10 = vadd.f32 %v2748_v40, %v2732_v2  ;;  %v5319_v22 = vadd.f32 %v2749_v35, %v2733_v52  ;;  %v3510_v15 = vld [vmem:[%s4337_s13 + $0x158] sm:$0xff]  ;;  %v3511_v44 = vld [vmem:[%s4337_s13 + $0x168] sm:$0xff]  ;;  %v1639_v56 = vadd.f32 %v5245_v60, %v1638_v42  ;;  %v5325_v18 = vadd.f32 %v2750_v14, %v2734_v38  ;;  %v7006_v35 = vld [vmem:[#allocation66_spill] sm:$0xff] }
  0xf8   : > { %v3512_v17 = vld [vmem:[%s4337_s13 + $0x178] sm:$0xff]  ;;  %v5327_v43 = vadd.f32 %v2751_v11, %v2735_v61  ;;  %v5329_v39 = vadd.f32 %v2752_v34, %v2736_v55  ;;  %v3513_v36 = vld [vmem:[%s4337_s13 + $0x188] sm:$0xff]  ;;  %v2801_v59 = vadd.f32 %v3505_v47, %v7004_v63  ;;  %v2803_v19 = vadd.f32 %v3507_v58, %v7006_v35  ;;  %v7008_v55 = vld [vmem:[#allocation68_spill] sm:$0xff] }
  0xf9   : > { %6999 = vst [vmem:[#allocation35_spill] sm:$0xff] %v5317_v10  ;;  %7000 = vst [vmem:[#allocation36_spill] sm:$0xff] %v5319_v22  ;;  %v3514_v37 = vld [vmem:[%s4337_s13 + $0x198] sm:$0xff]  ;;  %v3515_v54 = vld [vmem:[%s4337_s13 + $0x1a8] sm:$0xff]  ;;  %v1640_v38 = vadd.f32 %v5254_v29, %v1639_v56  ;;  %v2805_v11 = vadd.f32 %v3509_v1, %v7008_v55 }
  0xfa   : > { %7001 = vst [vmem:[#allocation9_spill] sm:$0xff] %v5325_v18  ;;  %7002 = vst [vmem:[#allocation37_spill] sm:$0xff] %v5327_v43  ;;  %v3516_v2 = vld [vmem:[%s4337_s13 + $0x1b8] sm:$0xff]  ;;  %v3517_v41 = vld [vmem:[%s4337_s13 + $0x1c8] sm:$0xff] }
  0xfb   : > { %7003 = vst [vmem:[#allocation38_spill] sm:$0xff] %v5329_v39  ;;  %v3518_v52 = vld [vmem:[%s4337_s13 + $0x1d8] sm:$0xff]  ;;  %v7005_v40 = vld [vmem:[#allocation65_spill] sm:$0xff]  ;;  %v7010_v42 = vld [vmem:[#allocation70_spill] sm:$0xff]  ;;  %v1641_v56 = vadd.f32 %v5263_v4, %v1640_v38 }
  0xfc   : > { %v2802_v6 = vadd.f32 %v3506_v46, %v7005_v40  ;;  %v7007_v32 = vld [vmem:[#allocation67_spill] sm:$0xff]  ;;  %v3519_v61 = vld [vmem:[%s4337_s13 + $0x1e8] sm:$0xff]  ;;  %v2807_v60 = vadd.f32 %v3511_v44, %v7010_v42  ;;  %v7012_v63 = vld [vmem:[#allocation72_spill] sm:$0xff] }
  0xfd   : > { %v2804_v20 = vadd.f32 %v3508_v13, %v7007_v32  ;;  %v3520_v14 = vld [vmem:[%s4337_s13 + $0x1f8] sm:$0xff]  ;;  %v7009_v9 = vld [vmem:[#allocation69_spill] sm:$0xff]  ;;  %v2809_v46 = vadd.f32 %v3513_v36, %v7012_v63  ;;  %v7014_v35 = vld [vmem:[#allocation74_spill] sm:$0xff]  ;;  %s6386_s13 = sld [smem:[#allocation4 + %s2415_s29]] }
  0xfe   : > { %v2806_v34 = vadd.f32 %v3510_v15, %v7009_v9  ;;  %v7011_v25 = vld [vmem:[#allocation71_spill] sm:$0xff]  ;;  %v7013_v40 = vld [vmem:[#allocation73_spill] sm:$0xff]  ;;  %v2811_v13 = vadd.f32 %v3515_v54, %v7014_v35  ;;  %v7016_v55 = vld [vmem:[#allocation76_spill] sm:$0xff]  ;;  %v1642_v54 = vadd.f32 %v5270_v12, %v1641_v56 }
  0xff   : > { %v2808_v47 = vadd.f32 %v3512_v17, %v7011_v25  ;;  %v2810_v58 = vadd.f32 %v3514_v37, %v7013_v40  ;;  %v7015_v32 = vld [vmem:[#allocation75_spill] sm:$0xff]  ;;  %v2813_v15 = vadd.f32 %v3517_v41, %v7016_v55  ;;  %v7017_v9 = vld [vmem:[#allocation77_spill] sm:$0xff]  ;;  %v7018_v44 = vld [vmem:[#allocation78_spill] sm:$0xff] }
 0x100   : > { %v2812_v1 = vadd.f32 %v3516_v2, %v7015_v32  ;;  %v2814_v29 = vadd.f32 %v3518_v52, %v7017_v9  ;;  %v2815_v42 = vadd.f32 %v3519_v61, %v7018_v44  ;;  %v7019_v25 = vld [vmem:[#allocation79_spill] sm:$0xff]  ;;  %v7020_v36 = vld [vmem:[#allocation12_spill] sm:$0xff]  ;;  %v3521_v38 = vld [vmem:[%s4452_s8 + $0x108] sm:$0xff] }
 0x101   : > { %v2816_v17 = vadd.f32 %v3520_v14, %v7019_v25  ;;  %v2817_v63 = vmul.f32 %v2801_v59, %v7020_v36  ;;  %v2818_v37 = vmul.f32 %v2802_v6, %v7020_v36  ;;  %v3522_v40 = vld [vmem:[%s4452_s8 + $0x118] sm:$0xff]  ;;  %v2819_v2 = vmul.f32 %v2803_v19, %v7020_v36  ;;  %v3523_v61 = vld [vmem:[%s4452_s8 + $0x128] sm:$0xff] }
 0x102   : > { %v2820_v41 = vmul.f32 %v2804_v20, %v7020_v36  ;;  %v2821_v52 = vmul.f32 %v2805_v11, %v7020_v36  ;;  %v3524_v59 = vld [vmem:[%s4452_s8 + $0x138] sm:$0xff]  ;;  %v3525_v14 = vld [vmem:[%s4452_s8 + $0x148] sm:$0xff]  ;;  %v2822_v6 = vmul.f32 %v2806_v34, %v7020_v36  ;;  %v2823_v35 = vmul.f32 %v2807_v60, %v7020_v36 }
 0x103   : > { %v2824_v56 = vmul.f32 %v2808_v47, %v7020_v36  ;;  %v2825_v32 = vmul.f32 %v2809_v46, %v7020_v36  ;;  %v1643_v19 = vadd.f32 %v5276_v57, %v1642_v54  ;;  %v3526_v20 = vld [vmem:[%s4452_s8 + $0x158] sm:$0xff]  ;;  %v3527_v11 = vld [vmem:[%s4452_s8 + $0x168] sm:$0xff]  ;;  %v2826_v9 = vmul.f32 %v2810_v58, %v7020_v36 }
 0x104   : > { %v3528_v55 = vld [vmem:[%s4452_s8 + $0x178] sm:$0xff]  ;;  %v2827_v44 = vmul.f32 %v2811_v13, %v7020_v36  ;;  %v2828_v34 = vmul.f32 %v2812_v1, %v7020_v36  ;;  %v3529_v60 = vld [vmem:[%s4452_s8 + $0x188] sm:$0xff]  ;;  %v2829_v46 = vmul.f32 %v2813_v15, %v7020_v36  ;;  %v2830_v54 = vmul.f32 %v2814_v29, %v7020_v36 }
 0x105   : > { %v3530_v47 = vld [vmem:[%s4452_s8 + $0x198] sm:$0xff]  ;;  %v3531_v25 = vld [vmem:[%s4452_s8 + $0x1a8] sm:$0xff]  ;;  %v2831_v57 = vmul.f32 %v2815_v42, %v7020_v36  ;;  %v2832_v12 = vmul.f32 %v2816_v17, %v7020_v36  ;;  %v1644_v4 = vadd.f32 %v5282_v21, %v1643_v19  ;;  %v2833_v49 = vmul.f32 %v3521_v38, %v4849_v23  ;;  %v7022_v23 = vld [vmem:[#allocation80_spill] sm:$0xff] }
 0x106   : > { %v3532_v58 = vld [vmem:[%s4452_s8 + $0x1b8] sm:$0xff]  ;;  %v3533_v8 = vld [vmem:[%s4452_s8 + $0x1c8] sm:$0xff]  ;;  %v2834_v1 = vmul.f32 %v3522_v40, %v4853_v62  ;;  %v2835_v39 = vmul.f32 %v3523_v61, %v4859_v48  ;;  %v2836_v15 = vmul.f32 %v3524_v59, %v4868_v30  ;;  %v2837_v29 = vmul.f32 %v3525_v14, %v4872_v53  ;;  %v7024_v48 = vld [vmem:[#allocation82_spill] sm:$0xff] }
 0x107   : > { %v3534_v13 = vld [vmem:[%s4452_s8 + $0x1d8] sm:$0xff]  ;;  %v3535_v43 = vld [vmem:[%s4452_s8 + $0x1e8] sm:$0xff]  ;;  %v2838_v42 = vmul.f32 %v3526_v20, %v4876_v0  ;;  %v2839_v17 = vmul.f32 %v3527_v11, %v4882_v45  ;;  %v5400_v36 = vadd.f32 %v5290_v27, %v1644_v4  ;;  %v2841_v38 = vmul.f32 %v3529_v60, %v7022_v23  ;;  %v7026_v30 = vld [vmem:[#allocation84_spill] sm:$0xff] }
 0x108   : > { %v3536_v18 = vld [vmem:[%s4452_s8 + $0x1f8] sm:$0xff]  ;;  %v7023_v62 = vld [vmem:[#allocation81_spill] sm:$0xff]  ;;  %v2843_v61 = vmul.f32 %v3531_v25, %v7024_v48  ;;  %v2845_v59 = vmul.f32 %v3533_v8, %v7026_v30  ;;  %v7028_v45 = vld [vmem:[#allocation86_spill] sm:$0xff]  ;;  %v2849_v11 = vadd.f32 %v2833_v49, %v2817_v63  ;;  %v2851_v60 = vadd.f32 %v2835_v39, %v2819_v2  ;;  %s2668_s8 = sld [smem:[#allocation4 + %s2667_s12]] }
 0x109   : > { %v7021_v19 = vld [vmem:[#allocation11_spill] sm:$0xff]  ;;  %v2842_v40 = vmul.f32 %v3530_v47, %v7023_v62  ;;  %v7027_v53 = vld [vmem:[#allocation85_spill] sm:$0xff]  ;;  %3705 = vrcp.f32 %v5400_v36  ;;  %v2847_v0 = vmul.f32 %v3535_v43, %v7028_v45  ;;  %v2853_v47 = vadd.f32 %v2837_v29, %v2821_v52  ;;  %v1772_v2 = vld [vmem:[%s5111_s9 + $0x30] sm:$0xff] }
 0x10a   : > { %v2840_v21 = vmul.f32 %v3528_v55, %v7021_v19  ;;  %v7025_v22 = vld [vmem:[#allocation83_spill] sm:$0xff]  ;;  %v2846_v14 = vmul.f32 %v3534_v13, %v7027_v53  ;;  %v2850_v55 = vadd.f32 %v2834_v1, %v2818_v37  ;;  %v2852_v19 = vadd.f32 %v2836_v15, %v2820_v41  ;;  %v7031_v52 = vld [vmem:[#allocation36_spill] sm:$0xff]  ;;  %v7037_v30 = vld [vmem:[#allocation58_spill] sm:$0xff] }
 0x10b   : > { %v2844_v10 = vmul.f32 %v3532_v58, %v7025_v22  ;;  %v7029_v4 = vld [vmem:[#allocation87_spill] sm:$0xff]  ;;  %v2854_v23 = vadd.f32 %v2838_v42, %v2822_v6  ;;  %v2855_v25 = vadd.f32 %v2839_v17, %v2823_v35  ;;  %v2857_v58 = vadd.f32 %v2841_v38, %v2825_v32  ;;  %v7032_v35 = vld [vmem:[#allocation9_spill] sm:$0xff]  ;;  %v7035_v1 = vld [vmem:[#allocation56_spill] sm:$0xff] }
 0x10c   : > { %v2848_v20 = vmul.f32 %v3536_v18, %v7029_v4  ;;  %v2856_v22 = vadd.f32 %v2840_v21, %v2824_v56  ;;  %v2858_v8 = vadd.f32 %v2842_v40, %v2826_v9  ;;  %v2859_v62 = vadd.f32 %v2843_v61, %v2827_v44  ;;  %v7030_v41 = vld [vmem:[#allocation35_spill] sm:$0xff]  ;;  %v7033_v32 = vld [vmem:[#allocation37_spill] sm:$0xff]  ;;  %v1780_v38 = vld [vmem:[%s5111_s9 + $0xb0] sm:$0xff] }
 0x10d   : > { %v2860_v13 = vadd.f32 %v2844_v10, %v2828_v34  ;;  %v2861_v48 = vadd.f32 %v2845_v59, %v2829_v46  ;;  %v2862_v18 = vadd.f32 %v2846_v14, %v2830_v54  ;;  %v2863_v49 = vadd.f32 %v2847_v0, %v2831_v57  ;;  %v1777_v34 = vld [vmem:[%s5111_s9 + $0x80] sm:$0xff]  ;;  %v1778_v46 = vld [vmem:[%s5111_s9 + $0x90] sm:$0xff]  ;;  %v7036_v40 = vld [vmem:[#allocation57_spill] sm:$0xff] }
 0x10e   : > { %v2864_v43 = vadd.f32 %v2848_v20, %v2832_v12  ;;  %v5416_v39 = vadd.f32 %v2849_v11, %v5286_v7  ;;  %v5419_v63 = vadd.f32 %v2850_v55, %v5288_v51  ;;  %v5422_v21 = vadd.f32 %v2851_v60, %v5293_v24  ;;  %v1773_v24 = vld [vmem:[%s5111_s9 + $0x40] sm:$0xff]  ;;  %v7038_v53 = vld [vmem:[#allocation59_spill] sm:$0xff]  ;;  %v1782_v4 = vld [vmem:[%s5111_s9 + $0xd0] sm:$0xff] }
 0x10f   : > { %v5425_v10 = vadd.f32 %v2852_v19, %v5295_v31  ;;  %v5428_v37 = vadd.f32 %v2853_v47, %v5297_v28  ;;  %v5432_v57 = vadd.f32 %v2854_v23, %v5299_v5  ;;  %v5435_v12 = vadd.f32 %v2855_v25, %v5304_v16  ;;  %v1774_v31 = vld [vmem:[%s5111_s9 + $0x50] sm:$0xff]  ;;  %v1775_v28 = vld [vmem:[%s5111_s9 + $0x60] sm:$0xff]  ;;  %v7040_v25 = vld [vmem:[#allocation61_spill] sm:$0xff] }
 0x110   : > { %v5438_v7 = vadd.f32 %v2856_v22, %v5306_v33  ;;  %v5441_v51 = vadd.f32 %v2857_v58, %v5308_v3  ;;  %v5450_v5 = vadd.f32 %v2858_v8, %v5313_v50  ;;  %v5453_v16 = vadd.f32 %v2859_v62, %v5315_v26  ;;  %v1776_v3 = vld [vmem:[%s5111_s9 + $0x70] sm:$0xff]  ;;  %v1779_v54 = vld [vmem:[%s5111_s9 + $0xa0] sm:$0xff]  ;;  %v7042_v62 = vld [vmem:[#allocation63_spill] sm:$0xff] }
 0x111   : > { %v5456_v33 = vadd.f32 %v2860_v13, %v7030_v41  ;;  %v5459_v6 = vadd.f32 %v2861_v48, %v7031_v52  ;;  %v5463_v56 = vadd.f32 %v2862_v18, %v7032_v35  ;;  %v5466_v9 = vadd.f32 %v2863_v49, %v7033_v32  ;;  %v7034_v50 = vld [vmem:[#allocation38_spill] sm:$0xff]  ;;  %v1781_v0 = vld [vmem:[%s5111_s9 + $0xc0] sm:$0xff]  ;;  %v7044_v49 = vld [vmem:[#allocation13_spill] sm:$0xff] }
 0x112   : > { %v5469_v44 = vadd.f32 %v2864_v43, %v7034_v50  ;;  %v2881_v26 = vmax.f32 %v5416_v39, %v5428_v37  ;;  %v5477_v15 = vadd.f32 %v7035_v1, %v1772_v2  ;;  %v2882_v29 = vmax.f32 %v5419_v63, %v5432_v57  ;;  %v1783_v20 = vld [vmem:[%s5111_s9 + $0xe0] sm:$0xff]  ;;  %v1784_v23 = vld [vmem:[%s5111_s9 + $0xf0] sm:$0xff]  ;;  %v2980_v41 = vld [vmem:[%s5111_s9 + $0x18] sm:$0xff] }
 0x113   : > { %v2883_v42 = vmax.f32 %v5422_v21, %v5435_v12  ;;  %v2884_v17 = vmax.f32 %v5425_v10, %v5438_v7  ;;  %v5487_v61 = vadd.f32 %v7036_v40, %v1773_v24  ;;  %v5490_v59 = vadd.f32 %v7037_v30, %v1774_v31  ;;  %v7039_v11 = vld [vmem:[#allocation60_spill] sm:$0xff]  ;;  %v7041_v58 = vld [vmem:[#allocation62_spill] sm:$0xff]  ;;  %v2981_v52 = vld [vmem:[%s5111_s9 + $0x28] sm:$0xff] }
 0x114   : > { %v5493_v14 = vadd.f32 %v7038_v53, %v1775_v28  ;;  %v2885_v45 = vmax.f32 %v2881_v26, %v5441_v51  ;;  %v5500_v55 = vadd.f32 %v7039_v11, %v1776_v3  ;;  %v2886_v60 = vmax.f32 %v2882_v29, %v5450_v5  ;;  %v2979_v28 = vld [vmem:[%s5111_s9 + $0x8] sm:$0xff]  ;;  %v7046_v35 = vld [vmem:[#allocation14_spill] sm:$0xff]  ;;  %v7048_v50 = vld [vmem:[#allocation88_spill] sm:$0xff] }
 0x115   : > { %v2887_v19 = vmax.f32 %v2883_v42, %v5453_v16  ;;  %v2888_v47 = vmax.f32 %v2884_v17, %v5456_v33  ;;  %v5507_v22 = vadd.f32 %v7040_v25, %v1777_v34  ;;  %v5510_v8 = vadd.f32 %v7041_v58, %v1778_v46  ;;  %v7050_v34 = vld [vmem:[#allocation89_spill] sm:$0xff]  ;;  %v2984_v42 = vld [vmem:[%s5111_s9 + $0x58] sm:$0xff]  ;;  %v7052_v17 = vld [vmem:[#allocation90_spill] sm:$0xff] }
 0x116   : > { %v5513_v13 = vadd.f32 %v7042_v62, %v1779_v54  ;;  %v2889_v48 = vmax.f32 %v2885_v45, %v5459_v6  ;;  %v3706_v18 = vpop.eup %3705  ;;  %v5517_v43 = vadd.f32 %v7044_v49, %v1780_v38  ;;  %v2890_v2 = vmax.f32 %v2886_v60, %v5463_v56  ;;  %v2982_v54 = vld [vmem:[%s5111_s9 + $0x38] sm:$0xff]  ;;  %v2983_v29 = vld [vmem:[%s5111_s9 + $0x48] sm:$0xff] }
 0x117   : > { %v2891_v24 = vmax.f32 %v2887_v19, %v5466_v9  ;;  %v2892_v31 = vmax.f32 %v2888_v47, %v5469_v44  ;;  %v1647_v3 = vmul.f32 %v3706_v18, %v5400_v36  ;;  %v5528_v32 = vadd.f32 %v7046_v35, %v1781_v0  ;;  %v2986_v60 = vld [vmem:[%s5111_s9 + $0x78] sm:$0xff]  ;;  %v7053_v47 = vld [vmem:[#allocation53_spill] sm:$0xff] }
 0x118   : > { %7043 = vst [vmem:[#allocation39_spill] sm:$0xff] %v5513_v13  ;;  %7045 = vst [vmem:[#allocation40_spill] sm:$0xff] %v5517_v43  ;;  %v5531_v26 = vadd.f32 %v7048_v50, %v1782_v4  ;;  %v5534_v46 = vadd.f32 %v7050_v34, %v1783_v20  ;;  %v5543_v36 = vadd.f32 %v7052_v17, %v1784_v23  ;;  %v2985_v4 = vld [vmem:[%s5111_s9 + $0x68] sm:$0xff]  ;;  %v7057_v43 = vld [vmem:[#allocation55_spill] sm:$0xff] }
 0x119   : > { %7047 = vst [vmem:[#allocation41_spill] sm:$0xff] %v5528_v32  ;;  %v2893_v45 = vmax.f32 %v2889_v48, %v2890_v2  ;;  %v2894_v0 = vmax.f32 %v2891_v24, %v2892_v31  ;;  %v2987_v20 = vld [vmem:[%s5111_s9 + $0x88] sm:$0xff]  ;;  %v1648_v19 = vsub.f32 2.0, %v1647_v3  ;;  %v5556_v13 = vadd.f32 %v2981_v52, %v7057_v43  ;;  %v2988_v48 = vld [vmem:[%s5111_s9 + $0x98] sm:$0xff] }
 0x11a   : > { %7049 = vst [vmem:[#allocation42_spill] sm:$0xff] %v5531_v26  ;;  %7051 = vst [vmem:[#allocation43_spill] sm:$0xff] %v5534_v46  ;;  %v5550_v46 = vadd.f32 %v2979_v28, %v7053_v47  ;;  %v7055_v26 = vld [vmem:[#allocation54_spill] sm:$0xff]  ;;  %v2989_v2 = vld [vmem:[%s5111_s9 + $0xa8] sm:$0xff]  ;;  %v5568_v31 = vadd.f32 %v2982_v54, %v7035_v1  ;;  %v5571_v28 = vadd.f32 %v2983_v29, %v7036_v40 }
 0x11b   : > { %v5553_v32 = vadd.f32 %v2980_v41, %v7055_v26  ;;  %7058 = vst [vmem:[#allocation46_spill] sm:$0xff] %v5556_v13  ;;  %v5562_v23 = vmax.f32 %v2893_v45, %v2894_v0  ;;  %v2990_v24 = vld [vmem:[%s5111_s9 + $0xb8] sm:$0xff]  ;;  %v5574_v41 = vadd.f32 %v2984_v42, %v7037_v30  ;;  %v5576_v43 = vmul.f32 %v3706_v18, %v1648_v19  ;;  %v2991_v52 = vld [vmem:[%s5111_s9 + $0xc8] sm:$0xff] }
 0x11c   : > { %7054 = vst [vmem:[#allocation44_spill] sm:$0xff] %v5550_v46  ;;  %7059 = vst [vmem:[#allocation47_spill] sm:$0xff] %v5568_v31  ;;  %v2992_v3 = vld [vmem:[%s5111_s9 + $0xd8] sm:$0xff]  ;;  %v2993_v26 = vld [vmem:[%s5111_s9 + $0xe8] sm:$0xff]  ;;  %v5582_v45 = vadd.f32 %v2985_v4, %v7038_v53  ;;  %v5585_v0 = vadd.f32 %v2986_v60, %v7039_v11  ;;  %v5588_v1 = vadd.f32 %v2987_v20, %v7040_v25 }
 0x11d   : > { %7056 = vst [vmem:[#allocation45_spill] sm:$0xff] %v5553_v32  ;;  %7060 = vst [vmem:[#allocation48_spill] sm:$0xff] %v5571_v28  ;;  %v2896_v40 = vsub.f32 %v5416_v39, %v5562_v23  ;;  %v2897_v30 = vsub.f32 %v5419_v63, %v5562_v23  ;;  %v2898_v18 = vsub.f32 %v5422_v21, %v5562_v23  ;;  %v2994_v54 = vld [vmem:[%s5111_s9 + $0xf8] sm:$0xff]  ;;  %v7065_v11 = vld [vmem:[#allocation94_spill] sm:$0xff]  ;;  %v7127_v32 = vstv %s5447_s10 }
 0x11e   : > { %7061 = vst [vmem:[#allocation49_spill] sm:$0xff] %v5574_v41  ;;  %7062 = vst [vmem:[#allocation50_spill] sm:$0xff] %v5582_v45  ;;  %v2899_v53 = vsub.f32 %v5425_v10, %v5562_v23  ;;  %v5601_v29 = vmul.f32 %v7065_v11, %v5576_v43  ;;  %v7067_v25 = vld [vmem:[#allocation21_spill] sm:$0xff]  ;;  %v5608_v39 = vadd.f32 %v2988_v48, %v7041_v58  ;;  %v7075_v20 = vld [vmem:[#allocation22_spill] sm:$0xff] }
 0x11f   : > { %7063 = vst [vmem:[#allocation51_spill] sm:$0xff] %v5585_v0  ;;  %7064 = vst [vmem:[#allocation52_spill] sm:$0xff] %v5588_v1  ;;  %v5605_v42 = vmul.f32 %v7067_v25, %v5576_v43  ;;  %v5611_v63 = vadd.f32 %v2989_v2, %v7042_v62  ;;  %v5614_v21 = vadd.f32 %v2990_v24, %v7044_v49  ;;  %v7078_v47 = vld [vmem:[#allocation15_spill] sm:$0xff]  ;;  %v7106_v45 = vld [vmem:[#allocation34_spill] sm:$0xff] }
 0x120   : > { %7066 = vst [vmem:[#allocation64_spill] sm:$0xff] %v5601_v29  ;;  %7069 = vst [vmem:[#allocation66_spill] sm:$0xff] %v5608_v39  ;;  %v5617_v10 = vadd.f32 %v2991_v52, %v7046_v35  ;;  %v5620_v4 = vadd.f32 %v2992_v3, %v7048_v50  ;;  %v5623_v60 = vadd.f32 %v2993_v26, %v7050_v34  ;;  %v7079_v35 = vld [vmem:[#allocation23_spill] sm:$0xff]  ;;  %v7081_v50 = vld [vmem:[#allocation24_spill] sm:$0xff] }
 0x121   : > { %7068 = vst [vmem:[#allocation65_spill] sm:$0xff] %v5605_v42  ;;  %7070 = vst [vmem:[#allocation67_spill] sm:$0xff] %v5611_v63  ;;  %v5627_v58 = vmul.f32 %v7075_v20, %v5576_v43  ;;  %v5630_v62 = vadd.f32 %v2994_v54, %v7052_v17  ;;  %v1919_v49 = vcombine.high %v7078_v47, %v7078_v47  ;;  %v7083_v34 = vld [vmem:[#allocation10_spill] sm:$0xff]  ;;  %v7084_v52 = vld [vmem:[#allocation16_spill] sm:$0xff] }
 0x122   : > { %7071 = vst [vmem:[#allocation68_spill] sm:$0xff] %v5614_v21  ;;  %7072 = vst [vmem:[#allocation69_spill] sm:$0xff] %v5617_v10  ;;  %v5637_v48 = vmul.f32 %v7079_v35, %v5576_v43  ;;  %v5641_v2 = vmul.f32 %v7081_v50, %v5576_v43  ;;  %v5645_v24 = vrot.slane %v7078_v47, %v7083_v34  ;;  %v7085_v3 = vld [vmem:[#allocation91_spill] sm:$0xff]  ;;  %v7086_v54 = vld [vmem:[#allocation92_spill] sm:$0xff] }
 0x123   : > { %7073 = vst [vmem:[#allocation70_spill] sm:$0xff] %v5620_v4  ;;  %7074 = vst [vmem:[#allocation71_spill] sm:$0xff] %v5623_v60  ;;  %v1881_v26 = vmul.f32 %v7085_v3, %v5601_v29  ;;  %v1882_v11 = vmul.f32 %v7086_v54, %v5605_v42  ;;  %v5655_v25 = vrot.slane %v7084_v52, %v7083_v34  ;;  %v7087_v35 = vld [vmem:[#allocation25_spill] sm:$0xff]  ;;  %v7089_v47 = vld [vmem:[#allocation26_spill] sm:$0xff] }
 0x124   : > { %7076 = vst [vmem:[#allocation72_spill] sm:$0xff] %v5627_v58  ;;  %7077 = vst [vmem:[#allocation73_spill] sm:$0xff] %v5630_v62  ;;  %v5660_v50 = vmul.f32 %v7087_v35, %v5576_v43  ;;  %v5664_v19 = vmul.f32 %v7089_v47, %v5576_v43  ;;  %v7091_v38 = vld [vmem:[#allocation27_spill] sm:$0xff]  ;;  %v7093_v3 = vld [vmem:[#allocation28_spill] sm:$0xff]  ;;  %v2904_v0 = vsub.f32 %v5441_v51, %v5562_v23 }
 0x125   : > { %7080 = vst [vmem:[#allocation74_spill] sm:$0xff] %v5637_v48  ;;  %7082 = vst [vmem:[#allocation75_spill] sm:$0xff] %v5641_v2  ;;  %v5668_v17 = vmul.f32 %v7091_v38, %v5576_v43  ;;  %v5672_v54 = vmul.f32 %v7093_v3, %v5576_v43  ;;  %v7095_v62 = vld [vmem:[#allocation29_spill] sm:$0xff]  ;;  %v7097_v20 = vld [vmem:[#allocation30_spill] sm:$0xff]  ;;  %v1897_v1 = vadd.f32 %v1882_v11, %v1881_v26  ;;  %v2914_v11 = vmul.f32 1.442695, %v2897_v30 }
 0x126   : > { %7088 = vst [vmem:[#allocation76_spill] sm:$0xff] %v5660_v50  ;;  %7090 = vst [vmem:[#allocation77_spill] sm:$0xff] %v5664_v19  ;;  %v5676_v60 = vmul.f32 %v7095_v62, %v5576_v43  ;;  %v5680_v35 = vmul.f32 %v7097_v20, %v5576_v43  ;;  %v7099_v4 = vld [vmem:[#allocation31_spill] sm:$0xff]  ;;  %v7101_v10 = vld [vmem:[#allocation93_spill] sm:$0xff]  ;;  %v1884_v62 = vmul.f32 %v5477_v15, %v5637_v48 }
 0x127   : > { %7092 = vst [vmem:[#allocation78_spill] sm:$0xff] %v5668_v17  ;;  %7094 = vst [vmem:[#allocation79_spill] sm:$0xff] %v5672_v54  ;;  %v5684_v47 = vmul.f32 %v7099_v4, %v5576_v43  ;;  %v1883_v38 = vmul.f32 %v7101_v10, %v5627_v58  ;;  %v7102_v21 = vld [vmem:[#allocation32_spill] sm:$0xff]  ;;  %v7104_v3 = vld [vmem:[#allocation33_spill] sm:$0xff]  ;;  %v1885_v20 = vmul.f32 %v5487_v61, %v5641_v2 }
 0x128   : > { %7096 = vst [vmem:[#allocation12_spill] sm:$0xff] %v5676_v60  ;;  %7098 = vst [vmem:[#allocation11_spill] sm:$0xff] %v5680_v35  ;;  %v5690_v63 = vmul.f32 %v7102_v21, %v5576_v43  ;;  %v5694_v39 = vmul.f32 %v7104_v3, %v5576_v43  ;;  %v2900_v4 = vsub.f32 %v5428_v37, %v5562_v23  ;;  %v7109_v30 = vld [vmem:[#allocation39_spill] sm:$0xff]  ;;  %v3458_v41 = vld [vmem:[%s5111_s9 + $0x180] sm:$0xff] }
 0x129   : > { %7100 = vst [vmem:[#allocation80_spill] sm:$0xff] %v5684_v47  ;;  %v2901_v10 = vsub.f32 %v5432_v57, %v5562_v23  ;;  %v2902_v21 = vsub.f32 %v5435_v12, %v5562_v23  ;;  %v2903_v3 = vsub.f32 %v5438_v7, %v5562_v23  ;;  %v2905_v15 = vsub.f32 %v5450_v5, %v5562_v23 }
 0x12a   : > { %7103 = vst [vmem:[#allocation81_spill] sm:$0xff] %v5690_v63  ;;  %7105 = vst [vmem:[#allocation82_spill] sm:$0xff] %v5694_v39  ;;  %v2906_v61 = vsub.f32 %v5453_v16, %v5562_v23  ;;  %v1898_v26 = vadd.f32 %v1897_v1, %v1883_v38  ;;  %v2907_v37 = vsub.f32 %v5456_v33, %v5562_v23  ;;  %v2912_v5 = vmul.f32 1.442695, %v2896_v40 }
 0x12b   : > { %v2908_v57 = vsub.f32 %v5459_v6, %v5562_v23  ;;  %v2909_v12 = vsub.f32 %v5463_v56, %v5562_v23  ;;  %v2910_v7 = vsub.f32 %v5466_v9, %v5562_v23  ;;  %v2911_v51 = vsub.f32 %v5469_v44, %v5562_v23 }
 0x12c   : > { %v1886_v16 = vmul.f32 %v5490_v59, %v5660_v50  ;;  %v1899_v1 = vadd.f32 %v1898_v26, %v1884_v62  ;;  %v2916_v38 = vmul.f32 1.442695, %v2898_v18  ;;  %v2918_v33 = vmul.f32 1.442695, %v2899_v53 }
 0x12d   : > { %v5728_v6 = vmul.f32 %v7106_v45, %v5576_v43  ;;  %v5732_v56 = vmul.f32 %v5290_v27, %v5576_v43  ;;  %v1887_v9 = vmul.f32 %v5493_v14, %v5664_v19  ;;  %3707 = vpow2.f32 %v2912_v5  ;;  %v7110_v43 = vld [vmem:[#allocation40_spill] sm:$0xff] }
 0x12e   : > { %v1888_v44 = vmul.f32 %v5500_v55, %v5668_v17  ;;  %v1900_v23 = vadd.f32 %v1899_v1, %v1885_v20  ;;  %3709 = vpow2.f32 %v2914_v11  ;;  %v2920_v59 = vmul.f32 1.442695, %v2900_v4  ;;  %v7111_v55 = vld [vmem:[#allocation41_spill] sm:$0xff]  ;;  %v7112_v20 = vld [vmem:[#allocation42_spill] sm:$0xff] }
 0x12f   : > { %7107 = vst [vmem:[#allocation83_spill] sm:$0xff] %v5728_v6  ;;  %7108 = vst [vmem:[#allocation84_spill] sm:$0xff] %v5732_v56  ;;  %v1889_v40 = vmul.f32 %v5507_v22, %v5672_v54  ;;  %v1890_v45 = vmul.f32 %v5510_v8, %v5676_v60  ;;  %v1891_v27 = vmul.f32 %v7109_v30, %v5680_v35  ;;  %3711 = vpow2.f32 %v2916_v38  ;;  %v7113_v22 = vld [vmem:[#allocation43_spill] sm:$0xff] }
 0x130   : > { %v1892_v14 = vmul.f32 %v7110_v43, %v5684_v47  ;;  %v1901_v18 = vadd.f32 %v1900_v23, %v1886_v16  ;;  %3713 = vpow2.f32 %v2918_v33  ;;  %v2922_v53 = vmul.f32 1.442695, %v2901_v10 }
 0x131   : > { %v1893_v62 = vmul.f32 %v7111_v55, %v5690_v63  ;;  %v5750_v4 = vmul.f32 %v7112_v20, %v5694_v39  ;;  %v5754_v8 = vmul.f32 %v7113_v22, %v5728_v6  ;;  %v1933_v26 = vrot.slane %v1919_v49, %v7083_v34 }
 0x132   : > { %v1902_v5 = vadd.f32 %v1901_v18, %v1887_v9  ;;  %3715 = vpow2.f32 %v2920_v59  ;;  %v2924_v11 = vmul.f32 1.442695, %v2902_v21  ;;  %v2926_v1 = vmul.f32 1.442695, %v2903_v3 }
 0x133   : > { %v5759_v10 = vmul.f32 %v5543_v36, %v5732_v56  ;;  %v2928_v16 = vmul.f32 1.442695, %v2904_v0  ;;  %v2930_v38 = vmul.f32 1.442695, %v2905_v15  ;;  %v2932_v33 = vmul.f32 1.442695, %v2906_v61 }
 0x134   : > { %v1903_v23 = vadd.f32 %v1902_v5, %v1888_v44  ;;  %3717 = vpow2.f32 %v2922_v53  ;;  %v1934_v30 = vcombine.high %v5645_v24, %v5645_v24  ;;  %v7114_v49 = vcombine.high %v7084_v52, %v7084_v52 }
 0x135   : > { %v2934_v21 = vmul.f32 1.442695, %v2907_v37  ;;  %v2936_v3 = vmul.f32 1.442695, %v2908_v57  ;;  %v1935_v59 = vcombine.high %v1933_v26, %v1933_v26  ;;  %v1942_v36 = vrot.slane %v5645_v24, %v7083_v34 }
 0x136   : > { %v1982_v9 = vrot.slane %v7114_v49, %v7083_v34  ;;  %v1904_v43 = vadd.f32 %v1903_v23, %v1889_v40  ;;  %3719 = vpow2.f32 %v2924_v11  ;;  %v2938_v0 = vmul.f32 1.442695, %v2909_v12  ;;  %v7120_v23 = vld [vmem:[#allocation8_spill] sm:$0xff] }
 0x137   : > { %v2940_v15 = vmul.f32 1.442695, %v2910_v7  ;;  %3721 = vpow2.f32 %v2926_v1  ;;  %v2942_v61 = vmul.f32 1.442695, %v2911_v51  ;;  %v1949_v44 = vrot.slane %v1933_v26, %v7083_v34 }
 0x138   : > { %v1983_v52 = vcombine.high %v5655_v25, %v5655_v25  ;;  %v1905_v18 = vadd.f32 %v1904_v43, %v1890_v45  ;;  %3723 = vpow2.f32 %v2928_v16  ;;  %v1956_v37 = vrot.slane %v1934_v30, %v7083_v34 }
 0x139   : > { %v1984_v57 = vcombine.high %v1982_v9, %v1982_v9  ;;  %3725 = vpow2.f32 %v2930_v38  ;;  %v1963_v24 = vrot.slane %v1935_v59, %v7083_v34  ;;  %v1964_v40 = vcombine.high %v1942_v36, %v1942_v36  ;;  %v3450_v59 = vld [vmem:[%s5111_s9 + $0x100] sm:$0xff] }
 0x13a   : > { %v1965_v12 = vcombine.high %v1949_v44, %v1949_v44  ;;  %v5775_v53 = vpop.eup %3707  ;;  %v1906_v7 = vadd.f32 %v1905_v18, %v1891_v27  ;;  %3727 = vpow2.f32 %v2932_v33  ;;  %v1966_v51 = vcombine.high %v1956_v37, %v1956_v37 }
 0x13b   : > { %7115 = vst [vmem:[#allocation85_spill] sm:$0xff] %v5775_v53  ;;  %v1991_v45 = vrot.slane %v5655_v25, %v7083_v34  ;;  %v5785_v55 = vpop.eup %3709  ;;  %3729 = vpow2.f32 %v2934_v21  ;;  %v1967_v20 = vcombine.high %v1963_v24, %v1963_v24  ;;  %v1998_v22 = vrot.slane %v1982_v9, %v7083_v34 }
 0x13c   : > { %7117 = vst [vmem:[#allocation86_spill] sm:$0xff] %v5785_v55  ;;  %v2005_v26 = vrot.slane %v1983_v52, %v7083_v34  ;;  %v5789_v5 = vpop.eup %3711  ;;  %v1907_v11 = vadd.f32 %v1906_v7, %v1892_v14  ;;  %v2944_v27 = vadd.f32 %v5785_v55, %v5775_v53  ;;  %v2012_v1 = vrot.slane %v1984_v57, %v7083_v34  ;;  %v3465_v53 = vld [vmem:[%s5111_s9 + $0x1f0] sm:$0xff] }
 0x13d   : > { %7118 = vst [vmem:[#allocation87_spill] sm:$0xff] %v5789_v5  ;;  %v2013_v25 = vcombine.high %v1991_v45, %v1991_v45  ;;  %v5794_v16 = vpop.eup %3713  ;;  %3731 = vpow2.f32 %v2936_v3  ;;  %v2014_v38 = vcombine.high %v1998_v22, %v1998_v22  ;;  %v5797_v30 = vrot.slane %v1942_v36, %v7120_v23  ;;  %v3451_v36 = vld [vmem:[%s5111_s9 + $0x110] sm:$0xff] }
 0x13e   : > { %7119 = vst [vmem:[#allocation35_spill] sm:$0xff] %v5794_v16  ;;  %v2015_v33 = vcombine.high %v2005_v26, %v2005_v26  ;;  %v1908_v14 = vadd.f32 %v1907_v11, %v1893_v62  ;;  %3733 = vpow2.f32 %v2938_v0  ;;  %v2945_v49 = vadd.f32 %v5789_v5, %v2944_v27  ;;  %v3464_v5 = vld [vmem:[%s5111_s9 + $0x1e0] sm:$0xff] }
 0x13f   : > { %v5807_v9 = vrot.slane %v1956_v37, %v7120_v23  ;;  %v5809_v21 = vpop.eup %3715  ;;  %3735 = vpow2.f32 %v2940_v15  ;;  %v2016_v3 = vcombine.high %v2012_v1, %v2012_v1  ;;  %v5814_v43 = vrot.slane %v1964_v40, %v7120_v23  ;;  %v3452_v37 = vld [vmem:[%s5111_s9 + $0x120] sm:$0xff] }
 0x140   : > { %7121 = vst [vmem:[#allocation36_spill] sm:$0xff] %v5809_v21  ;;  %v5817_v62 = vrot.slane %v1966_v51, %v7120_v23  ;;  %v1909_v0 = vadd.f32 %v1908_v14, %v5750_v4  ;;  %3737 = vpow2.f32 %v2942_v61  ;;  %v2946_v52 = vadd.f32 %v5794_v16, %v2945_v49  ;;  %v3453_v51 = vld [vmem:[%s5111_s9 + $0x130] sm:$0xff] }
 0x141   : > { %v5822_v15 = vrot.slane %v1949_v44, %v7120_v23  ;;  %v5824_v18 = vpop.eup %3717  ;;  %v5828_v57 = vrot.slane %v1963_v24, %v7120_v23  ;;  %v5831_v40 = vrot.slane %v1965_v12, %v7120_v23  ;;  %v5834_v7 = vrot.slane %v1967_v20, %v7120_v23  ;;  %v3454_v24 = vld [vmem:[%s5111_s9 + $0x140] sm:$0xff]  ;;  %v3455_v20 = vld [vmem:[%s5111_s9 + $0x150] sm:$0xff] }
 0x142   : > { %7122 = vst [vmem:[#allocation9_spill] sm:$0xff] %v5824_v18  ;;  %v5837_v4 = vrot.slane %v1991_v45, %v7120_v23  ;;  %v1910_v61 = vadd.f32 %v1909_v0, %v5754_v8  ;;  %v2947_v44 = vadd.f32 %v5809_v21, %v2946_v52  ;;  %v2116_v11 = vadd.f32 %v3450_v59, %v5797_v30  ;;  %v3456_v52 = vld [vmem:[%s5111_s9 + $0x160] sm:$0xff]  ;;  %v3463_v16 = vld [vmem:[%s5111_s9 + $0x1d0] sm:$0xff] }
 0x143   : > { %v2117_v12 = vadd.f32 %v3451_v36, %v5807_v9  ;;  %v5846_v27 = vpop.eup %3719  ;;  %v5850_v45 = vrot.slane %v2005_v26, %v7120_v23  ;;  %v5853_v8 = vrot.slane %v2013_v25, %v7120_v23  ;;  %v5856_v14 = vrot.slane %v2015_v33, %v7120_v23  ;;  %v3457_v26 = vld [vmem:[%s5111_s9 + $0x170] sm:$0xff]  ;;  %v3462_v21 = vld [vmem:[%s5111_s9 + $0x1c0] sm:$0xff] }
 0x144   : > { %7123 = vst [vmem:[#allocation37_spill] sm:$0xff] %v5846_v27  ;;  %v5859_v49 = vrot.slane %v1998_v22, %v7120_v23  ;;  %v5861_v59 = vpop.eup %3721  ;;  %v1911_v36 = vadd.f32 %v1910_v61, %v5759_v10  ;;  %v2948_v0 = vadd.f32 %v5824_v18, %v2947_v44  ;;  %v5869_v25 = vrot.slane %v2012_v1, %v7120_v23  ;;  %v3459_v10 = vld [vmem:[%s5111_s9 + $0x190] sm:$0xff]  ;;  %v3460_v61 = vld [vmem:[%s5111_s9 + $0x1a0] sm:$0xff] }
 0x145   : > { %7124 = vst [vmem:[#allocation38_spill] sm:$0xff] %v5861_v59  ;;  %v2118_v33 = vadd.f32 %v3452_v37, %v5814_v43  ;;  %v5872_v22 = vpop.eup %3723  ;;  %v3461_v44 = vld [vmem:[%s5111_s9 + $0x1b0] sm:$0xff]  ;;  %v5883_v28 = vrot.slane %v2014_v38, %v7120_v23  ;;  %v5886_v1 = vrot.slane %v2016_v3, %v7120_v23  ;;  %v2119_v31 = vadd.f32 %v3453_v51, %v5817_v62 }
 0x146   : > { %7125 = vst [vmem:[#allocation56_spill] sm:$0xff] %v5872_v22  ;;  %v2120_v37 = vadd.f32 %v3454_v24, %v5822_v15  ;;  %v5890_v13 = vpop.eup %3725  ;;  %v1915_v46 = vadd.f32 %v7127_v32, %v1911_v36  ;;  %v2949_v18 = vadd.f32 %v5846_v27, %v2948_v0  ;;  %v2132_v38 = vmul.f32 %v2116_v11, %v5601_v29 }
 0x147   : > { %7126 = vst [vmem:[#allocation57_spill] sm:$0xff] %v5890_v13  ;;  %v2133_v55 = vmul.f32 %v2117_v12, %v5605_v42  ;;  %v5900_v3 = vpop.eup %3727  ;;  %v2121_v51 = vadd.f32 %v3455_v20, %v5828_v57  ;;  %v2122_v24 = vadd.f32 %v3456_v52, %v5831_v40  ;;  %v2123_v23 = vadd.f32 %v3457_v26, %v5834_v7 }
 0x148   : > { %v2124_v32 = vadd.f32 %v3458_v41, %v5837_v4  ;;  %v5907_v36 = vpop.eup %3729  ;;  %1916 = vst [vmem:[%s5877_s20] sm:$0xff] %v1915_v46  ;;  %v2950_v0 = vadd.f32 %v5861_v59, %v2949_v18  ;;  %v2125_v11 = vadd.f32 %v3459_v10, %v5850_v45  ;;  %v2126_v12 = vadd.f32 %v3460_v61, %v5853_v8 }
 0x149   : > { %v2134_v27 = vmul.f32 %v2118_v33, %v5627_v58  ;;  %v2127_v42 = vadd.f32 %v3461_v44, %v5856_v14  ;;  %v2128_v20 = vadd.f32 %v3462_v21, %v5859_v49  ;;  %v2129_v52 = vadd.f32 %v3463_v16, %v5869_v25 }
 0x14a   : > { %v2130_v26 = vadd.f32 %v3464_v5, %v5883_v28  ;;  %v5918_v41 = vpop.eup %3731  ;;  %v2951_v46 = vadd.f32 %v5872_v22, %v2950_v0  ;;  %v2131_v18 = vadd.f32 %v3465_v53, %v5886_v1  ;;  %v2135_v10 = vmul.f32 %v2119_v31, %v5637_v48  ;;  %v3542_v22 = vld [vmem:[%s5111_s9 + $0x158] sm:$0xff] }
 0x14b   : > { %v2148_v33 = vadd.f32 %v2133_v55, %v2132_v38  ;;  %v5923_v61 = vpop.eup %3733  ;;  %v2136_v21 = vmul.f32 %v2120_v37, %v5641_v2  ;;  %v2137_v16 = vmul.f32 %v2121_v51, %v5660_v50  ;;  %v2138_v5 = vmul.f32 %v2122_v24, %v5664_v19  ;;  %v3537_v37 = vld [vmem:[%s5111_s9 + $0x108] sm:$0xff]  ;;  %v3538_v38 = vld [vmem:[%s5111_s9 + $0x118] sm:$0xff] }
 0x14c   : > { %v2139_v44 = vmul.f32 %v2123_v23, %v5668_v17  ;;  %v5929_v59 = vpop.eup %3735  ;;  %v2952_v0 = vadd.f32 %v5890_v13, %v2951_v46  ;;  %v5933_v53 = vmul.f32 %v2124_v32, %v5672_v54  ;;  %v5936_v31 = vmul.f32 %v2125_v11, %v5676_v60  ;;  %v3539_v51 = vld [vmem:[%s5111_s9 + $0x128] sm:$0xff] }
 0x14d   : > { %v2149_v55 = vadd.f32 %v2148_v33, %v2134_v27  ;;  %v5941_v24 = vpop.eup %3737  ;;  %v5944_v23 = vmul.f32 %v2126_v12, %v5680_v35  ;;  %v5947_v46 = vmul.f32 %v2127_v42, %v5684_v47  ;;  %v5950_v32 = vmul.f32 %v2128_v20, %v5690_v63  ;;  %v3540_v42 = vld [vmem:[%s5111_s9 + $0x138] sm:$0xff]  ;;  %v3541_v47 = vld [vmem:[%s5111_s9 + $0x148] sm:$0xff] }
 0x14e   : > { %v5953_v11 = vmul.f32 %v2129_v52, %v5694_v39  ;;  %v2953_v27 = vadd.f32 %v5900_v3, %v2952_v0  ;;  %v5957_v33 = vmul.f32 %v2130_v26, %v5728_v6  ;;  %v5960_v13 = vmul.f32 %v2131_v18, %v5732_v56  ;;  %v3543_v20 = vld [vmem:[%s5111_s9 + $0x168] sm:$0xff]  ;;  %v3544_v56 = vld [vmem:[%s5111_s9 + $0x178] sm:$0xff] }
 0x14f   : > { %v2150_v12 = vadd.f32 %v2149_v55, %v2135_v10  ;;  %v5967_v63 = vadd.f32 %v3537_v37, %v5797_v30  ;;  %v5970_v52 = vadd.f32 %v3538_v38, %v5807_v9  ;;  %v5973_v0 = vadd.f32 %v3539_v51, %v5814_v43  ;;  %v7131_v26 = vld [vmem:[#allocation17_spill] sm:$0xff]  ;;  %v7132_v9 = vld [vmem:[#allocation18_spill] sm:$0xff]  ;;  %v3546_v38 = vld [vmem:[%s5111_s9 + $0x198] sm:$0xff] }
 0x150   : > { %v2171_v18 = vcombine.high %v7131_v26, %v7131_v26  ;;  %v2954_v10 = vadd.f32 %v5907_v36, %v2953_v27  ;;  %v3545_v6 = vld [vmem:[%s5111_s9 + $0x188] sm:$0xff]  ;;  %v2178_v30 = vrot.slane %v7131_v26, %v7083_v34  ;;  %v2220_v37 = vcombine.high %v7132_v9, %v7132_v9 }
 0x151   : > { %7128 = vst [vmem:[#allocation58_spill] sm:$0xff] %v5967_v63  ;;  %7129 = vst [vmem:[#allocation59_spill] sm:$0xff] %v5970_v52  ;;  %v2151_v55 = vadd.f32 %v2150_v12, %v2136_v21  ;;  %v5986_v43 = vadd.f32 %v3540_v42, %v5817_v62  ;;  %v5989_v51 = vadd.f32 %v3541_v47, %v5822_v15  ;;  %v3547_v26 = vld [vmem:[%s5111_s9 + $0x1a8] sm:$0xff]  ;;  %v3550_v47 = vld [vmem:[%s5111_s9 + $0x1d8] sm:$0xff] }
 0x152   : > { %7130 = vst [vmem:[#allocation60_spill] sm:$0xff] %v5973_v0  ;;  %v5992_v39 = vadd.f32 %v3542_v22, %v5828_v57  ;;  %v2185_v21 = vrot.slane %v2171_v18, %v7083_v34  ;;  %v2955_v27 = vadd.f32 %v5918_v41, %v2954_v10  ;;  %v3548_v0 = vld [vmem:[%s5111_s9 + $0x1b8] sm:$0xff]  ;;  %v3549_v52 = vld [vmem:[%s5111_s9 + $0x1c8] sm:$0xff]  ;;  %v6000_v63 = vadd.f32 %v3543_v20, %v5831_v40 }
 0x153   : > { %v2152_v12 = vadd.f32 %v2151_v55, %v2137_v16  ;;  %v2227_v62 = vrot.slane %v7132_v9, %v7083_v34  ;;  %v6006_v15 = vadd.f32 %v3544_v56, %v5834_v7  ;;  %v6009_v57 = vadd.f32 %v3545_v6, %v5837_v4  ;;  %v3551_v10 = vld [vmem:[%s5111_s9 + $0x1e8] sm:$0xff] }
 0x154   : > { %v2186_v22 = vcombine.high %v2178_v30, %v2178_v30  ;;  %v2234_v42 = vrot.slane %v2220_v37, %v7083_v34  ;;  %v2956_v16 = vadd.f32 %v5923_v61, %v2955_v27  ;;  %v2187_v55 = vcombine.high %v2185_v21, %v2185_v21 }
 0x155   : > { %7133 = vst [vmem:[#allocation61_spill] sm:$0xff] %v6006_v15  ;;  %7134 = vst [vmem:[#allocation62_spill] sm:$0xff] %v6009_v57  ;;  %v2153_v18 = vadd.f32 %v2152_v12, %v2138_v5  ;;  %v2194_v40 = vrot.slane %v2178_v30, %v7083_v34  ;;  %v6016_v20 = vadd.f32 %v3546_v38, %v5850_v45 }
 0x156   : > { %v6019_v56 = vadd.f32 %v3547_v26, %v5853_v8  ;;  %v6022_v6 = vadd.f32 %v3548_v0, %v5856_v14  ;;  %v6025_v7 = vadd.f32 %v3549_v52, %v5859_v49  ;;  %v2957_v4 = vadd.f32 %v5929_v59, %v2956_v16  ;;  %v3552_v52 = vld [vmem:[%s5111_s9 + $0x1f8] sm:$0xff]  ;;  %v7142_v16 = vld [vmem:[#allocation8_spill] sm:$0xff] }
 0x157   : > { %7135 = vst [vmem:[#allocation63_spill] sm:$0xff] %v6016_v20  ;;  %v2154_v5 = vadd.f32 %v2153_v18, %v2139_v44  ;;  %v6029_v9 = vadd.f32 %v3550_v47, %v5869_v25  ;;  %v2235_v37 = vcombine.high %v2227_v62, %v2227_v62  ;;  %v6032_v30 = vadd.f32 %v3551_v10, %v5883_v28  ;;  %v3481_v20 = vld [vmem:[%s5111_s9 + $0x2c0] sm:$0xff] }
 0x158   : > { %7136 = vst [vmem:[#allocation13_spill] sm:$0xff] %v6019_v56  ;;  %7137 = vst [vmem:[#allocation14_spill] sm:$0xff] %v6022_v6  ;;  %v2201_v45 = vrot.slane %v2185_v21, %v7083_v34  ;;  %v2208_v8 = vrot.slane %v2186_v22, %v7083_v34  ;;  %v2236_v38 = vcombine.high %v2234_v42, %v2234_v42 }
 0x159   : > { %7138 = vst [vmem:[#allocation88_spill] sm:$0xff] %v6025_v7  ;;  %7139 = vst [vmem:[#allocation89_spill] sm:$0xff] %v6029_v9  ;;  %v6037_v14 = vadd.f32 %v5941_v24, %v2957_v4  ;;  %v2155_v49 = vadd.f32 %v2154_v5, %v5933_v53  ;;  %v2215_v44 = vrot.slane %v2187_v55, %v7083_v34  ;;  %v3470_v4 = vld [vmem:[%s5111_s9 + $0x210] sm:$0xff]  ;;  %v3477_v9 = vld [vmem:[%s5111_s9 + $0x280] sm:$0xff] }
 0x15a   : > { %7140 = vst [vmem:[#allocation90_spill] sm:$0xff] %v6032_v30  ;;  %v2216_v0 = vcombine.high %v2194_v40, %v2194_v40  ;;  %v2217_v25 = vcombine.high %v2201_v45, %v2201_v45  ;;  %v2218_v27 = vcombine.high %v2208_v8, %v2208_v8  ;;  %v2243_v28 = vrot.slane %v2227_v62, %v7083_v34 }
 0x15b   : > { %v2250_v21 = vrot.slane %v2234_v42, %v7083_v34  ;;  %3739 = vrcp.f32 %v6037_v14  ;;  %v2156_v12 = vadd.f32 %v2155_v49, %v5936_v31  ;;  %v2219_v26 = vcombine.high %v2215_v44, %v2215_v44  ;;  %v3472_v49 = vld [vmem:[%s5111_s9 + $0x230] sm:$0xff] }
 0x15c   : > { %v2257_v47 = vrot.slane %v2235_v37, %v7083_v34  ;;  %v6048_v53 = vadd.f32 %v3552_v52, %v5886_v1  ;;  %v2264_v22 = vrot.slane %v2236_v38, %v7083_v34  ;;  %v6052_v18 = vrot.slane %v2194_v40, %v7142_v16  ;;  %v3469_v1 = vld [vmem:[%s5111_s9 + $0x200] sm:$0xff]  ;;  %v3474_v34 = vld [vmem:[%s5111_s9 + $0x250] sm:$0xff] }
 0x15d   : > { %v6055_v62 = vrot.slane %v2208_v8, %v7142_v16  ;;  %v2157_v42 = vadd.f32 %v2156_v12, %v5944_v23  ;;  %v2265_v31 = vcombine.high %v2243_v28, %v2243_v28  ;;  %v2266_v10 = vcombine.high %v2250_v21, %v2250_v21  ;;  %v3471_v38 = vld [vmem:[%s5111_s9 + $0x220] sm:$0xff] }
 0x15e   : > { %7141 = vst [vmem:[#allocation53_spill] sm:$0xff] %v6048_v53  ;;  %v2267_v55 = vcombine.high %v2257_v47, %v2257_v47  ;;  %v2268_v5 = vcombine.high %v2264_v22, %v2264_v22  ;;  %v6061_v37 = vrot.slane %v2216_v0, %v7142_v16  ;;  %v6064_v40 = vrot.slane %v2218_v27, %v7142_v16  ;;  %v3473_v52 = vld [vmem:[%s5111_s9 + $0x240] sm:$0xff]  ;;  %v3476_v53 = vld [vmem:[%s5111_s9 + $0x270] sm:$0xff] }
 0x15f   : > { %v6067_v8 = vrot.slane %v2201_v45, %v7142_v16  ;;  %v2158_v23 = vadd.f32 %v2157_v42, %v5947_v46  ;;  %v6074_v12 = vrot.slane %v2215_v44, %v7142_v16  ;;  %v6077_v0 = vrot.slane %v2217_v25, %v7142_v16  ;;  %v3475_v45 = vld [vmem:[%s5111_s9 + $0x260] sm:$0xff] }
 0x160   : > { %v6080_v27 = vrot.slane %v2219_v26, %v7142_v16  ;;  %v6086_v30 = vrot.slane %v2243_v28, %v7142_v16  ;;  %v6089_v46 = vrot.slane %v2257_v47, %v7142_v16  ;;  %v2368_v44 = vadd.f32 %v3469_v1, %v6052_v18  ;;  %v3478_v26 = vld [vmem:[%s5111_s9 + $0x290] sm:$0xff]  ;;  %v3479_v47 = vld [vmem:[%s5111_s9 + $0x2a0] sm:$0xff] }
 0x161   : > { %v2369_v42 = vadd.f32 %v3470_v4, %v6055_v62  ;;  %v2159_v25 = vadd.f32 %v2158_v23, %v5950_v32  ;;  %v6097_v7 = vrot.slane %v2265_v31, %v7142_v16  ;;  %v6100_v6 = vrot.slane %v2267_v55, %v7142_v16  ;;  %v3480_v31 = vld [vmem:[%s5111_s9 + $0x2b0] sm:$0xff] }
 0x162   : > { %v6103_v28 = vrot.slane %v2250_v21, %v7142_v16  ;;  %v6107_v56 = vrot.slane %v2264_v22, %v7142_v16  ;;  %v2370_v1 = vadd.f32 %v3471_v38, %v6061_v37  ;;  %v2371_v4 = vadd.f32 %v3472_v49, %v6064_v40  ;;  %v7143_v49 = vld [vmem:[#allocation65_spill] sm:$0xff] }
 0x163   : > { %v2372_v32 = vadd.f32 %v3473_v52, %v6067_v8  ;;  %v2160_v23 = vadd.f32 %v2159_v25, %v5953_v11  ;;  %v2373_v55 = vadd.f32 %v3474_v34, %v6074_v12  ;;  %v2374_v21 = vadd.f32 %v3475_v45, %v6077_v0 }
 0x164   : > { %v2375_v57 = vadd.f32 %v3476_v53, %v6080_v27  ;;  %v2376_v22 = vadd.f32 %v3477_v9, %v6086_v30  ;;  %v2377_v15 = vadd.f32 %v3478_v26, %v6089_v46  ;;  %v2384_v38 = vmul.f32 %v2368_v44, %v5601_v29  ;;  %v3569_v29 = vld [vmem:[%s5111_s9 + $0x2f8] sm:$0xff] }
 0x165   : > { %v2385_v52 = vmul.f32 %v2369_v42, %v7143_v49  ;;  %v2161_v11 = vadd.f32 %v2160_v23, %v5957_v33  ;;  %v6124_v25 = vrot.slane %v2266_v10, %v7142_v16  ;;  %v6127_v34 = vrot.slane %v2268_v5, %v7142_v16  ;;  %v3554_v10 = vld [vmem:[%s5111_s9 + $0x208] sm:$0xff]  ;;  %v3557_v23 = vld [vmem:[%s5111_s9 + $0x238] sm:$0xff] }
 0x166   : > { %v2378_v53 = vadd.f32 %v3479_v47, %v6097_v7  ;;  %v6131_v9 = vadd.f32 %v3480_v31, %v6100_v6  ;;  %v6134_v45 = vadd.f32 %v3481_v20, %v6103_v28  ;;  %v2386_v44 = vmul.f32 %v2370_v1, %v5627_v58  ;;  %v3555_v47 = vld [vmem:[%s5111_s9 + $0x218] sm:$0xff]  ;;  %v3556_v1 = vld [vmem:[%s5111_s9 + $0x228] sm:$0xff] }
 0x167   : > { %7144 = vst [vmem:[#allocation54_spill] sm:$0xff] %v6127_v34  ;;  %v2387_v33 = vmul.f32 %v2371_v4, %v5637_v48  ;;  %v2162_v42 = vadd.f32 %v2161_v11, %v5960_v13  ;;  %v2388_v5 = vmul.f32 %v2372_v32, %v5641_v2  ;;  %v6142_v26 = vmul.f32 %v2373_v55, %v5660_v50  ;;  %v3559_v11 = vld [vmem:[%s5111_s9 + $0x258] sm:$0xff]  ;;  %v3566_v58 = vld [vmem:[%s5111_s9 + $0x2c8] sm:$0xff] }
 0x168   : > { %7145 = vst [vmem:[#allocation55_spill] sm:$0xff] %v6131_v9  ;;  %7146 = vst [vmem:[#allocation94_spill] sm:$0xff] %v6134_v45  ;;  %v6145_v20 = vmul.f32 %v2374_v21, %v5664_v19  ;;  %v3740_v4 = vpop.eup %3739  ;;  %v6151_v31 = vmul.f32 %v2375_v57, %v5668_v17  ;;  %v6154_v13 = vmul.f32 %v2376_v22, %v5672_v54  ;;  %v3558_v21 = vld [vmem:[%s5111_s9 + $0x248] sm:$0xff]  ;;  %v7148_v2 = vstv %s5560_s16  ;;  %v3561_v22 = vld [vmem:[%s5111_s9 + $0x278] sm:$0xff] }
 0x169   : > { %v6157_v32 = vmul.f32 %v2377_v15, %v5676_v60  ;;  %v2400_v55 = vadd.f32 %v2385_v52, %v2384_v38  ;;  %v3560_v19 = vld [vmem:[%s5111_s9 + $0x268] sm:$0xff]  ;;  %v2960_v50 = vmul.f32 %v3740_v4, %v6037_v14  ;;  %v2166_v48 = vadd.f32 %v7148_v2, %v2162_v42  ;;  %v3563_v17 = vld [vmem:[%s5111_s9 + $0x298] sm:$0xff] }
 0x16a   : > { %v6166_v57 = vmul.f32 %v2378_v53, %v5680_v35  ;;  %v3562_v54 = vld [vmem:[%s5111_s9 + $0x288] sm:$0xff]  ;;  %v6172_v15 = vadd.f32 %v3554_v10, %v6052_v18  ;;  %v3565_v60 = vld [vmem:[%s5111_s9 + $0x2b8] sm:$0xff]  ;;  %v6178_v14 = vadd.f32 %v3555_v47, %v6055_v62  ;;  %v6181_v2 = vadd.f32 %v3556_v1, %v6061_v37 }
 0x16b   : > { %7147 = vst [vmem:[#allocation21_spill] sm:$0xff] %v6157_v32  ;;  %v2401_v38 = vadd.f32 %v2400_v55, %v2386_v44  ;;  %v3564_v52 = vld [vmem:[%s5111_s9 + $0x2a8] sm:$0xff]  ;;  %v6184_v53 = vadd.f32 %v3557_v23, %v6064_v40  ;;  %v2961_v42 = vsub.f32 2.0, %v2960_v50  ;;  %3466 = vst [vmem:[%s5877_s20 + $0x10] sm:$0xff] %v2166_v48  ;;  %v3567_v35 = vld [vmem:[%s5111_s9 + $0x2d8] sm:$0xff]  ;;  %v6191_v18 = vadd.f32 %v3558_v21, %v6067_v8 }
 0x16c   : > { %7149 = vst [vmem:[#allocation22_spill] sm:$0xff] %v6166_v57  ;;  %v3568_v49 = vld [vmem:[%s5111_s9 + $0x2e8] sm:$0xff]  ;;  %v6194_v44 = vadd.f32 %v3559_v11, %v6074_v12  ;;  %v6197_v62 = vadd.f32 %v3560_v19, %v6077_v0  ;;  %v6200_v37 = vadd.f32 %v3561_v22, %v6080_v27  ;;  %v6203_v40 = vadd.f32 %v3562_v54, %v6086_v30  ;;  %v7157_v23 = vld [vmem:[#allocation38_spill] sm:$0xff]  ;;  %v7158_v55 = vld [vmem:[#allocation56_spill] sm:$0xff] }
 0x16d   : > { %v2402_v10 = vadd.f32 %v2401_v38, %v2387_v33  ;;  %v6206_v48 = vadd.f32 %v3563_v17, %v6089_v46  ;;  %v2962_v50 = vmul.f32 %v3740_v4, %v2961_v42  ;;  %v6209_v8 = vadd.f32 %v3564_v52, %v6097_v7  ;;  %v7150_v30 = vld [vmem:[#allocation85_spill] sm:$0xff]  ;;  %v7151_v7 = vld [vmem:[#allocation86_spill] sm:$0xff]  ;;  %v7187_v32 = vld [vmem:[#allocation60_spill] sm:$0xff] }
 0x16e   : > { %v6212_v12 = vadd.f32 %v3565_v60, %v6100_v6  ;;  %v6215_v19 = vadd.f32 %v3566_v58, %v6103_v28  ;;  %v6218_v27 = vadd.f32 %v3567_v35, %v6107_v56  ;;  %v6221_v54 = vadd.f32 %v3568_v49, %v6124_v25  ;;  %v7152_v60 = vld [vmem:[#allocation87_spill] sm:$0xff]  ;;  %v7154_v35 = vld [vmem:[#allocation36_spill] sm:$0xff]  ;;  %v7155_v49 = vld [vmem:[#allocation9_spill] sm:$0xff] }
 0x16f   : > { %v2403_v0 = vadd.f32 %v2402_v10, %v2388_v5  ;;  %v6224_v17 = vadd.f32 %v3569_v29, %v6127_v34  ;;  %v6227_v46 = vmul.f32 %v7150_v30, %v2962_v50  ;;  %v6230_v33 = vmul.f32 %v7151_v7, %v2962_v50  ;;  %v7153_v58 = vld [vmem:[#allocation35_spill] sm:$0xff]  ;;  %v7156_v29 = vld [vmem:[#allocation37_spill] sm:$0xff] }
 0x170   : > { %v6233_v6 = vmul.f32 %v7152_v60, %v2962_v50  ;;  %v6236_v28 = vmul.f32 %v7153_v58, %v2962_v50  ;;  %v6239_v5 = vmul.f32 %v7154_v35, %v2962_v50  ;;  %v6242_v47 = vmul.f32 %v7155_v49, %v2962_v50  ;;  %v7159_v11 = vld [vmem:[#allocation57_spill] sm:$0xff]  ;;  %v7161_v60 = vld [vmem:[#allocation44_spill] sm:$0xff] }
 0x171   : > { %v6245_v1 = vmul.f32 %v7156_v29, %v2962_v50  ;;  %v6248_v4 = vmul.f32 %v7157_v23, %v2962_v50  ;;  %v6251_v21 = vmul.f32 %v7158_v55, %v2962_v50  ;;  %v6254_v22 = vmul.f32 %v7159_v11, %v2962_v50  ;;  %v7168_v11 = vld [vmem:[#allocation51_spill] sm:$0xff] }
 0x172   : > { %v6257_v38 = vmul.f32 %v5900_v3, %v2962_v50  ;;  %v6260_v52 = vmul.f32 %v5907_v36, %v2962_v50  ;;  %v6263_v42 = vmul.f32 %v5918_v41, %v2962_v50  ;;  %v6266_v10 = vmul.f32 %v5923_v61, %v2962_v50  ;;  %v7162_v3 = vld [vmem:[#allocation45_spill] sm:$0xff]  ;;  %v7163_v36 = vld [vmem:[#allocation46_spill] sm:$0xff]  ;;  %v7164_v41 = vld [vmem:[#allocation47_spill] sm:$0xff] }
 0x173   : > { %v6269_v30 = vmul.f32 %v5929_v59, %v2962_v50  ;;  %v6272_v7 = vmul.f32 %v5941_v24, %v2962_v50  ;;  %v3011_v58 = vmul.f32 %v7161_v60, %v6227_v46  ;;  %v3012_v35 = vmul.f32 %v7162_v3, %v6230_v33  ;;  %v7165_v61 = vld [vmem:[#allocation48_spill] sm:$0xff]  ;;  %v7166_v59 = vld [vmem:[#allocation49_spill] sm:$0xff]  ;;  %v7167_v24 = vld [vmem:[#allocation50_spill] sm:$0xff] }
 0x174   : > { %v3013_v49 = vmul.f32 %v7163_v36, %v6233_v6  ;;  %v3014_v29 = vmul.f32 %v7164_v41, %v6236_v28  ;;  %v3015_v23 = vmul.f32 %v7165_v61, %v6239_v5  ;;  %v3016_v55 = vmul.f32 %v7166_v59, %v6242_v47  ;;  %v7169_v3 = vld [vmem:[#allocation52_spill] sm:$0xff]  ;;  %v7171_v36 = vld [vmem:[#allocation66_spill] sm:$0xff]  ;;  %v7173_v41 = vld [vmem:[#allocation67_spill] sm:$0xff] }
 0x175   : > { %7160 = vst [vmem:[#allocation15_spill] sm:$0xff] %v6272_v7  ;;  %v3017_v50 = vmul.f32 %v7167_v24, %v6245_v1  ;;  %v3018_v60 = vmul.f32 %v7168_v11, %v6248_v4  ;;  %v6292_v16 = vmul.f32 %v7169_v3, %v6251_v21  ;;  %v6296_v34 = vmul.f32 %v7171_v36, %v6254_v22  ;;  %v7175_v59 = vld [vmem:[#allocation68_spill] sm:$0xff]  ;;  %v7177_v24 = vld [vmem:[#allocation69_spill] sm:$0xff]  ;;  %v7179_v11 = vld [vmem:[#allocation70_spill] sm:$0xff] }
 0x176   : > { %v6300_v61 = vmul.f32 %v7173_v41, %v6257_v38  ;;  %v6304_v57 = vmul.f32 %v7175_v59, %v6260_v52  ;;  %v6308_v45 = vmul.f32 %v7177_v24, %v6263_v42  ;;  %v6312_v3 = vmul.f32 %v7179_v11, %v6266_v10  ;;  %v7185_v59 = vld [vmem:[#allocation58_spill] sm:$0xff]  ;;  %v7186_v24 = vld [vmem:[#allocation59_spill] sm:$0xff] }
 0x177   : > { %7170 = vst [vmem:[#allocation23_spill] sm:$0xff] %v6292_v16  ;;  %7172 = vst [vmem:[#allocation24_spill] sm:$0xff] %v6296_v34  ;;  %v7181_v16 = vld [vmem:[#allocation71_spill] sm:$0xff]  ;;  %v7183_v34 = vld [vmem:[#allocation73_spill] sm:$0xff]  ;;  %v3080_v11 = vmul.f32 %v7187_v32, %v6233_v6 }
 0x178   : > { %7174 = vst [vmem:[#allocation16_spill] sm:$0xff] %v6300_v61  ;;  %7176 = vst [vmem:[#allocation91_spill] sm:$0xff] %v6304_v57  ;;  %v6316_v36 = vmul.f32 %v7181_v16, %v6269_v30  ;;  %v6320_v41 = vmul.f32 %v7183_v34, %v6272_v7  ;;  %v3027_v61 = vadd.f32 %v3012_v35, %v3011_v58  ;;  %v7189_v32 = vld [vmem:[#allocation62_spill] sm:$0xff] }
 0x179   : > { %7178 = vst [vmem:[#allocation92_spill] sm:$0xff] %v6308_v45  ;;  %7180 = vst [vmem:[#allocation25_spill] sm:$0xff] %v6312_v3  ;;  %v3078_v57 = vmul.f32 %v7185_v59, %v6227_v46  ;;  %v3079_v45 = vmul.f32 %v7186_v24, %v6230_v33  ;;  %v3081_v3 = vmul.f32 %v5986_v43, %v6236_v28  ;;  %v7188_v59 = vld [vmem:[#allocation61_spill] sm:$0xff]  ;;  %v7191_v43 = vld [vmem:[#allocation63_spill] sm:$0xff] }
 0x17a   : > { %7182 = vst [vmem:[#allocation26_spill] sm:$0xff] %v6316_v36  ;;  %7184 = vst [vmem:[#allocation27_spill] sm:$0xff] %v6320_v41  ;;  %v3082_v16 = vmul.f32 %v5989_v51, %v6239_v5  ;;  %v3083_v34 = vmul.f32 %v5992_v39, %v6242_v47  ;;  %v3084_v58 = vmul.f32 %v6000_v63, %v6245_v1  ;;  %v7193_v51 = vld [vmem:[#allocation13_spill] sm:$0xff]  ;;  %v7195_v39 = vld [vmem:[#allocation14_spill] sm:$0xff] }
 0x17b   : > { %v3028_v35 = vadd.f32 %v3027_v61, %v3013_v49  ;;  %v6338_v24 = vmul.f32 %v7188_v59, %v6248_v4  ;;  %v6342_v41 = vmul.f32 %v7189_v32, %v6251_v21  ;;  %v6346_v36 = vmul.f32 %v7191_v43, %v6254_v22  ;;  %v7196_v49 = vld [vmem:[#allocation88_spill] sm:$0xff]  ;;  %v7197_v59 = vld [vmem:[#allocation89_spill] sm:$0xff] }
 0x17c   : > { %v6350_v9 = vmul.f32 %v7193_v51, %v6257_v38  ;;  %v6354_v63 = vmul.f32 %v7195_v39, %v6260_v52  ;;  %v6358_v61 = vmul.f32 %v7196_v49, %v6263_v42  ;;  %v6362_v32 = vmul.f32 %v7197_v59, %v6266_v10  ;;  %v7200_v51 = vld [vmem:[#allocation53_spill] sm:$0xff] }
 0x17d   : > { %7190 = vst [vmem:[#allocation28_spill] sm:$0xff] %v6342_v41  ;;  %7192 = vst [vmem:[#allocation29_spill] sm:$0xff] %v6346_v36  ;;  %v3029_v43 = vadd.f32 %v3028_v35, %v3014_v29  ;;  %v7198_v36 = vld [vmem:[#allocation90_spill] sm:$0xff]  ;;  %v3094_v39 = vadd.f32 %v3079_v45, %v3078_v57  ;;  %v2404_v49 = vadd.f32 %v2403_v0, %v6142_v26 }
 0x17e   : > { %7194 = vst [vmem:[#allocation30_spill] sm:$0xff] %v6350_v9  ;;  %v6367_v41 = vmul.f32 %v7198_v36, %v6269_v30  ;;  %v6371_v9 = vmul.f32 %v7200_v51, %v6272_v7  ;;  %v3145_v59 = vmul.f32 %v6172_v15, %v6227_v46  ;;  %v3146_v29 = vmul.f32 %v6178_v14, %v6230_v33 }
 0x17f   : > { %v3147_v36 = vmul.f32 %v6181_v2, %v6233_v6  ;;  %v3030_v35 = vadd.f32 %v3029_v43, %v3015_v23  ;;  %v3148_v45 = vmul.f32 %v6184_v53, %v6236_v28  ;;  %v3149_v26 = vmul.f32 %v6191_v18, %v6239_v5 }
 0x180   : > { %7199 = vst [vmem:[#allocation31_spill] sm:$0xff] %v6367_v41  ;;  %v3095_v41 = vadd.f32 %v3094_v39, %v3080_v11  ;;  %v2405_v57 = vadd.f32 %v2404_v49, %v6145_v20  ;;  %v3150_v15 = vmul.f32 %v6194_v44, %v6242_v47  ;;  %v3151_v14 = vmul.f32 %v6197_v62, %v6245_v1  ;;  %v3482_v20 = vld [vmem:[%s5111_s9 + $0x2d0] sm:$0xff]  ;;  %v7201_v11 = vld [vmem:[#allocation19_spill] sm:$0xff]  ;;  %v7202_v39 = vld [vmem:[#allocation80_spill] sm:$0xff] }
 0x181   : > { %v6399_v2 = vmul.f32 %v6200_v37, %v6248_v4  ;;  %v3031_v0 = vadd.f32 %v3030_v35, %v3016_v55  ;;  %v6403_v53 = vmul.f32 %v6203_v40, %v6251_v21  ;;  %v6407_v18 = vmul.f32 %v6206_v48, %v6254_v22  ;;  %v7203_v49 = vld [vmem:[#allocation55_spill] sm:$0xff] }
 0x182   : > { %v3096_v23 = vadd.f32 %v3095_v41, %v3081_v3  ;;  %v2406_v44 = vadd.f32 %v2405_v57, %v6151_v31  ;;  %v6413_v62 = vmul.f32 %v6209_v8, %v6257_v38  ;;  %v6417_v37 = vmul.f32 %v6212_v12, %v6260_v52  ;;  %v3483_v3 = vld [vmem:[%s5111_s9 + $0x2e0] sm:$0xff] }
 0x183   : > { %v6421_v40 = vmul.f32 %v6215_v19, %v6263_v42  ;;  %v3032_v48 = vadd.f32 %v3031_v0, %v3017_v50  ;;  %v6426_v31 = vmul.f32 %v6218_v27, %v6266_v10  ;;  %v6430_v8 = vmul.f32 %v6221_v54, %v6269_v30  ;;  %v3484_v54 = vld [vmem:[%s5111_s9 + $0x2f0] sm:$0xff] }
 0x184   : > { %v3097_v55 = vadd.f32 %v3096_v23, %v3082_v16  ;;  %v2407_v41 = vadd.f32 %v2406_v44, %v6154_v13  ;;  %v6435_v12 = vmul.f32 %v6224_v17, %v6272_v7  ;;  %v3161_v19 = vadd.f32 %v3146_v29, %v3145_v59  ;;  %v7204_v17 = vld [vmem:[#allocation21_spill] sm:$0xff]  ;;  %v7205_v29 = vld [vmem:[#allocation23_spill] sm:$0xff] }
 0x185   : > { %v2423_v50 = vcombine.high %v7201_v11, %v7201_v11  ;;  %v3033_v16 = vadd.f32 %v3032_v48, %v3018_v60  ;;  %v2381_v27 = vadd.f32 %v3482_v20, %v6107_v56  ;;  %v2382_v13 = vadd.f32 %v3483_v3, %v6124_v25  ;;  %v7207_v56 = vld [vmem:[#allocation81_spill] sm:$0xff]  ;;  %v7208_v20 = vld [vmem:[#allocation94_spill] sm:$0xff]  ;;  %v7210_v3 = vld [vmem:[#allocation24_spill] sm:$0xff] }
 0x186   : > { %v3098_v43 = vadd.f32 %v3097_v55, %v3083_v34  ;;  %v2395_v35 = vmul.f32 %v7203_v49, %v7202_v39  ;;  %v2408_v57 = vadd.f32 %v2407_v41, %v7204_v17  ;;  %v3162_v59 = vadd.f32 %v3161_v19, %v3147_v36  ;;  %v7206_v34 = vld [vmem:[#allocation10_spill] sm:$0xff]  ;;  %v7214_v39 = vld [vmem:[#allocation20_spill] sm:$0xff] }
 0x187   : > { %v3034_v0 = vadd.f32 %v3033_v16, %v7205_v29  ;;  %v2417_v60 = vstv %s6386_s13  ;;  %v2430_v44 = vrot.slane %v7201_v11, %v7206_v34  ;;  %v2396_v48 = vmul.f32 %v7208_v20, %v7207_v56  ;;  %v7209_v55 = vld [vmem:[#allocation22_spill] sm:$0xff]  ;;  %v3580_v56 = vld [vmem:[%s5111_s9 + $0x398] sm:$0xff] }
 0x188   : > { %v3099_v23 = vadd.f32 %v3098_v43, %v3084_v58  ;;  %v2409_v51 = vadd.f32 %v2408_v57, %v7209_v55  ;;  %v3163_v7 = vadd.f32 %v3162_v59, %v3148_v45  ;;  %v2437_v25 = vrot.slane %v2423_v50, %v7206_v34  ;;  %v7211_v36 = vld [vmem:[#allocation54_spill] sm:$0xff]  ;;  %v7213_v43 = vld [vmem:[#allocation83_spill] sm:$0xff]  ;;  %v7215_v57 = vld [vmem:[#allocation16_spill] sm:$0xff] }
 0x189   : > { %v3035_v49 = vadd.f32 %v3034_v0, %v7210_v3  ;;  %v2383_v19 = vadd.f32 %v3484_v54, %v7211_v36  ;;  %v7212_v16 = vld [vmem:[#allocation82_spill] sm:$0xff]  ;;  %v2398_v17 = vmul.f32 %v2382_v13, %v7213_v43  ;;  %v2472_v20 = vcombine.high %v7214_v39, %v7214_v39  ;;  %v7216_v59 = vld [vmem:[#allocation28_spill] sm:$0xff]  ;;  %v7217_v3 = vld [vmem:[#allocation91_spill] sm:$0xff] }
 0x18a   : > { %v3100_v41 = vadd.f32 %v3099_v23, %v6338_v24  ;;  %v2397_v58 = vmul.f32 %v2381_v27, %v7212_v16  ;;  %v2410_v11 = vadd.f32 %v2409_v51, %v2395_v35  ;;  %v3164_v29 = vadd.f32 %v3163_v7, %v3149_v26  ;;  %v7218_v51 = vld [vmem:[#allocation29_spill] sm:$0xff]  ;;  %v7219_v26 = vld [vmem:[#allocation84_spill] sm:$0xff] }
 0x18b   : > { %v3036_v45 = vadd.f32 %v3035_v49, %v7215_v57  ;;  %v2438_v55 = vcombine.high %v2430_v44, %v2430_v44  ;;  %v2446_v0 = vrot.slane %v2430_v44, %v7206_v34  ;;  %v2439_v54 = vcombine.high %v2437_v25, %v2437_v25  ;;  %v7220_v44 = vld [vmem:[#allocation92_spill] sm:$0xff]  ;;  %v3579_v16 = vld [vmem:[%s5111_s9 + $0x388] sm:$0xff] }
 0x18c   : > { %v3101_v50 = vadd.f32 %v3100_v41, %v7216_v59  ;;  %v2411_v24 = vadd.f32 %v2410_v11, %v2396_v48  ;;  %v3165_v23 = vadd.f32 %v3164_v29, %v3150_v15  ;;  %v2479_v27 = vrot.slane %v7214_v39, %v7206_v34  ;;  %v7221_v15 = vld [vmem:[#allocation30_spill] sm:$0xff] }
 0x18d   : > { %v3037_v13 = vadd.f32 %v3036_v45, %v7217_v3  ;;  %v2399_v35 = vmul.f32 %v2383_v19, %v7219_v26  ;;  %v2453_v41 = vrot.slane %v2437_v25, %v7206_v34  ;;  %v2486_v57 = vrot.slane %v2472_v20, %v7206_v34  ;;  %v7222_v3 = vld [vmem:[#allocation25_spill] sm:$0xff]  ;;  %v7239_v26 = vld [vmem:[#allocation78_spill] sm:$0xff] }
 0x18e   : > { %v3102_v7 = vadd.f32 %v3101_v50, %v7218_v51  ;;  %v2412_v43 = vadd.f32 %v2411_v24, %v2397_v58  ;;  %v3166_v49 = vadd.f32 %v3165_v23, %v3151_v14  ;;  %v2460_v29 = vrot.slane %v2438_v55, %v7206_v34  ;;  %v7223_v51 = vld [vmem:[#allocation26_spill] sm:$0xff] }
 0x18f   : > { %v3038_v48 = vadd.f32 %v3037_v13, %v7220_v44  ;;  %v2468_v39 = vcombine.high %v2446_v0, %v2446_v0  ;;  %v2467_v50 = vrot.slane %v2439_v54, %v7206_v34  ;;  %v2487_v19 = vcombine.high %v2479_v27, %v2479_v27 }
 0x190   : > { %v3103_v11 = vadd.f32 %v3102_v7, %v7221_v15  ;;  %v2413_v59 = vadd.f32 %v2412_v43, %v2398_v17  ;;  %v3167_v45 = vadd.f32 %v3166_v49, %v6399_v2  ;;  %v2469_v25 = vcombine.high %v2453_v41, %v2453_v41 }
 0x191   : > { %v3039_v58 = vadd.f32 %v3038_v48, %v7222_v3  ;;  %v2470_v24 = vcombine.high %v2460_v29, %v2460_v29  ;;  %v2488_v13 = vcombine.high %v2486_v57, %v2486_v57  ;;  %v2495_v55 = vrot.slane %v2479_v27, %v7206_v34  ;;  %v7225_v48 = vld [vmem:[#allocation8_spill] sm:$0xff] }
 0x192   : > { %v3104_v14 = vadd.f32 %v3103_v11, %v6354_v63  ;;  %v2414_v20 = vadd.f32 %v2413_v59, %v2399_v35  ;;  %v3168_v23 = vadd.f32 %v3167_v45, %v6403_v53  ;;  %v2471_v17 = vcombine.high %v2467_v50, %v2467_v50  ;;  %v7224_v53 = vld [vmem:[#allocation27_spill] sm:$0xff]  ;;  %v3488_v59 = vld [vmem:[%s5111_s9 + $0x300] sm:$0xff]  ;;  %v3489_v45 = vld [vmem:[%s5111_s9 + $0x310] sm:$0xff] }
 0x193   : > { %v3040_v43 = vadd.f32 %v3039_v58, %v7223_v51  ;;  %v2502_v54 = vrot.slane %v2486_v57, %v7206_v34  ;;  %v2509_v35 = vrot.slane %v2487_v19, %v7206_v34  ;;  %v2517_v49 = vcombine.high %v2495_v55, %v2495_v55  ;;  %v3493_v51 = vld [vmem:[%s5111_s9 + $0x350] sm:$0xff] }
 0x194   : > { %v3105_v2 = vadd.f32 %v3104_v14, %v6358_v61  ;;  %v2418_v63 = vadd.f32 %v2417_v60, %v2414_v20  ;;  %v3169_v7 = vadd.f32 %v3168_v23, %v6407_v18  ;;  %v6493_v15 = vrot.slane %v2446_v0, %v7225_v48  ;;  %v7227_v0 = vld [vmem:[#allocation31_spill] sm:$0xff] }
 0x195   : > { %v3041_v44 = vadd.f32 %v3040_v43, %v7224_v53  ;;  %v6496_v61 = vrot.slane %v2460_v29, %v7225_v48  ;;  %v2516_v18 = vrot.slane %v2488_v13, %v7206_v34  ;;  %v2518_v57 = vcombine.high %v2502_v54, %v2502_v54  ;;  %v3490_v34 = vld [vmem:[%s5111_s9 + $0x320] sm:$0xff] }
 0x196   : > { %v3106_v27 = vadd.f32 %v3105_v2, %v6362_v32  ;;  %3485 = vst [vmem:[%s5877_s20 + $0x20] sm:$0xff] %v2418_v63  ;;  %v3170_v60 = vadd.f32 %v3169_v7, %v6413_v62  ;;  %v2519_v11 = vcombine.high %v2509_v35, %v2509_v35  ;;  %v7226_v32 = vstv %s5540_s15  ;;  %v3492_v13 = vld [vmem:[%s5111_s9 + $0x340] sm:$0xff]  ;;  %v3495_v63 = vld [vmem:[%s5111_s9 + $0x370] sm:$0xff] }
 0x197   : > { %v3044_v19 = vadd.f32 %v7226_v32, %v3041_v44  ;;  %v6507_v29 = vrot.slane %v2468_v39, %v7225_v48  ;;  %v6510_v58 = vrot.slane %v2470_v24, %v7225_v48  ;;  %v6515_v14 = vrot.slane %v2453_v41, %v7225_v48  ;;  %v3491_v24 = vld [vmem:[%s5111_s9 + $0x330] sm:$0xff]  ;;  %v3494_v2 = vld [vmem:[%s5111_s9 + $0x360] sm:$0xff] }
 0x198   : > { %v3107_v3 = vadd.f32 %v3106_v27, %v7227_v0  ;;  %v3171_v62 = vadd.f32 %v3170_v60, %v6417_v37  ;;  %v6518_v20 = vrot.slane %v2467_v50, %v7225_v48  ;;  %v6521_v23 = vrot.slane %v2469_v25, %v7225_v48  ;;  %v7229_v0 = vld [vmem:[#allocation64_spill] sm:$0xff] }
 0x199   : > { %3045 = vst [vmem:[%s5877_s20 + $0x8] sm:$0xff] %v3044_v19  ;;  %v6529_v37 = vrot.slane %v2471_v17, %v7225_v48  ;;  %v2620_v41 = vadd.f32 %v3488_v59, %v6493_v15  ;;  %v2621_v50 = vadd.f32 %v3489_v45, %v6496_v61  ;;  %v2520_v25 = vcombine.high %v2516_v18, %v2516_v18  ;;  %v3496_v59 = vld [vmem:[%s5111_s9 + $0x380] sm:$0xff]  ;;  %v3497_v45 = vld [vmem:[%s5111_s9 + $0x390] sm:$0xff] }
 0x19a   : > { %v3108_v39 = vadd.f32 %v3107_v3, %v6371_v9  ;;  %v3172_v43 = vadd.f32 %v3171_v62, %v6421_v40  ;;  %v2575_v9 = vrot.slane %v2495_v55, %v7225_v48  ;;  %v2579_v7 = vrot.slane %v2509_v35, %v7225_v48  ;;  %v7230_v3 = vld [vmem:[#allocation65_spill] sm:$0xff] }
 0x19b   : > { %v7228_v53 = vstv %s6375_s26  ;;  %v2583_v17 = vrot.slane %v2517_v49, %v7225_v48  ;;  %v6542_v27 = vrot.slane %v2519_v11, %v7225_v48  ;;  %v2622_v60 = vadd.f32 %v3490_v34, %v6507_v29  ;;  %v3498_v49 = vld [vmem:[%s5111_s9 + $0x3a0] sm:$0xff] }
 0x19c   : > { %v3111_v44 = vadd.f32 %v7228_v53, %v3108_v39  ;;  %v3173_v40 = vadd.f32 %v3172_v43, %v6426_v31  ;;  %v2623_v32 = vadd.f32 %v3491_v24, %v6510_v58  ;;  %v2624_v55 = vadd.f32 %v3492_v13, %v6515_v14 }
 0x19d   : > { %v2625_v35 = vadd.f32 %v3493_v51, %v6518_v20  ;;  %v2626_v11 = vadd.f32 %v3494_v2, %v6521_v23  ;;  %v2627_v19 = vadd.f32 %v3495_v63, %v6529_v37  ;;  %v2636_v31 = vmul.f32 %v2620_v41, %v7229_v0  ;;  %v3571_v51 = vld [vmem:[%s5111_s9 + $0x308] sm:$0xff]  ;;  %v3572_v2 = vld [vmem:[%s5111_s9 + $0x318] sm:$0xff]  ;;  %v7237_v0 = vld [vmem:[#allocation76_spill] sm:$0xff] }
 0x19e   : > { %3553 = vst [vmem:[%s5877_s20 + $0x18] sm:$0xff] %v3111_v44  ;;  %v2637_v62 = vmul.f32 %v2621_v50, %v7230_v3  ;;  %v3174_v34 = vadd.f32 %v3173_v40, %v6430_v8  ;;  %v6559_v39 = vrot.slane %v2502_v54, %v7225_v48  ;;  %v6562_v24 = vrot.slane %v2516_v18, %v7225_v48  ;;  %v7233_v8 = vld [vmem:[#allocation72_spill] sm:$0xff]  ;;  %v3573_v18 = vld [vmem:[%s5111_s9 + $0x328] sm:$0xff]  ;;  %v3574_v63 = vld [vmem:[%s5111_s9 + $0x338] sm:$0xff] }
 0x19f   : > { %v6565_v13 = vrot.slane %v2518_v57, %v7225_v48  ;;  %v6569_v43 = vrot.slane %v2520_v25, %v7225_v48  ;;  %v6571_v41 = vadd.f32 %v3496_v59, %v2575_v9  ;;  %v6573_v50 = vadd.f32 %v3497_v45, %v2579_v7  ;;  %v7235_v48 = vld [vmem:[#allocation74_spill] sm:$0xff]  ;;  %v7236_v44 = vld [vmem:[#allocation75_spill] sm:$0xff]  ;;  %v3575_v59 = vld [vmem:[%s5111_s9 + $0x348] sm:$0xff] }
 0x1a0   : > { %v2638_v54 = vmul.f32 %v2622_v60, %v7233_v8  ;;  %v3175_v57 = vadd.f32 %v3174_v34, %v6435_v12  ;;  %v6580_v53 = vadd.f32 %v3498_v49, %v2583_v17  ;;  %v2639_v25 = vmul.f32 %v2623_v32, %v7235_v48  ;;  %v3576_v45 = vld [vmem:[%s5111_s9 + $0x358] sm:$0xff]  ;;  %v3577_v60 = vld [vmem:[%s5111_s9 + $0x368] sm:$0xff] }
 0x1a1   : > { %7231 = vst [vmem:[#allocation93_spill] sm:$0xff] %v6571_v41  ;;  %7232 = vst [vmem:[#allocation32_spill] sm:$0xff] %v6573_v50  ;;  %v2640_v40 = vmul.f32 %v2624_v55, %v7236_v44  ;;  %v2641_v3 = vmul.f32 %v2625_v35, %v7237_v0  ;;  %v7238_v8 = vld [vmem:[#allocation77_spill] sm:$0xff]  ;;  %v2643_v12 = vmul.f32 %v2627_v19, %v7239_v26  ;;  %v3578_v49 = vld [vmem:[%s5111_s9 + $0x378] sm:$0xff]  ;;  %v7240_v32 = vstv %s6443_s27 }
 0x1a2   : > { %7234 = vst [vmem:[#allocation33_spill] sm:$0xff] %v6580_v53  ;;  %v2642_v36 = vmul.f32 %v2626_v11, %v7238_v8  ;;  %v2652_v34 = vadd.f32 %v2637_v62, %v2636_v31  ;;  %v3178_v48 = vadd.f32 %v7240_v32, %v3175_v57  ;;  %v3581_v55 = vld [vmem:[%s5111_s9 + $0x3a8] sm:$0xff]  ;;  %v3582_v44 = vld [vmem:[%s5111_s9 + $0x3b8] sm:$0xff]  ;;  %v3196_v50 = vadd.f32 %v3571_v51, %v6493_v15 }
 0x1a3   : > { %v3583_v53 = vld [vmem:[%s5111_s9 + $0x3c8] sm:$0xff]  ;;  %v3197_v35 = vadd.f32 %v3572_v2, %v6496_v61  ;;  %v3198_v0 = vadd.f32 %v3573_v18, %v6507_v29  ;;  %v3584_v8 = vld [vmem:[%s5111_s9 + $0x3d8] sm:$0xff]  ;;  %v3199_v19 = vadd.f32 %v3574_v63, %v6510_v58  ;;  %v3200_v31 = vadd.f32 %v3575_v59, %v6515_v14 }
 0x1a4   : > { %v2653_v11 = vadd.f32 %v2652_v34, %v2638_v54  ;;  %v3585_v41 = vld [vmem:[%s5111_s9 + $0x3e8] sm:$0xff]  ;;  %v3586_v26 = vld [vmem:[%s5111_s9 + $0x3f8] sm:$0xff]  ;;  %v3201_v62 = vadd.f32 %v3576_v45, %v6518_v20  ;;  %3570 = vst [vmem:[%s5877_s20 + $0x28] sm:$0xff] %v3178_v48  ;;  %v3202_v57 = vadd.f32 %v3577_v60, %v6521_v23  ;;  %v3203_v32 = vadd.f32 %v3578_v49, %v6529_v37  ;;  %v3500_v45 = vld [vmem:[%s5111_s9 + $0x3c0] sm:$0xff] }
 0x1a5   : > { %v3204_v15 = vadd.f32 %v3579_v16, %v2575_v9  ;;  %v3205_v51 = vadd.f32 %v3580_v56, %v2579_v7  ;;  %v3206_v2 = vadd.f32 %v3581_v55, %v2583_v17  ;;  %v3207_v29 = vadd.f32 %v3582_v44, %v6542_v27  ;;  %v3501_v34 = vld [vmem:[%s5111_s9 + $0x3d0] sm:$0xff]  ;;  %v7246_v49 = vld [vmem:[#allocation11_spill] sm:$0xff] }
 0x1a6   : > { %v2654_v61 = vadd.f32 %v2653_v11, %v2639_v25  ;;  %v3208_v54 = vadd.f32 %v3583_v53, %v6559_v39  ;;  %v3209_v18 = vadd.f32 %v3584_v8, %v6562_v24  ;;  %v3210_v58 = vadd.f32 %v3585_v41, %v6565_v13  ;;  %v7248_v11 = vld [vmem:[#allocation80_spill] sm:$0xff] }
 0x1a7   : > { %v3211_v14 = vadd.f32 %v3586_v26, %v6569_v43  ;;  %v3212_v20 = vmul.f32 %v3196_v50, %v6227_v46  ;;  %v3213_v37 = vmul.f32 %v3197_v35, %v6230_v33  ;;  %v3214_v56 = vmul.f32 %v3198_v0, %v6233_v6  ;;  %v3499_v6 = vld [vmem:[%s5111_s9 + $0x3b0] sm:$0xff]  ;;  %v7241_v50 = vld [vmem:[#allocation79_spill] sm:$0xff]  ;;  %v3502_v35 = vld [vmem:[%s5111_s9 + $0x3e0] sm:$0xff] }
 0x1a8   : > { %v2655_v23 = vadd.f32 %v2654_v61, %v2640_v40  ;;  %v3215_v16 = vmul.f32 %v3199_v19, %v6236_v28  ;;  %v3216_v9 = vmul.f32 %v3200_v31, %v6239_v5  ;;  %v3217_v7 = vmul.f32 %v3201_v62, %v6242_v47  ;;  %v7245_v60 = vld [vmem:[#allocation32_spill] sm:$0xff]  ;;  %v3503_v19 = vld [vmem:[%s5111_s9 + $0x3f0] sm:$0xff]  ;;  %v7249_v31 = vld [vmem:[#allocation81_spill] sm:$0xff] }
 0x1a9   : > { %v3218_v17 = vmul.f32 %v3202_v57, %v6245_v1  ;;  %v3219_v41 = vmul.f32 %v3203_v32, %v6248_v4  ;;  %v3220_v53 = vmul.f32 %v3204_v15, %v6251_v21  ;;  %v3221_v46 = vmul.f32 %v3205_v51, %v6254_v22  ;;  %v7242_v4 = vld [vmem:[#allocation93_spill] sm:$0xff]  ;;  %v7243_v21 = vld [vmem:[#allocation15_spill] sm:$0xff]  ;;  %v7250_v15 = vld [vmem:[#allocation82_spill] sm:$0xff] }
 0x1aa   : > { %v2656_v63 = vadd.f32 %v2655_v23, %v2641_v3  ;;  %v3222_v33 = vmul.f32 %v3206_v2, %v6257_v38  ;;  %v3223_v28 = vmul.f32 %v3207_v29, %v6260_v52  ;;  %v3224_v5 = vmul.f32 %v3208_v54, %v6263_v42  ;;  %v7244_v52 = vld [vmem:[#allocation12_spill] sm:$0xff]  ;;  %v7247_v48 = vld [vmem:[#allocation33_spill] sm:$0xff]  ;;  %v7251_v2 = vld [vmem:[#allocation83_spill] sm:$0xff] }
 0x1ab   : > { %v3225_v47 = vmul.f32 %v3209_v18, %v6266_v10  ;;  %v3226_v1 = vmul.f32 %v3210_v58, %v6269_v30  ;;  %v2644_v25 = vmul.f32 %v7242_v4, %v7241_v50  ;;  %v3227_v59 = vmul.f32 %v3211_v14, %v7243_v21  ;;  %v7252_v58 = vld [vmem:[#allocation84_spill] sm:$0xff] }
 0x1ac   : > { %v2657_v40 = vadd.f32 %v2656_v63, %v2642_v36  ;;  %v3228_v22 = vadd.f32 %v3213_v37, %v3212_v20  ;;  %v2631_v38 = vadd.f32 %v3499_v6, %v6542_v27  ;;  %v2645_v42 = vmul.f32 %v7245_v60, %v7244_v52 }
 0x1ad   : > { %v2632_v30 = vadd.f32 %v3500_v45, %v6559_v39  ;;  %v2646_v55 = vmul.f32 %v7247_v48, %v7246_v49  ;;  %v2633_v0 = vadd.f32 %v3501_v34, %v6562_v24  ;;  %v2635_v32 = vadd.f32 %v3503_v19, %v6569_v43 }
 0x1ae   : > { %v2658_v3 = vadd.f32 %v2657_v40, %v2643_v12  ;;  %v3229_v10 = vadd.f32 %v3228_v22, %v3214_v56  ;;  %v2647_v8 = vmul.f32 %v2631_v38, %v7248_v11  ;;  %v2634_v12 = vadd.f32 %v3502_v35, %v6565_v13 }
 0x1af   : > { %v2648_v62 = vmul.f32 %v2632_v30, %v7249_v31  ;;  %v2649_v51 = vmul.f32 %v2633_v0, %v7250_v15  ;;  %v2651_v14 = vmul.f32 %v2635_v32, %v7252_v58  ;;  %v2669_v56 = vstv %s2668_s8 }
 0x1b0   : > { %v2659_v36 = vadd.f32 %v2658_v3, %v2644_v25  ;;  %v3230_v44 = vadd.f32 %v3229_v10, %v3215_v16  ;;  %v2650_v29 = vmul.f32 %v2634_v12, %v7251_v2  ;;  %v3244_v50 = vstv %s3243_s30 }
 0x1b2   : > { %v2660_v26 = vadd.f32 %v2659_v36, %v2645_v42  ;;  %v3231_v27 = vadd.f32 %v3230_v44, %v3216_v9 }
 0x1b4   : > { %v2661_v57 = vadd.f32 %v2660_v26, %v2646_v55  ;;  %v3232_v39 = vadd.f32 %v3231_v27, %v3217_v7 }
 0x1b6   : > { %v2662_v61 = vadd.f32 %v2661_v57, %v2647_v8  ;;  %v3233_v24 = vadd.f32 %v3232_v39, %v3218_v17 }
 0x1b8   : > { %v2663_v54 = vadd.f32 %v2662_v61, %v2648_v62  ;;  %v3234_v18 = vadd.f32 %v3233_v24, %v3219_v41 }
 0x1ba   : > { %v2664_v20 = vadd.f32 %v2663_v54, %v2649_v51  ;;  %v3235_v13 = vadd.f32 %v3234_v18, %v3220_v53 }
 0x1bc   : > { %v2665_v23 = vadd.f32 %v2664_v20, %v2650_v29  ;;  %v3236_v37 = vadd.f32 %v3235_v13, %v3221_v46 }
 0x1be   : > { %v2666_v16 = vadd.f32 %v2665_v23, %v2651_v14  ;;  %v3237_v9 = vadd.f32 %v3236_v37, %v3222_v33 }
 0x1c0   : > { %v2670_v43 = vadd.f32 %v2669_v56, %v2666_v16  ;;  %v3238_v7 = vadd.f32 %v3237_v9, %v3223_v28 }
 0x1c2   : > { %3504 = vst [vmem:[%s5877_s20 + $0x30] sm:$0xff] %v2670_v43  ;;  %v3239_v63 = vadd.f32 %v3238_v7, %v3224_v5 }
 0x1c4   : > { %v3240_v17 = vadd.f32 %v3239_v63, %v3225_v47 }
 0x1c6   : > { %v3241_v6 = vadd.f32 %v3240_v17, %v3226_v1 }
 0x1c8   : > { %v3242_v4 = vadd.f32 %v3241_v6, %v3227_v59 }
 0x1ca   : > { %v3245_v41 = vadd.f32 %v3244_v50, %v3242_v4 }
 0x1cc   : > { %3587 = vst [vmem:[%s5877_s20 + $0x38] sm:$0xff] %v3245_v41 }
 0x1cd PF: > { %s18_s23 = sadd.s32 1, %s3801_s23   ;;  %s7253_s21 = smov %s3797_s22 }
 0x1ce   : > { %p15_p4 = scmp.ge.s32.totalorder %s18_s23, 4   ;;  %s7254_s22 = smov %s7256_s25 }
 0x1d0   :  { %17 = sbr.rel (!%p15_p4) target bundleno = 3 (0x3), region = 97 }
 0x1d5   :  { %3277 = vsyncpa [#allocation3], 1 }
 0x1d6   :  { %3279 = vsyncpa [#allocation3 + $0x1], 1 }
 0x1d7   :  { %3280 = vsyncpa [#allocation5], 1 }

</bundles_post_ra>
